<compile_context>
chip_gen: v6e
topology: v6e:2x2x1
jax: 0.10.0
libtpu: 0.0.40
codegen_flags: <defaults>
</compile_context>

<pallas_src>
import functools

import numpy as np
import jax
import jax.numpy as jnp
from jax import lax
from jax.experimental import pallas as pl
from jax.experimental.pallas import tpu as pltpu

_EPS = 1e-5
_LANES = 128


def _round_up(x, m):
    return ((x + m - 1) // m) * m


def _pick_tile_rows(h):
    for t in (32, 16, 8):
        if h % t == 0:
            return t
    return h


# ----------------------------------------------------------------------------
# Kernel 1: [optional fused BN+ReLU of previous layer] -> Conv KxK + bias,
#           plus per-tile BatchNorm partial statistics (sum, sumsq).
# ----------------------------------------------------------------------------
def _conv_bias_stats_kernel(x_main_ref, x_top_ref, x_bot_ref, w_ref, b_ref,
                            scale_ref, shift_ref, out_ref, stats_ref,
                            *, th, w_img, h_img, k, apply_input_act):
    hi = pl.program_id(1)
    cin = x_main_ref.shape[-1]
    cout = out_ref.shape[-1]

    # Assemble the (TH+2, W, Cin) row window: top halo row, main rows, bottom halo row.
    rows = jnp.concatenate([x_top_ref[0], x_main_ref[0], x_bot_ref[0]], axis=0)

    # Fused input transform: BatchNorm + ReLU of the *previous* conv (f32 math).
    if apply_input_act:
        cs = scale_ref[...].reshape(1, 1, cin)
        cb = shift_ref[...].reshape(1, 1, cin)
        rows = jnp.maximum(rows.astype(jnp.float32) * cs + cb, 0.0)

    # Zero rows that fall outside the image ("same" zero-padding semantics).
    # Halo rows clamped at the array boundary carry duplicate/garbage data;
    # jnp.where (not multiply) kills it even if it is NaN.
    r_img = hi * th - 1 + lax.broadcasted_iota(jnp.int32, (th + 2, 1, 1), 0)
    row_ok = jnp.logical_and(r_img >= 0, r_img < h_img)
    rows = jnp.where(row_ok, rows, jnp.zeros_like(rows))

    # Zero-pad the W axis by one column on each side (post-activation zeros).
    zcol = jnp.zeros((th + 2, 1, cin), rows.dtype)
    xt = jnp.concatenate([zcol, rows, zcol], axis=1).astype(jnp.bfloat16)  # (TH+2, W+2, Cin)

    # K*K accumulating MXU dots (no materialized im2col buffer), f32 accumulation.
    acc = jnp.zeros((th * w_img, cout), jnp.float32)
    for dy in range(k):
        for dx in range(k):
            patch = xt[dy:dy + th, dx:dx + w_img, :].reshape(th * w_img, cin)
            acc = acc + jnp.dot(patch, w_ref[dy * k + dx],
                                preferred_element_type=jnp.float32)
    acc = acc + b_ref[...]                                   # conv bias, (M,C)+(1,C)

    out_ref[...] = acc.reshape(out_ref.shape).astype(out_ref.dtype)

    # Per-tile partial BatchNorm statistics over this block (reduced in wrapper).
    s = jnp.sum(acc, axis=0, keepdims=True)
    ss = jnp.sum(acc * acc, axis=0, keepdims=True)
    stats_ref[...] = jnp.concatenate([s, ss], axis=0).reshape(stats_ref.shape)


def _conv_vmem_limit(th, w_img, cin_p, cout_p, k):
    in_tiles = (th + 2) * w_img * cin_p * 2
    out_tile = th * w_img * cout_p * 2
    weight = k * k * cin_p * cout_p * 2
    acc = th * w_img * cout_p * 4
    xt = (th + 2) * (w_img + 2) * cin_p * 4
    est = 2 * (in_tiles + out_tile) + weight + acc + 3 * xt + (1 << 20)
    return int(min(max(4 * est, 32 * 2**20), 56 * 2**20))


def _conv_bias_stats(x_nhwc, w_packed, bias, in_scale, in_shift, *,
                     k, tile_rows, apply_input_act, out_dtype):
    """x_nhwc: (N, H, W, Cin_pad) bf16 (raw, unpadded spatially);
    w_packed: (K*K, Cin_pad, Cout_pad) bf16; bias/in_scale/in_shift: (1, C) f32."""
    n, h, w_img, cin_p = x_nhwc.shape
    cout_p = w_packed.shape[-1]
    th = tile_rows
    assert h % th == 0, (h, th)
    num_h = h // th

    cost = pl.CostEstimate(
        flops=2 * n * h * w_img * (k * k * cin_p) * cout_p,
        transcendentals=0,
        bytes_accessed=(x_nhwc.size * x_nhwc.dtype.itemsize
                        + w_packed.size * 2
                        + n * h * w_img * cout_p * jnp.dtype(out_dtype).itemsize
                        + n * num_h * 2 * cout_p * 4))

    out_raw, stats = pl.pallas_call(
        functools.partial(_conv_bias_stats_kernel, th=th, w_img=w_img, h_img=h,
                          k=k, apply_input_act=apply_input_act),
        grid=(n, num_h),
        in_specs=[
            # main TH-row stripe of this tile
            pl.BlockSpec((1, th, w_img, cin_p), lambda ni, hi: (ni, hi, 0, 0)),
            # 1-row top halo (clamped at the image boundary; masked in-kernel)
            pl.BlockSpec((1, 1, w_img, cin_p),
                         lambda ni, hi: (ni, jnp.maximum(hi * th - 1, 0), 0, 0)),
            # 1-row bottom halo (clamped; masked in-kernel)
            pl.BlockSpec((1, 1, w_img, cin_p),
                         lambda ni, hi: (ni, jnp.minimum(hi * th + th, h - 1), 0, 0)),
            # weight / bias / input-affine: constant index_maps -> VMEM-resident
            pl.BlockSpec((k * k, cin_p, cout_p), lambda ni, hi: (0, 0, 0)),
            pl.BlockSpec((1, cout_p), lambda ni, hi: (0, 0)),
            pl.BlockSpec((1, cin_p), lambda ni, hi: (0, 0)),
            pl.BlockSpec((1, cin_p), lambda ni, hi: (0, 0)),
        ],
        out_specs=[
            pl.BlockSpec((1, th, w_img, cout_p), lambda ni, hi: (ni, hi, 0, 0)),
            pl.BlockSpec((1, 1, 2, cout_p), lambda ni, hi: (ni, hi, 0, 0)),
        ],
        out_shape=(
            jax.ShapeDtypeStruct((n, h, w_img, cout_p), out_dtype),
            jax.ShapeDtypeStruct((n, num_h, 2, cout_p), jnp.float32),
        ),
        compiler_params=pltpu.CompilerParams(
            dimension_semantics=("parallel", "parallel"),
            vmem_limit_bytes=_conv_vmem_limit(th, w_img, cin_p, cout_p, k)),
        cost_estimate=cost,
    )(x_nhwc, x_nhwc, x_nhwc, w_packed, bias, in_scale, in_shift)
    return out_raw, stats


# ----------------------------------------------------------------------------
# Kernel 2: standalone BatchNorm (as precomputed affine) + ReLU apply
# (only needed for the LAST conv of the block; BN1 is fused into conv2's input)
# ----------------------------------------------------------------------------
def _bn_relu_kernel(x_ref, scale_ref, shift_ref, o_ref):
    c = x_ref.shape[-1]
    y = (x_ref[0].astype(jnp.float32) * scale_ref[...].reshape(1, 1, c)
         + shift_ref[...].reshape(1, 1, c))
    o_ref[...] = jnp.maximum(y, 0.0).astype(o_ref.dtype).reshape(o_ref.shape)


def _bn_relu_apply(x_raw, scale, shift, *, tile_rows, out_dtype):
    n, h, w_img, c = x_raw.shape
    th = tile_rows
    num_h = h // th
    cost = pl.CostEstimate(
        flops=3 * x_raw.size, transcendentals=0,
        bytes_accessed=x_raw.size * x_raw.dtype.itemsize
                       + x_raw.size * jnp.dtype(out_dtype).itemsize)
    return pl.pallas_call(
        _bn_relu_kernel,
        grid=(n, num_h),
        in_specs=[
            pl.BlockSpec((1, th, w_img, c), lambda ni, hi: (ni, hi, 0, 0)),
            pl.BlockSpec((1, c), lambda ni, hi: (0, 0)),
            pl.BlockSpec((1, c), lambda ni, hi: (0, 0)),
        ],
        out_specs=pl.BlockSpec((1, th, w_img, c), lambda ni, hi: (ni, hi, 0, 0)),
        out_shape=jax.ShapeDtypeStruct((n, h, w_img, c), out_dtype),
        compiler_params=pltpu.CompilerParams(
            dimension_semantics=("parallel", "parallel"),
            vmem_limit_bytes=32 * 2**20),
        cost_estimate=cost,
    )(x_raw, scale, shift)


# ----------------------------------------------------------------------------
# BatchNorm partial stats -> per-channel affine (tiny XLA reduction)
# ----------------------------------------------------------------------------
def _stats_to_affine(stats, gamma, beta, count, eps=_EPS):
    s = jnp.sum(stats, axis=(0, 1))                 # (2, C)
    mean = s[0] / count                             # (C,)
    var = jnp.maximum(s[1] / count - mean * mean, 0.0)   # biased var (training mode)
    inv = lax.rsqrt(var + eps).reshape(1, -1)       # (1, C)
    scale = gamma * inv                             # padded lanes: gamma==0 -> 0
    shift = beta - mean.reshape(1, -1) * scale
    return scale, shift


# ----------------------------------------------------------------------------
# Parameters
# ----------------------------------------------------------------------------
def pack_conv_weight(w_oihw, cin_pad, cout_pad):
    """PyTorch (Cout, Cin, K, K) -> (K*K, Cin_pad, Cout_pad) bf16.
    Tap index = dy*K + dx, matching the in-kernel loop order."""
    cout, cin, kh, kw = w_oihw.shape
    w = jnp.transpose(w_oihw, (2, 3, 1, 0))         # (K, K, Cin, Cout)
    w = jnp.pad(w, ((0, 0), (0, 0), (0, cin_pad - cin), (0, cout_pad - cout)))
    return w.reshape(kh * kw, cin_pad, cout_pad).astype(jnp.bfloat16)


def init_double_conv_params(key, in_channels, out_channels, mid_channels=None, k=3):
    if mid_channels is None:
        mid_channels = out_channels
    cin_p = _round_up(in_channels, _LANES)
    cmid_p = _round_up(mid_channels, _LANES)
    cout_p = _round_up(out_channels, _LANES)
    k1, k2, k3, k4 = jax.random.split(key, 4)
    w1 = jax.random.normal(k1, (mid_channels, in_channels, k, k), jnp.float32) / np.sqrt(in_channels * k * k)
    b1 = 0.01 * jax.random.normal(k2, (mid_channels,), jnp.float32)
    w2 = jax.random.normal(k3, (out_channels, mid_channels, k, k), jnp.float32) / np.sqrt(mid_channels * k * k)
    b2 = 0.01 * jax.random.normal(k4, (out_channels,), jnp.float32)

    def pad_vec(v, cpad):
        return jnp.pad(v, (0, cpad - v.shape[0])).reshape(1, cpad)

    def gamma_vec(c_real, cpad):
        # gamma = 1 on real channels, 0 on padded lanes (keeps padding exactly zero).
        return pad_vec(jnp.ones((c_real,), jnp.float32), cpad)

    return {
        "k": k,
        "out_channels": out_channels,
        "cin_pad": cin_p,
        "cmid_pad": cmid_p,
        "cout_pad": cout_p,
        "w1": pack_conv_weight(w1, cin_p, cmid_p),
        "b1": pad_vec(b1, cmid_p),
        "g1": gamma_vec(mid_channels, cmid_p),
        "bt1": jnp.zeros((1, cmid_p), jnp.float32),
        "w2": pack_conv_weight(w2, cmid_p, cout_p),
        "b2": pad_vec(b2, cout_p),
        "g2": gamma_vec(out_channels, cout_p),
        "bt2": jnp.zeros((1, cout_p), jnp.float32),
        # f32 OIHW copies kept only for the pure-JAX reference check
        "ref_w1": w1, "ref_b1": b1, "ref_w2": w2, "ref_b2": b2,
    }


# ----------------------------------------------------------------------------
# DoubleConv forward (public entry point: NCHW in / NCHW out, like PyTorch).
# A full UNet should stay NHWC end-to-end and do the transposes once globally.
# ----------------------------------------------------------------------------
def double_conv_forward(params, x_nchw, *, tile_rows=None):
    k = params["k"]
    n, cin, h, w_img = x_nchw.shape
    th = tile_rows if tile_rows is not None else _pick_tile_rows(h)
    assert h % th == 0, (h, th)
    count = n * h * w_img

    x = jnp.transpose(x_nchw, (0, 2, 3, 1))                 # NCHW -> NHWC (once)
    x = jnp.pad(x, ((0, 0), (0, 0), (0, 0), (0, params["cin_pad"] - cin)))
    x = x.astype(jnp.bfloat16)
    ident_s = jnp.ones((1, params["cin_pad"]), jnp.float32)
    ident_b = jnp.zeros((1, params["cin_pad"]), jnp.float32)

    # conv1 + bias (raw, bf16) + partial BN1 stats
    y1_raw, st1 = _conv_bias_stats(x, params["w1"], params["b1"], ident_s, ident_b,
                                   k=k, tile_rows=th, apply_input_act=False,
                                   out_dtype=jnp.bfloat16)
    sc1, sh1 = _stats_to_affine(st1, params["g1"], params["bt1"], count)

    # conv2: BN1 + ReLU1 fused into the input transform; partial BN2 stats
    y2_raw, st2 = _conv_bias_stats(y1_raw, params["w2"], params["b2"], sc1, sh1,
                                   k=k, tile_rows=th, apply_input_act=True,
                                   out_dtype=jnp.bfloat16)
    sc2, sh2 = _stats_to_affine(st2, params["g2"], params["bt2"], count)

    # final BN2 + ReLU2 apply (f32 at the module boundary; a bf16 consumer
    # should request out_dtype=bf16 here to halve the writeback).
    y = _bn_relu_apply(y2_raw, sc2, sh2, tile_rows=th, out_dtype=jnp.float32)
    y = y[..., :params["out_channels"]]                     # drop lane padding once
    return jnp.transpose(y, (0, 3, 1, 2))                   # NHWC -> NCHW


# ----------------------------------------------------------------------------
# Pure-JAX reference (mimics the kernel's bf16 operand / storage quantization)
# ----------------------------------------------------------------------------
def reference_forward(params, x_nchw):
    def conv(x_nhwc, w_oihw, b):
        w = jnp.transpose(w_oihw, (2, 3, 1, 0)).astype(jnp.bfloat16)    # HWIO
        y = lax.conv_general_dilated(
            x_nhwc.astype(jnp.bfloat16), w, window_strides=(1, 1), padding="SAME",
            dimension_numbers=("NHWC", "HWIO", "NHWC"),
            preferred_element_type=jnp.float32)
        return y + b.reshape(1, 1, 1, -1)

    def bn_affine(y_f32):
        mean = jnp.mean(y_f32, axis=(0, 1, 2))
        var = jnp.maximum(jnp.mean(jnp.square(y_f32), axis=(0, 1, 2)) - mean * mean, 0.0)
        inv = lax.rsqrt(var + _EPS)
        return inv, -mean * inv                             # gamma=1, beta=0

    x = jnp.transpose(x_nchw, (0, 2, 3, 1))
    y1 = conv(x, params["ref_w1"], params["ref_b1"])        # f32
    s1, t1 = bn_affine(y1)
    a1 = jnp.maximum(y1.astype(jnp.bfloat16).astype(jnp.float32) * s1 + t1, 0.0)
    y2 = conv(a1, params["ref_w2"], params["ref_b2"])
    s2, t2 = bn_affine(y2)
    out = jnp.maximum(y2.astype(jnp.bfloat16).astype(jnp.float32) * s2 + t2, 0.0)
    return jnp.transpose(out, (0, 3, 1, 2))


if __name__ == "__main__":
    key = jax.random.PRNGKey(0)
    k_in, k_par = jax.random.split(key)

    in_channels, out_channels = 4, 8                        # mid_channels defaults to out
    x = jax.random.normal(k_in, (2, in_channels, 16, 16), jnp.float32)   # NCHW
    params = init_double_conv_params(k_par, in_channels, out_channels)

    # tile_rows=8 -> 2 H-tiles per image: exercises the halo / boundary-mask path.
    fwd = jax.jit(functools.partial(double_conv_forward, params, tile_rows=8))
    y = fwd(x)
    jax.block_until_ready(y)

    assert y.shape == (2, out_channels, 16, 16), y.shape
    assert bool(jnp.all(jnp.isfinite(y)))

    y_ref = reference_forward(params, x)
    max_err = float(jnp.max(jnp.abs(y - y_ref)))
    assert max_err < 5e-2, f"max abs error vs reference: {max_err}"

    print("KERNEL_OK")
</pallas_src>

<mosaic_0001>
module attributes {stable_mosaic.version = 11 : i64} {
  func.func @_conv_bias_stats_kernel(%arg0: i32, %arg1: i32, %arg2: memref<1x8x16x128xbf16, #tpu.memory_space<vmem>>, %arg3: memref<1x1x16x128xbf16, #tpu.memory_space<vmem>>, %arg4: memref<1x1x16x128xbf16, #tpu.memory_space<vmem>>, %arg5: memref<9x128x128xbf16, #tpu.memory_space<vmem>>, %arg6: memref<1x128xf32, #tpu.memory_space<vmem>>, %arg7: memref<1x128xf32, #tpu.memory_space<vmem>>, %arg8: memref<1x128xf32, #tpu.memory_space<vmem>>, %arg9: memref<1x8x16x128xbf16, #tpu.memory_space<vmem>>, %arg10: memref<1x1x2x128xf32, #tpu.memory_space<vmem>>) attributes {dimension_semantics = [#tpu.dimension_semantics<parallel>, #tpu.dimension_semantics<parallel>], iteration_bounds = array<i64: 2, 2>, scalar_prefetch = 0 : i64, scratch_operands = 0 : i64, tpu.core_type = #tpu.core_type<tc>, window_params = [{transform_indices = @transform_0, window_bounds = array<i64: 1, 8, 16, 128>}, {transform_indices = @transform_1, window_bounds = array<i64: 1, 1, 16, 128>}, {transform_indices = @transform_2, window_bounds = array<i64: 1, 1, 16, 128>}, {pipeline_mode = #tpu.pipeline_mode<synchronous>, transform_indices = @transform_3, window_bounds = array<i64: 9, 128, 128>}, {pipeline_mode = #tpu.pipeline_mode<synchronous>, transform_indices = @transform_4, window_bounds = array<i64: 1, 128>}, {pipeline_mode = #tpu.pipeline_mode<synchronous>, transform_indices = @transform_5, window_bounds = array<i64: 1, 128>}, {pipeline_mode = #tpu.pipeline_mode<synchronous>, transform_indices = @transform_6, window_bounds = array<i64: 1, 128>}, {transform_indices = @transform_7, window_bounds = array<i64: 1, 8, 16, 128>}, {transform_indices = @transform_8, window_bounds = array<i64: 1, 1, 2, 128>}]} {
    %c0 = arith.constant 0 : index
    %c0_0 = arith.constant 0 : index
    %c0_1 = arith.constant 0 : index
    %c0_2 = arith.constant 0 : index
    %0 = vector.load %arg3[%c0, %c0_0, %c0_1, %c0_2] : memref<1x1x16x128xbf16, #tpu.memory_space<vmem>>, vector<1x1x16x128xbf16>
    %1 = vector.shape_cast %0 : vector<1x1x16x128xbf16> to vector<1x16x128xbf16>
    %c0_3 = arith.constant 0 : index
    %c0_4 = arith.constant 0 : index
    %c0_5 = arith.constant 0 : index
    %c0_6 = arith.constant 0 : index
    %2 = vector.load %arg2[%c0_3, %c0_4, %c0_5, %c0_6] : memref<1x8x16x128xbf16, #tpu.memory_space<vmem>>, vector<1x8x16x128xbf16>
    %3 = vector.shape_cast %2 : vector<1x8x16x128xbf16> to vector<8x16x128xbf16>
    %c0_7 = arith.constant 0 : index
    %c0_8 = arith.constant 0 : index
    %c0_9 = arith.constant 0 : index
    %c0_10 = arith.constant 0 : index
    %4 = vector.load %arg4[%c0_7, %c0_8, %c0_9, %c0_10] : memref<1x1x16x128xbf16, #tpu.memory_space<vmem>>, vector<1x1x16x128xbf16>
    %5 = vector.shape_cast %4 : vector<1x1x16x128xbf16> to vector<1x16x128xbf16>
    %6 = tpu.concatenate %1, %3, %5 in 0 : vector<1x16x128xbf16>, vector<8x16x128xbf16>, vector<1x16x128xbf16> -> vector<10x16x128xbf16>
    %c8_i32 = arith.constant 8 : i32
    %7 = arith.muli %arg1, %c8_i32 : i32
    %c1_i32 = arith.constant 1 : i32
    %8 = arith.subi %7, %c1_i32 : i32
    %9 = tpu.iota {dimensions = array<i32: 0>} : vector<10x1x1xi32>
    %10 = vector.broadcast %8 : i32 to vector<10x1x1xi32>
    %11 = arith.addi %10, %9 : vector<10x1x1xi32>
    %c0_i32 = arith.constant 0 : i32
    %12 = vector.broadcast %c0_i32 : i32 to vector<10x1x1xi32>
    %13 = arith.cmpi sge, %11, %12 : vector<10x1x1xi32>
    %c16_i32 = arith.constant 16 : i32
    %14 = vector.broadcast %c16_i32 : i32 to vector<10x1x1xi32>
    %15 = arith.cmpi slt, %11, %14 : vector<10x1x1xi32>
    %16 = arith.andi %13, %15 : vector<10x1x1xi1>
    %cst = arith.constant 0.000000e+00 : bf16
    %17 = vector.broadcast %cst : bf16 to vector<10x16x128xbf16>
    %18 = vector.shape_cast %16 : vector<10x1x1xi1> to vector<10x1x1xi1>
    %19 = vector.broadcast %18 : vector<10x1x1xi1> to vector<10x16x128xi1>
    %20 = arith.select %19, %6, %17 : vector<10x16x128xi1>, vector<10x16x128xbf16>
    %cst_11 = arith.constant 0.000000e+00 : bf16
    %21 = vector.broadcast %cst_11 : bf16 to vector<10x1x128xbf16>
    %22 = tpu.concatenate %21, %20, %21 in 1 : vector<10x1x128xbf16>, vector<10x16x128xbf16>, vector<10x1x128xbf16> -> vector<10x18x128xbf16>
    %cst_12 = arith.constant 0.000000e+00 : f32
    %23 = vector.broadcast %cst_12 : f32 to vector<128x128xf32>
    %24 = vector.extract_strided_slice %22 {offsets = [0, 0, 0], sizes = [8, 16, 128], strides = [1, 1, 1]} : vector<10x18x128xbf16> to vector<8x16x128xbf16>
    %25 = vector.shape_cast %24 : vector<8x16x128xbf16> to vector<128x128xbf16>
    %c0_13 = arith.constant 0 : index
    %c0_14 = arith.constant 0 : index
    %c0_15 = arith.constant 0 : index
    %26 = vector.load %arg5[%c0_13, %c0_14, %c0_15] : memref<9x128x128xbf16, #tpu.memory_space<vmem>>, vector<1x128x128xbf16>
    %27 = vector.shape_cast %26 : vector<1x128x128xbf16> to vector<128x128xbf16>
    %cst_16 = arith.constant dense<0.000000e+00> : vector<128x128xf32>
    %28 = tpu.matmul %25, %27, %cst_16 {dimension_numbers = #tpu.dot_dimension_numbers<[1], [0], [0], [1], [0, 0, 1, 1], [], []>} : vector<128x128xbf16>, vector<128x128xbf16>, vector<128x128xf32> -> vector<128x128xf32>
    %29 = arith.addf %23, %28 : vector<128x128xf32>
    %30 = vector.extract_strided_slice %22 {offsets = [0, 1, 0], sizes = [8, 16, 128], strides = [1, 1, 1]} : vector<10x18x128xbf16> to vector<8x16x128xbf16>
    %31 = vector.shape_cast %30 : vector<8x16x128xbf16> to vector<128x128xbf16>
    %c1 = arith.constant 1 : index
    %c0_17 = arith.constant 0 : index
    %c0_18 = arith.constant 0 : index
    %32 = vector.load %arg5[%c1, %c0_17, %c0_18] : memref<9x128x128xbf16, #tpu.memory_space<vmem>>, vector<1x128x128xbf16>
    %33 = vector.shape_cast %32 : vector<1x128x128xbf16> to vector<128x128xbf16>
    %cst_19 = arith.constant dense<0.000000e+00> : vector<128x128xf32>
    %34 = tpu.matmul %31, %33, %cst_19 {dimension_numbers = #tpu.dot_dimension_numbers<[1], [0], [0], [1], [0, 0, 1, 1], [], []>} : vector<128x128xbf16>, vector<128x128xbf16>, vector<128x128xf32> -> vector<128x128xf32>
    %35 = arith.addf %29, %34 : vector<128x128xf32>
    %36 = vector.extract_strided_slice %22 {offsets = [0, 2, 0], sizes = [8, 16, 128], strides = [1, 1, 1]} : vector<10x18x128xbf16> to vector<8x16x128xbf16>
    %37 = vector.shape_cast %36 : vector<8x16x128xbf16> to vector<128x128xbf16>
    %c2 = arith.constant 2 : index
    %c0_20 = arith.constant 0 : index
    %c0_21 = arith.constant 0 : index
    %38 = vector.load %arg5[%c2, %c0_20, %c0_21] : memref<9x128x128xbf16, #tpu.memory_space<vmem>>, vector<1x128x128xbf16>
    %39 = vector.shape_cast %38 : vector<1x128x128xbf16> to vector<128x128xbf16>
    %cst_22 = arith.constant dense<0.000000e+00> : vector<128x128xf32>
    %40 = tpu.matmul %37, %39, %cst_22 {dimension_numbers = #tpu.dot_dimension_numbers<[1], [0], [0], [1], [0, 0, 1, 1], [], []>} : vector<128x128xbf16>, vector<128x128xbf16>, vector<128x128xf32> -> vector<128x128xf32>
    %41 = arith.addf %35, %40 : vector<128x128xf32>
    %42 = vector.extract_strided_slice %22 {offsets = [1, 0, 0], sizes = [8, 16, 128], strides = [1, 1, 1]} : vector<10x18x128xbf16> to vector<8x16x128xbf16>
    %43 = vector.shape_cast %42 : vector<8x16x128xbf16> to vector<128x128xbf16>
    %c3 = arith.constant 3 : index
    %c0_23 = arith.constant 0 : index
    %c0_24 = arith.constant 0 : index
    %44 = vector.load %arg5[%c3, %c0_23, %c0_24] : memref<9x128x128xbf16, #tpu.memory_space<vmem>>, vector<1x128x128xbf16>
    %45 = vector.shape_cast %44 : vector<1x128x128xbf16> to vector<128x128xbf16>
    %cst_25 = arith.constant dense<0.000000e+00> : vector<128x128xf32>
    %46 = tpu.matmul %43, %45, %cst_25 {dimension_numbers = #tpu.dot_dimension_numbers<[1], [0], [0], [1], [0, 0, 1, 1], [], []>} : vector<128x128xbf16>, vector<128x128xbf16>, vector<128x128xf32> -> vector<128x128xf32>
    %47 = arith.addf %41, %46 : vector<128x128xf32>
    %48 = vector.extract_strided_slice %22 {offsets = [1, 1, 0], sizes = [8, 16, 128], strides = [1, 1, 1]} : vector<10x18x128xbf16> to vector<8x16x128xbf16>
    %49 = vector.shape_cast %48 : vector<8x16x128xbf16> to vector<128x128xbf16>
    %c4 = arith.constant 4 : index
    %c0_26 = arith.constant 0 : index
    %c0_27 = arith.constant 0 : index
    %50 = vector.load %arg5[%c4, %c0_26, %c0_27] : memref<9x128x128xbf16, #tpu.memory_space<vmem>>, vector<1x128x128xbf16>
    %51 = vector.shape_cast %50 : vector<1x128x128xbf16> to vector<128x128xbf16>
    %cst_28 = arith.constant dense<0.000000e+00> : vector<128x128xf32>
    %52 = tpu.matmul %49, %51, %cst_28 {dimension_numbers = #tpu.dot_dimension_numbers<[1], [0], [0], [1], [0, 0, 1, 1], [], []>} : vector<128x128xbf16>, vector<128x128xbf16>, vector<128x128xf32> -> vector<128x128xf32>
    %53 = arith.addf %47, %52 : vector<128x128xf32>
    %54 = vector.extract_strided_slice %22 {offsets = [1, 2, 0], sizes = [8, 16, 128], strides = [1, 1, 1]} : vector<10x18x128xbf16> to vector<8x16x128xbf16>
    %55 = vector.shape_cast %54 : vector<8x16x128xbf16> to vector<128x128xbf16>
    %c5 = arith.constant 5 : index
    %c0_29 = arith.constant 0 : index
    %c0_30 = arith.constant 0 : index
    %56 = vector.load %arg5[%c5, %c0_29, %c0_30] : memref<9x128x128xbf16, #tpu.memory_space<vmem>>, vector<1x128x128xbf16>
    %57 = vector.shape_cast %56 : vector<1x128x128xbf16> to vector<128x128xbf16>
    %cst_31 = arith.constant dense<0.000000e+00> : vector<128x128xf32>
    %58 = tpu.matmul %55, %57, %cst_31 {dimension_numbers = #tpu.dot_dimension_numbers<[1], [0], [0], [1], [0, 0, 1, 1], [], []>} : vector<128x128xbf16>, vector<128x128xbf16>, vector<128x128xf32> -> vector<128x128xf32>
    %59 = arith.addf %53, %58 : vector<128x128xf32>
    %60 = vector.extract_strided_slice %22 {offsets = [2, 0, 0], sizes = [8, 16, 128], strides = [1, 1, 1]} : vector<10x18x128xbf16> to vector<8x16x128xbf16>
    %61 = vector.shape_cast %60 : vector<8x16x128xbf16> to vector<128x128xbf16>
    %c6 = arith.constant 6 : index
    %c0_32 = arith.constant 0 : index
    %c0_33 = arith.constant 0 : index
    %62 = vector.load %arg5[%c6, %c0_32, %c0_33] : memref<9x128x128xbf16, #tpu.memory_space<vmem>>, vector<1x128x128xbf16>
    %63 = vector.shape_cast %62 : vector<1x128x128xbf16> to vector<128x128xbf16>
    %cst_34 = arith.constant dense<0.000000e+00> : vector<128x128xf32>
    %64 = tpu.matmul %61, %63, %cst_34 {dimension_numbers = #tpu.dot_dimension_numbers<[1], [0], [0], [1], [0, 0, 1, 1], [], []>} : vector<128x128xbf16>, vector<128x128xbf16>, vector<128x128xf32> -> vector<128x128xf32>
    %65 = arith.addf %59, %64 : vector<128x128xf32>
    %66 = vector.extract_strided_slice %22 {offsets = [2, 1, 0], sizes = [8, 16, 128], strides = [1, 1, 1]} : vector<10x18x128xbf16> to vector<8x16x128xbf16>
    %67 = vector.shape_cast %66 : vector<8x16x128xbf16> to vector<128x128xbf16>
    %c7 = arith.constant 7 : index
    %c0_35 = arith.constant 0 : index
    %c0_36 = arith.constant 0 : index
    %68 = vector.load %arg5[%c7, %c0_35, %c0_36] : memref<9x128x128xbf16, #tpu.memory_space<vmem>>, vector<1x128x128xbf16>
    %69 = vector.shape_cast %68 : vector<1x128x128xbf16> to vector<128x128xbf16>
    %cst_37 = arith.constant dense<0.000000e+00> : vector<128x128xf32>
    %70 = tpu.matmul %67, %69, %cst_37 {dimension_numbers = #tpu.dot_dimension_numbers<[1], [0], [0], [1], [0, 0, 1, 1], [], []>} : vector<128x128xbf16>, vector<128x128xbf16>, vector<128x128xf32> -> vector<128x128xf32>
    %71 = arith.addf %65, %70 : vector<128x128xf32>
    %72 = vector.extract_strided_slice %22 {offsets = [2, 2, 0], sizes = [8, 16, 128], strides = [1, 1, 1]} : vector<10x18x128xbf16> to vector<8x16x128xbf16>
    %73 = vector.shape_cast %72 : vector<8x16x128xbf16> to vector<128x128xbf16>
    %c8 = arith.constant 8 : index
    %c0_38 = arith.constant 0 : index
    %c0_39 = arith.constant 0 : index
    %74 = vector.load %arg5[%c8, %c0_38, %c0_39] : memref<9x128x128xbf16, #tpu.memory_space<vmem>>, vector<1x128x128xbf16>
    %75 = vector.shape_cast %74 : vector<1x128x128xbf16> to vector<128x128xbf16>
    %cst_40 = arith.constant dense<0.000000e+00> : vector<128x128xf32>
    %76 = tpu.matmul %73, %75, %cst_40 {dimension_numbers = #tpu.dot_dimension_numbers<[1], [0], [0], [1], [0, 0, 1, 1], [], []>} : vector<128x128xbf16>, vector<128x128xbf16>, vector<128x128xf32> -> vector<128x128xf32>
    %77 = arith.addf %71, %76 : vector<128x128xf32>
    %c0_41 = arith.constant 0 : index
    %c0_42 = arith.constant 0 : index
    %78 = vector.load %arg6[%c0_41, %c0_42] : memref<1x128xf32, #tpu.memory_space<vmem>>, vector<1x128xf32>
    %79 = vector.broadcast %78 : vector<1x128xf32> to vector<128x128xf32>
    %80 = arith.addf %77, %79 : vector<128x128xf32>
    %81 = vector.shape_cast %80 : vector<128x128xf32> to vector<1x8x16x128xf32>
    %82 = arith.truncf %81 : vector<1x8x16x128xf32> to vector<1x8x16x128xbf16>
    %c0_43 = arith.constant 0 : index
    %c0_44 = arith.constant 0 : index
    %c0_45 = arith.constant 0 : index
    %c0_46 = arith.constant 0 : index
    %83 = vector.load %arg9[%c0_43, %c0_44, %c0_45, %c0_46] : memref<1x8x16x128xbf16, #tpu.memory_space<vmem>>, vector<1x8x16x128xbf16>
    tpu.vector_store %arg9[%c0_43, %c0_44, %c0_45, %c0_46], %82 {strides = array<i32>} : memref<1x8x16x128xbf16, #tpu.memory_space<vmem>>, vector<1x8x16x128xbf16>,
    %cst_47 = arith.constant dense<0.000000e+00> : vector<128xf32>
    %84 = vector.multi_reduction <add>, %80, %cst_47 [0] : vector<128x128xf32> to vector<128xf32>
    %85 = vector.shape_cast %84 : vector<128xf32> to vector<1x128xf32>
    %86 = arith.mulf %80, %80 : vector<128x128xf32>
    %cst_48 = arith.constant dense<0.000000e+00> : vector<128xf32>
    %87 = vector.multi_reduction <add>, %86, %cst_48 [0] : vector<128x128xf32> to vector<128xf32>
    %88 = vector.shape_cast %87 : vector<128xf32> to vector<1x128xf32>
    %89 = tpu.concatenate %85, %88 in 0 : vector<1x128xf32>, vector<1x128xf32> -> vector<2x128xf32>
    %90 = vector.shape_cast %89 : vector<2x128xf32> to vector<1x1x2x128xf32>
    %c0_49 = arith.constant 0 : index
    %c0_50 = arith.constant 0 : index
    %c0_51 = arith.constant 0 : index
    %c0_52 = arith.constant 0 : index
    %91 = vector.load %arg10[%c0_49, %c0_50, %c0_51, %c0_52] : memref<1x1x2x128xf32, #tpu.memory_space<vmem>>, vector<1x1x2x128xf32>
    tpu.vector_store %arg10[%c0_49, %c0_50, %c0_51, %c0_52], %90 {strides = array<i32>} : memref<1x1x2x128xf32, #tpu.memory_space<vmem>>, vector<1x1x2x128xf32>,
    return
  }
  func.func @transform_0(%arg0: i32, %arg1: i32) -> (i32, i32, i32, i32) {
    %c0_i32 = arith.constant 0 : i32
    %c0_i32_0 = arith.constant 0 : i32
    %c0_i32_1 = arith.constant 0 : i32
    return %arg0, %arg1, %c0_i32, %c0_i32_0 : i32, i32, i32, i32
  }
  func.func @transform_1(%arg0: i32, %arg1: i32) -> (i32, i32, i32, i32) {
    %c8_i32 = arith.constant 8 : i32
    %0 = arith.muli %arg1, %c8_i32 : i32
    %c1_i32 = arith.constant 1 : i32
    %1 = arith.subi %0, %c1_i32 : i32
    %c0_i32 = arith.constant 0 : i32
    %2 = arith.maxsi %1, %c0_i32 : i32
    %c0_i32_0 = arith.constant 0 : i32
    %c0_i32_1 = arith.constant 0 : i32
    %c0_i32_2 = arith.constant 0 : i32
    return %arg0, %2, %c0_i32_0, %c0_i32_1 : i32, i32, i32, i32
  }
  func.func @transform_2(%arg0: i32, %arg1: i32) -> (i32, i32, i32, i32) {
    %c8_i32 = arith.constant 8 : i32
    %0 = arith.muli %arg1, %c8_i32 : i32
    %c8_i32_0 = arith.constant 8 : i32
    %1 = arith.addi %0, %c8_i32_0 : i32
    %c15_i32 = arith.constant 15 : i32
    %2 = arith.minsi %1, %c15_i32 : i32
    %c0_i32 = arith.constant 0 : i32
    %c0_i32_1 = arith.constant 0 : i32
    %c0_i32_2 = arith.constant 0 : i32
    return %arg0, %2, %c0_i32, %c0_i32_1 : i32, i32, i32, i32
  }
  func.func @transform_3(%arg0: i32, %arg1: i32) -> (i32, i32, i32) {
    %c0_i32 = arith.constant 0 : i32
    %c0_i32_0 = arith.constant 0 : i32
    %c0_i32_1 = arith.constant 0 : i32
    %c0_i32_2 = arith.constant 0 : i32
    return %c0_i32, %c0_i32_0, %c0_i32_1 : i32, i32, i32
  }
  func.func @transform_4(%arg0: i32, %arg1: i32) -> (i32, i32) {
    %c0_i32 = arith.constant 0 : i32
    %c0_i32_0 = arith.constant 0 : i32
    %c0_i32_1 = arith.constant 0 : i32
    return %c0_i32, %c0_i32_0 : i32, i32
  }
  func.func @transform_5(%arg0: i32, %arg1: i32) -> (i32, i32) {
    %c0_i32 = arith.constant 0 : i32
    %c0_i32_0 = arith.constant 0 : i32
    %c0_i32_1 = arith.constant 0 : i32
    return %c0_i32, %c0_i32_0 : i32, i32
  }
  func.func @transform_6(%arg0: i32, %arg1: i32) -> (i32, i32) {
    %c0_i32 = arith.constant 0 : i32
    %c0_i32_0 = arith.constant 0 : i32
    %c0_i32_1 = arith.constant 0 : i32
    return %c0_i32, %c0_i32_0 : i32, i32
  }
  func.func @transform_7(%arg0: i32, %arg1: i32) -> (i32, i32, i32, i32) {
    %c0_i32 = arith.constant 0 : i32
    %c0_i32_0 = arith.constant 0 : i32
    %c0_i32_1 = arith.constant 0 : i32
    return %arg0, %arg1, %c0_i32, %c0_i32_0 : i32, i32, i32, i32
  }
  func.func @transform_8(%arg0: i32, %arg1: i32) -> (i32, i32, i32, i32) {
    %c0_i32 = arith.constant 0 : i32
    %c0_i32_0 = arith.constant 0 : i32
    %c0_i32_1 = arith.constant 0 : i32
    return %arg0, %arg1, %c0_i32, %c0_i32_0 : i32, i32, i32, i32
  }
}

module attributes {stable_mosaic.version = 11 : i64} {
  func.func @_conv_bias_stats_kernel(%arg0: i32, %arg1: i32, %arg2: memref<1x8x16x128xbf16, #tpu.memory_space<vmem>>, %arg3: memref<1x1x16x128xbf16, #tpu.memory_space<vmem>>, %arg4: memref<1x1x16x128xbf16, #tpu.memory_space<vmem>>, %arg5: memref<9x128x128xbf16, #tpu.memory_space<vmem>>, %arg6: memref<1x128xf32, #tpu.memory_space<vmem>>, %arg7: memref<1x128xf32, #tpu.memory_space<vmem>>, %arg8: memref<1x128xf32, #tpu.memory_space<vmem>>, %arg9: memref<1x8x16x128xbf16, #tpu.memory_space<vmem>>, %arg10: memref<1x1x2x128xf32, #tpu.memory_space<vmem>>) attributes {dimension_semantics = [#tpu.dimension_semantics<parallel>, #tpu.dimension_semantics<parallel>], iteration_bounds = array<i64: 2, 2>, scalar_prefetch = 0 : i64, scratch_operands = 0 : i64, tpu.core_type = #tpu.core_type<tc>, window_params = [{transform_indices = @transform_0, window_bounds = array<i64: 1, 8, 16, 128>}, {transform_indices = @transform_1, window_bounds = array<i64: 1, 1, 16, 128>}, {transform_indices = @transform_2, window_bounds = array<i64: 1, 1, 16, 128>}, {pipeline_mode = #tpu.pipeline_mode<synchronous>, transform_indices = @transform_3, window_bounds = array<i64: 9, 128, 128>}, {pipeline_mode = #tpu.pipeline_mode<synchronous>, transform_indices = @transform_4, window_bounds = array<i64: 1, 128>}, {pipeline_mode = #tpu.pipeline_mode<synchronous>, transform_indices = @transform_5, window_bounds = array<i64: 1, 128>}, {pipeline_mode = #tpu.pipeline_mode<synchronous>, transform_indices = @transform_6, window_bounds = array<i64: 1, 128>}, {transform_indices = @transform_7, window_bounds = array<i64: 1, 8, 16, 128>}, {transform_indices = @transform_8, window_bounds = array<i64: 1, 1, 2, 128>}]} {
    %c0 = arith.constant 0 : index
    %c0_0 = arith.constant 0 : index
    %c0_1 = arith.constant 0 : index
    %c0_2 = arith.constant 0 : index
    %0 = vector.load %arg3[%c0, %c0_0, %c0_1, %c0_2] : memref<1x1x16x128xbf16, #tpu.memory_space<vmem>>, vector<1x1x16x128xbf16>
    %1 = vector.shape_cast %0 : vector<1x1x16x128xbf16> to vector<1x16x128xbf16>
    %c0_3 = arith.constant 0 : index
    %c0_4 = arith.constant 0 : index
    %c0_5 = arith.constant 0 : index
    %c0_6 = arith.constant 0 : index
    %2 = vector.load %arg2[%c0_3, %c0_4, %c0_5, %c0_6] : memref<1x8x16x128xbf16, #tpu.memory_space<vmem>>, vector<1x8x16x128xbf16>
    %3 = vector.shape_cast %2 : vector<1x8x16x128xbf16> to vector<8x16x128xbf16>
    %c0_7 = arith.constant 0 : index
    %c0_8 = arith.constant 0 : index
    %c0_9 = arith.constant 0 : index
    %c0_10 = arith.constant 0 : index
    %4 = vector.load %arg4[%c0_7, %c0_8, %c0_9, %c0_10] : memref<1x1x16x128xbf16, #tpu.memory_space<vmem>>, vector<1x1x16x128xbf16>
    %5 = vector.shape_cast %4 : vector<1x1x16x128xbf16> to vector<1x16x128xbf16>
    %6 = tpu.concatenate %1, %3, %5 in 0 : vector<1x16x128xbf16>, vector<8x16x128xbf16>, vector<1x16x128xbf16> -> vector<10x16x128xbf16>
    %c0_11 = arith.constant 0 : index
    %c0_12 = arith.constant 0 : index
    %7 = vector.load %arg7[%c0_11, %c0_12] : memref<1x128xf32, #tpu.memory_space<vmem>>, vector<1x128xf32>
    %8 = vector.shape_cast %7 : vector<1x128xf32> to vector<1x1x128xf32>
    %c0_13 = arith.constant 0 : index
    %c0_14 = arith.constant 0 : index
    %9 = vector.load %arg8[%c0_13, %c0_14] : memref<1x128xf32, #tpu.memory_space<vmem>>, vector<1x128xf32>
    %10 = vector.shape_cast %9 : vector<1x128xf32> to vector<1x1x128xf32>
    %11 = arith.extf %6 : vector<10x16x128xbf16> to vector<10x16x128xf32>
    %12 = vector.broadcast %8 : vector<1x1x128xf32> to vector<10x16x128xf32>
    %13 = arith.mulf %11, %12 : vector<10x16x128xf32>
    %14 = vector.broadcast %10 : vector<1x1x128xf32> to vector<10x16x128xf32>
    %15 = arith.addf %13, %14 : vector<10x16x128xf32>
    %cst = arith.constant 0.000000e+00 : f32
    %16 = vector.broadcast %cst : f32 to vector<10x16x128xf32>
    %17 = arith.maximumf %15, %16 : vector<10x16x128xf32>
    %c8_i32 = arith.constant 8 : i32
    %18 = arith.muli %arg1, %c8_i32 : i32
    %c1_i32 = arith.constant 1 : i32
    %19 = arith.subi %18, %c1_i32 : i32
    %20 = tpu.iota {dimensions = array<i32: 0>} : vector<10x1x1xi32>
    %21 = vector.broadcast %19 : i32 to vector<10x1x1xi32>
    %22 = arith.addi %21, %20 : vector<10x1x1xi32>
    %c0_i32 = arith.constant 0 : i32
    %23 = vector.broadcast %c0_i32 : i32 to vector<10x1x1xi32>
    %24 = arith.cmpi sge, %22, %23 : vector<10x1x1xi32>
    %c16_i32 = arith.constant 16 : i32
    %25 = vector.broadcast %c16_i32 : i32 to vector<10x1x1xi32>
    %26 = arith.cmpi slt, %22, %25 : vector<10x1x1xi32>
    %27 = arith.andi %24, %26 : vector<10x1x1xi1>
    %cst_15 = arith.constant 0.000000e+00 : f32
    %28 = vector.broadcast %cst_15 : f32 to vector<10x16x128xf32>
    %29 = vector.shape_cast %27 : vector<10x1x1xi1> to vector<10x1x1xi1>
    %30 = vector.broadcast %29 : vector<10x1x1xi1> to vector<10x16x128xi1>
    %31 = arith.select %30, %17, %28 : vector<10x16x128xi1>, vector<10x16x128xf32>
    %cst_16 = arith.constant 0.000000e+00 : f32
    %32 = vector.broadcast %cst_16 : f32 to vector<10x1x128xf32>
    %33 = tpu.concatenate %32, %31, %32 in 1 : vector<10x1x128xf32>, vector<10x16x128xf32>, vector<10x1x128xf32> -> vector<10x18x128xf32>
    %34 = arith.truncf %33 : vector<10x18x128xf32> to vector<10x18x128xbf16>
    %cst_17 = arith.constant 0.000000e+00 : f32
    %35 = vector.broadcast %cst_17 : f32 to vector<128x128xf32>
    %36 = vector.extract_strided_slice %34 {offsets = [0, 0, 0], sizes = [8, 16, 128], strides = [1, 1, 1]} : vector<10x18x128xbf16> to vector<8x16x128xbf16>
    %37 = vector.shape_cast %36 : vector<8x16x128xbf16> to vector<128x128xbf16>
    %c0_18 = arith.constant 0 : index
    %c0_19 = arith.constant 0 : index
    %c0_20 = arith.constant 0 : index
    %38 = vector.load %arg5[%c0_18, %c0_19, %c0_20] : memref<9x128x128xbf16, #tpu.memory_space<vmem>>, vector<1x128x128xbf16>
    %39 = vector.shape_cast %38 : vector<1x128x128xbf16> to vector<128x128xbf16>
    %cst_21 = arith.constant dense<0.000000e+00> : vector<128x128xf32>
    %40 = tpu.matmul %37, %39, %cst_21 {dimension_numbers = #tpu.dot_dimension_numbers<[1], [0], [0], [1], [0, 0, 1, 1], [], []>} : vector<128x128xbf16>, vector<128x128xbf16>, vector<128x128xf32> -> vector<128x128xf32>
    %41 = arith.addf %35, %40 : vector<128x128xf32>
    %42 = vector.extract_strided_slice %34 {offsets = [0, 1, 0], sizes = [8, 16, 128], strides = [1, 1, 1]} : vector<10x18x128xbf16> to vector<8x16x128xbf16>
    %43 = vector.shape_cast %42 : vector<8x16x128xbf16> to vector<128x128xbf16>
    %c1 = arith.constant 1 : index
    %c0_22 = arith.constant 0 : index
    %c0_23 = arith.constant 0 : index
    %44 = vector.load %arg5[%c1, %c0_22, %c0_23] : memref<9x128x128xbf16, #tpu.memory_space<vmem>>, vector<1x128x128xbf16>
    %45 = vector.shape_cast %44 : vector<1x128x128xbf16> to vector<128x128xbf16>
    %cst_24 = arith.constant dense<0.000000e+00> : vector<128x128xf32>
    %46 = tpu.matmul %43, %45, %cst_24 {dimension_numbers = #tpu.dot_dimension_numbers<[1], [0], [0], [1], [0, 0, 1, 1], [], []>} : vector<128x128xbf16>, vector<128x128xbf16>, vector<128x128xf32> -> vector<128x128xf32>
    %47 = arith.addf %41, %46 : vector<128x128xf32>
    %48 = vector.extract_strided_slice %34 {offsets = [0, 2, 0], sizes = [8, 16, 128], strides = [1, 1, 1]} : vector<10x18x128xbf16> to vector<8x16x128xbf16>
    %49 = vector.shape_cast %48 : vector<8x16x128xbf16> to vector<128x128xbf16>
    %c2 = arith.constant 2 : index
    %c0_25 = arith.constant 0 : index
    %c0_26 = arith.constant 0 : index
    %50 = vector.load %arg5[%c2, %c0_25, %c0_26] : memref<9x128x128xbf16, #tpu.memory_space<vmem>>, vector<1x128x128xbf16>
    %51 = vector.shape_cast %50 : vector<1x128x128xbf16> to vector<128x128xbf16>
    %cst_27 = arith.constant dense<0.000000e+00> : vector<128x128xf32>
    %52 = tpu.matmul %49, %51, %cst_27 {dimension_numbers = #tpu.dot_dimension_numbers<[1], [0], [0], [1], [0, 0, 1, 1], [], []>} : vector<128x128xbf16>, vector<128x128xbf16>, vector<128x128xf32> -> vector<128x128xf32>
    %53 = arith.addf %47, %52 : vector<128x128xf32>
    %54 = vector.extract_strided_slice %34 {offsets = [1, 0, 0], sizes = [8, 16, 128], strides = [1, 1, 1]} : vector<10x18x128xbf16> to vector<8x16x128xbf16>
    %55 = vector.shape_cast %54 : vector<8x16x128xbf16> to vector<128x128xbf16>
    %c3 = arith.constant 3 : index
    %c0_28 = arith.constant 0 : index
    %c0_29 = arith.constant 0 : index
    %56 = vector.load %arg5[%c3, %c0_28, %c0_29] : memref<9x128x128xbf16, #tpu.memory_space<vmem>>, vector<1x128x128xbf16>
    %57 = vector.shape_cast %56 : vector<1x128x128xbf16> to vector<128x128xbf16>
    %cst_30 = arith.constant dense<0.000000e+00> : vector<128x128xf32>
    %58 = tpu.matmul %55, %57, %cst_30 {dimension_numbers = #tpu.dot_dimension_numbers<[1], [0], [0], [1], [0, 0, 1, 1], [], []>} : vector<128x128xbf16>, vector<128x128xbf16>, vector<128x128xf32> -> vector<128x128xf32>
    %59 = arith.addf %53, %58 : vector<128x128xf32>
    %60 = vector.extract_strided_slice %34 {offsets = [1, 1, 0], sizes = [8, 16, 128], strides = [1, 1, 1]} : vector<10x18x128xbf16> to vector<8x16x128xbf16>
    %61 = vector.shape_cast %60 : vector<8x16x128xbf16> to vector<128x128xbf16>
    %c4 = arith.constant 4 : index
    %c0_31 = arith.constant 0 : index
    %c0_32 = arith.constant 0 : index
    %62 = vector.load %arg5[%c4, %c0_31, %c0_32] : memref<9x128x128xbf16, #tpu.memory_space<vmem>>, vector<1x128x128xbf16>
    %63 = vector.shape_cast %62 : vector<1x128x128xbf16> to vector<128x128xbf16>
    %cst_33 = arith.constant dense<0.000000e+00> : vector<128x128xf32>
    %64 = tpu.matmul %61, %63, %cst_33 {dimension_numbers = #tpu.dot_dimension_numbers<[1], [0], [0], [1], [0, 0, 1, 1], [], []>} : vector<128x128xbf16>, vector<128x128xbf16>, vector<128x128xf32> -> vector<128x128xf32>
    %65 = arith.addf %59, %64 : vector<128x128xf32>
    %66 = vector.extract_strided_slice %34 {offsets = [1, 2, 0], sizes = [8, 16, 128], strides = [1, 1, 1]} : vector<10x18x128xbf16> to vector<8x16x128xbf16>
    %67 = vector.shape_cast %66 : vector<8x16x128xbf16> to vector<128x128xbf16>
    %c5 = arith.constant 5 : index
    %c0_34 = arith.constant 0 : index
    %c0_35 = arith.constant 0 : index
    %68 = vector.load %arg5[%c5, %c0_34, %c0_35] : memref<9x128x128xbf16, #tpu.memory_space<vmem>>, vector<1x128x128xbf16>
    %69 = vector.shape_cast %68 : vector<1x128x128xbf16> to vector<128x128xbf16>
    %cst_36 = arith.constant dense<0.000000e+00> : vector<128x128xf32>
    %70 = tpu.matmul %67, %69, %cst_36 {dimension_numbers = #tpu.dot_dimension_numbers<[1], [0], [0], [1], [0, 0, 1, 1], [], []>} : vector<128x128xbf16>, vector<128x128xbf16>, vector<128x128xf32> -> vector<128x128xf32>
    %71 = arith.addf %65, %70 : vector<128x128xf32>
    %72 = vector.extract_strided_slice %34 {offsets = [2, 0, 0], sizes = [8, 16, 128], strides = [1, 1, 1]} : vector<10x18x128xbf16> to vector<8x16x128xbf16>
    %73 = vector.shape_cast %72 : vector<8x16x128xbf16> to vector<128x128xbf16>
    %c6 = arith.constant 6 : index
    %c0_37 = arith.constant 0 : index
    %c0_38 = arith.constant 0 : index
    %74 = vector.load %arg5[%c6, %c0_37, %c0_38] : memref<9x128x128xbf16, #tpu.memory_space<vmem>>, vector<1x128x128xbf16>
    %75 = vector.shape_cast %74 : vector<1x128x128xbf16> to vector<128x128xbf16>
    %cst_39 = arith.constant dense<0.000000e+00> : vector<128x128xf32>
    %76 = tpu.matmul %73, %75, %cst_39 {dimension_numbers = #tpu.dot_dimension_numbers<[1], [0], [0], [1], [0, 0, 1, 1], [], []>} : vector<128x128xbf16>, vector<128x128xbf16>, vector<128x128xf32> -> vector<128x128xf32>
    %77 = arith.addf %71, %76 : vector<128x128xf32>
    %78 = vector.extract_strided_slice %34 {offsets = [2, 1, 0], sizes = [8, 16, 128], strides = [1, 1, 1]} : vector<10x18x128xbf16> to vector<8x16x128xbf16>
    %79 = vector.shape_cast %78 : vector<8x16x128xbf16> to vector<128x128xbf16>
    %c7 = arith.constant 7 : index
    %c0_40 = arith.constant 0 : index
    %c0_41 = arith.constant 0 : index
    %80 = vector.load %arg5[%c7, %c0_40, %c0_41] : memref<9x128x128xbf16, #tpu.memory_space<vmem>>, vector<1x128x128xbf16>
    %81 = vector.shape_cast %80 : vector<1x128x128xbf16> to vector<128x128xbf16>
    %cst_42 = arith.constant dense<0.000000e+00> : vector<128x128xf32>
    %82 = tpu.matmul %79, %81, %cst_42 {dimension_numbers = #tpu.dot_dimension_numbers<[1], [0], [0], [1], [0, 0, 1, 1], [], []>} : vector<128x128xbf16>, vector<128x128xbf16>, vector<128x128xf32> -> vector<128x128xf32>
    %83 = arith.addf %77, %82 : vector<128x128xf32>
    %84 = vector.extract_strided_slice %34 {offsets = [2, 2, 0], sizes = [8, 16, 128], strides = [1, 1, 1]} : vector<10x18x128xbf16> to vector<8x16x128xbf16>
    %85 = vector.shape_cast %84 : vector<8x16x128xbf16> to vector<128x128xbf16>
    %c8 = arith.constant 8 : index
    %c0_43 = arith.constant 0 : index
    %c0_44 = arith.constant 0 : index
    %86 = vector.load %arg5[%c8, %c0_43, %c0_44] : memref<9x128x128xbf16, #tpu.memory_space<vmem>>, vector<1x128x128xbf16>
    %87 = vector.shape_cast %86 : vector<1x128x128xbf16> to vector<128x128xbf16>
    %cst_45 = arith.constant dense<0.000000e+00> : vector<128x128xf32>
    %88 = tpu.matmul %85, %87, %cst_45 {dimension_numbers = #tpu.dot_dimension_numbers<[1], [0], [0], [1], [0, 0, 1, 1], [], []>} : vector<128x128xbf16>, vector<128x128xbf16>, vector<128x128xf32> -> vector<128x128xf32>
    %89 = arith.addf %83, %88 : vector<128x128xf32>
    %c0_46 = arith.constant 0 : index
    %c0_47 = arith.constant 0 : index
    %90 = vector.load %arg6[%c0_46, %c0_47] : memref<1x128xf32, #tpu.memory_space<vmem>>, vector<1x128xf32>
    %91 = vector.broadcast %90 : vector<1x128xf32> to vector<128x128xf32>
    %92 = arith.addf %89, %91 : vector<128x128xf32>
    %93 = vector.shape_cast %92 : vector<128x128xf32> to vector<1x8x16x128xf32>
    %94 = arith.truncf %93 : vector<1x8x16x128xf32> to vector<1x8x16x128xbf16>
    %c0_48 = arith.constant 0 : index
    %c0_49 = arith.constant 0 : index
    %c0_50 = arith.constant 0 : index
    %c0_51 = arith.constant 0 : index
    %95 = vector.load %arg9[%c0_48, %c0_49, %c0_50, %c0_51] : memref<1x8x16x128xbf16, #tpu.memory_space<vmem>>, vector<1x8x16x128xbf16>
    tpu.vector_store %arg9[%c0_48, %c0_49, %c0_50, %c0_51], %94 {strides = array<i32>} : memref<1x8x16x128xbf16, #tpu.memory_space<vmem>>, vector<1x8x16x128xbf16>,
    %cst_52 = arith.constant dense<0.000000e+00> : vector<128xf32>
    %96 = vector.multi_reduction <add>, %92, %cst_52 [0] : vector<128x128xf32> to vector<128xf32>
    %97 = vector.shape_cast %96 : vector<128xf32> to vector<1x128xf32>
    %98 = arith.mulf %92, %92 : vector<128x128xf32>
    %cst_53 = arith.constant dense<0.000000e+00> : vector<128xf32>
    %99 = vector.multi_reduction <add>, %98, %cst_53 [0] : vector<128x128xf32> to vector<128xf32>
    %100 = vector.shape_cast %99 : vector<128xf32> to vector<1x128xf32>
    %101 = tpu.concatenate %97, %100 in 0 : vector<1x128xf32>, vector<1x128xf32> -> vector<2x128xf32>
    %102 = vector.shape_cast %101 : vector<2x128xf32> to vector<1x1x2x128xf32>
    %c0_54 = arith.constant 0 : index
    %c0_55 = arith.constant 0 : index
    %c0_56 = arith.constant 0 : index
    %c0_57 = arith.constant 0 : index
    %103 = vector.load %arg10[%c0_54, %c0_55, %c0_56, %c0_57] : memref<1x1x2x128xf32, #tpu.memory_space<vmem>>, vector<1x1x2x128xf32>
    tpu.vector_store %arg10[%c0_54, %c0_55, %c0_56, %c0_57], %102 {strides = array<i32>} : memref<1x1x2x128xf32, #tpu.memory_space<vmem>>, vector<1x1x2x128xf32>,
    return
  }
  func.func @transform_0(%arg0: i32, %arg1: i32) -> (i32, i32, i32, i32) {
    %c0_i32 = arith.constant 0 : i32
    %c0_i32_0 = arith.constant 0 : i32
    %c0_i32_1 = arith.constant 0 : i32
    return %arg0, %arg1, %c0_i32, %c0_i32_0 : i32, i32, i32, i32
  }
  func.func @transform_1(%arg0: i32, %arg1: i32) -> (i32, i32, i32, i32) {
    %c8_i32 = arith.constant 8 : i32
    %0 = arith.muli %arg1, %c8_i32 : i32
    %c1_i32 = arith.constant 1 : i32
    %1 = arith.subi %0, %c1_i32 : i32
    %c0_i32 = arith.constant 0 : i32
    %2 = arith.maxsi %1, %c0_i32 : i32
    %c0_i32_0 = arith.constant 0 : i32
    %c0_i32_1 = arith.constant 0 : i32
    %c0_i32_2 = arith.constant 0 : i32
    return %arg0, %2, %c0_i32_0, %c0_i32_1 : i32, i32, i32, i32
  }
  func.func @transform_2(%arg0: i32, %arg1: i32) -> (i32, i32, i32, i32) {
    %c8_i32 = arith.constant 8 : i32
    %0 = arith.muli %arg1, %c8_i32 : i32
    %c8_i32_0 = arith.constant 8 : i32
    %1 = arith.addi %0, %c8_i32_0 : i32
    %c15_i32 = arith.constant 15 : i32
    %2 = arith.minsi %1, %c15_i32 : i32
    %c0_i32 = arith.constant 0 : i32
    %c0_i32_1 = arith.constant 0 : i32
    %c0_i32_2 = arith.constant 0 : i32
    return %arg0, %2, %c0_i32, %c0_i32_1 : i32, i32, i32, i32
  }
  func.func @transform_3(%arg0: i32, %arg1: i32) -> (i32, i32, i32) {
    %c0_i32 = arith.constant 0 : i32
    %c0_i32_0 = arith.constant 0 : i32
    %c0_i32_1 = arith.constant 0 : i32
    %c0_i32_2 = arith.constant 0 : i32
    return %c0_i32, %c0_i32_0, %c0_i32_1 : i32, i32, i32
  }
  func.func @transform_4(%arg0: i32, %arg1: i32) -> (i32, i32) {
    %c0_i32 = arith.constant 0 : i32
    %c0_i32_0 = arith.constant 0 : i32
    %c0_i32_1 = arith.constant 0 : i32
    return %c0_i32, %c0_i32_0 : i32, i32
  }
  func.func @transform_5(%arg0: i32, %arg1: i32) -> (i32, i32) {
    %c0_i32 = arith.constant 0 : i32
    %c0_i32_0 = arith.constant 0 : i32
    %c0_i32_1 = arith.constant 0 : i32
    return %c0_i32, %c0_i32_0 : i32, i32
  }
  func.func @transform_6(%arg0: i32, %arg1: i32) -> (i32, i32) {
    %c0_i32 = arith.constant 0 : i32
    %c0_i32_0 = arith.constant 0 : i32
    %c0_i32_1 = arith.constant 0 : i32
    return %c0_i32, %c0_i32_0 : i32, i32
  }
  func.func @transform_7(%arg0: i32, %arg1: i32) -> (i32, i32, i32, i32) {
    %c0_i32 = arith.constant 0 : i32
    %c0_i32_0 = arith.constant 0 : i32
    %c0_i32_1 = arith.constant 0 : i32
    return %arg0, %arg1, %c0_i32, %c0_i32_0 : i32, i32, i32, i32
  }
  func.func @transform_8(%arg0: i32, %arg1: i32) -> (i32, i32, i32, i32) {
    %c0_i32 = arith.constant 0 : i32
    %c0_i32_0 = arith.constant 0 : i32
    %c0_i32_1 = arith.constant 0 : i32
    return %arg0, %arg1, %c0_i32, %c0_i32_0 : i32, i32, i32, i32
  }
}

module attributes {stable_mosaic.version = 11 : i64} {
  func.func @_bn_relu_kernel(%arg0: i32, %arg1: i32, %arg2: memref<1x8x16x128xbf16, #tpu.memory_space<vmem>>, %arg3: memref<1x128xf32, #tpu.memory_space<vmem>>, %arg4: memref<1x128xf32, #tpu.memory_space<vmem>>, %arg5: memref<1x8x16x128xf32, #tpu.memory_space<vmem>>) attributes {dimension_semantics = [#tpu.dimension_semantics<parallel>, #tpu.dimension_semantics<parallel>], iteration_bounds = array<i64: 2, 2>, scalar_prefetch = 0 : i64, scratch_operands = 0 : i64, tpu.core_type = #tpu.core_type<tc>, window_params = [{transform_indices = @transform_0, window_bounds = array<i64: 1, 8, 16, 128>}, {pipeline_mode = #tpu.pipeline_mode<synchronous>, transform_indices = @transform_1, window_bounds = array<i64: 1, 128>}, {pipeline_mode = #tpu.pipeline_mode<synchronous>, transform_indices = @transform_2, window_bounds = array<i64: 1, 128>}, {transform_indices = @transform_3, window_bounds = array<i64: 1, 8, 16, 128>}]} {
    %c0 = arith.constant 0 : index
    %c0_0 = arith.constant 0 : index
    %c0_1 = arith.constant 0 : index
    %c0_2 = arith.constant 0 : index
    %0 = vector.load %arg2[%c0, %c0_0, %c0_1, %c0_2] : memref<1x8x16x128xbf16, #tpu.memory_space<vmem>>, vector<1x8x16x128xbf16>
    %1 = vector.shape_cast %0 : vector<1x8x16x128xbf16> to vector<8x16x128xbf16>
    %2 = arith.extf %1 : vector<8x16x128xbf16> to vector<8x16x128xf32>
    %c0_3 = arith.constant 0 : index
    %c0_4 = arith.constant 0 : index
    %3 = vector.load %arg3[%c0_3, %c0_4] : memref<1x128xf32, #tpu.memory_space<vmem>>, vector<1x128xf32>
    %4 = vector.shape_cast %3 : vector<1x128xf32> to vector<1x1x128xf32>
    %5 = vector.broadcast %4 : vector<1x1x128xf32> to vector<8x16x128xf32>
    %6 = arith.mulf %2, %5 : vector<8x16x128xf32>
    %c0_5 = arith.constant 0 : index
    %c0_6 = arith.constant 0 : index
    %7 = vector.load %arg4[%c0_5, %c0_6] : memref<1x128xf32, #tpu.memory_space<vmem>>, vector<1x128xf32>
    %8 = vector.shape_cast %7 : vector<1x128xf32> to vector<1x1x128xf32>
    %9 = vector.broadcast %8 : vector<1x1x128xf32> to vector<8x16x128xf32>
    %10 = arith.addf %6, %9 : vector<8x16x128xf32>
    %cst = arith.constant 0.000000e+00 : f32
    %11 = vector.broadcast %cst : f32 to vector<8x16x128xf32>
    %12 = arith.maximumf %10, %11 : vector<8x16x128xf32>
    %13 = vector.shape_cast %12 : vector<8x16x128xf32> to vector<1x8x16x128xf32>
    %c0_7 = arith.constant 0 : index
    %c0_8 = arith.constant 0 : index
    %c0_9 = arith.constant 0 : index
    %c0_10 = arith.constant 0 : index
    %14 = vector.load %arg5[%c0_7, %c0_8, %c0_9, %c0_10] : memref<1x8x16x128xf32, #tpu.memory_space<vmem>>, vector<1x8x16x128xf32>
    tpu.vector_store %arg5[%c0_7, %c0_8, %c0_9, %c0_10], %13 {strides = array<i32>} : memref<1x8x16x128xf32, #tpu.memory_space<vmem>>, vector<1x8x16x128xf32>,
    return
  }
  func.func @transform_0(%arg0: i32, %arg1: i32) -> (i32, i32, i32, i32) {
    %c0_i32 = arith.constant 0 : i32
    %c0_i32_0 = arith.constant 0 : i32
    %c0_i32_1 = arith.constant 0 : i32
    return %arg0, %arg1, %c0_i32, %c0_i32_0 : i32, i32, i32, i32
  }
  func.func @transform_1(%arg0: i32, %arg1: i32) -> (i32, i32) {
    %c0_i32 = arith.constant 0 : i32
    %c0_i32_0 = arith.constant 0 : i32
    %c0_i32_1 = arith.constant 0 : i32
    return %c0_i32, %c0_i32_0 : i32, i32
  }
  func.func @transform_2(%arg0: i32, %arg1: i32) -> (i32, i32) {
    %c0_i32 = arith.constant 0 : i32
    %c0_i32_0 = arith.constant 0 : i32
    %c0_i32_1 = arith.constant 0 : i32
    return %c0_i32, %c0_i32_0 : i32, i32
  }
  func.func @transform_3(%arg0: i32, %arg1: i32) -> (i32, i32, i32, i32) {
    %c0_i32 = arith.constant 0 : i32
    %c0_i32_0 = arith.constant 0 : i32
    %c0_i32_1 = arith.constant 0 : i32
    return %arg0, %arg1, %c0_i32, %c0_i32_0 : i32, i32, i32, i32
  }
}

</mosaic_0001>

<bundles_post_ra>
// kernel: double_conv_forward.5
= control target key start
LH: loop header
LB: loop body
LE: loop exit
PB: predicated region body
PF: predicated region fallthrough
CT: control target
= control target key end

     0   :  { %s580_s12 = smov 0   ;;  %s582_s13 = smov 0   ;;  %s705_s0 = inlined_call_operand.vmem [shape: bf16[2,16,16,128], index: 0, kind: input, shape index: {}]   ;;  %s706_s1 = inlined_call_operand.vmem [shape: f32[1,128], index: 1, kind: input, shape index: {}]   ;;  %s707_s2 = inlined_call_operand.vmem [shape: f32[1,128], index: 2, kind: input, shape index: {}]   ;;  %s708_s3 = inlined_call_operand.vmem [shape: f32[2,16,16,128], index: 3, kind: output, shape index: {}]  }
   0x1   :  { %s584_s14 = smov 0   ;;  %s586_s15 = smov 0  }
   0x2   :  { %s588_s16 = smov 0  }
   0x3 LB: > { %s22_s17 = sadd.s32 1, %s550_s14  ;;  %s25_s18 = sadd.s32 1, %s554_s15  ;;  %s558_s16 = sphi %s588_s16, %s13_s16   ;;  %s554_s15 = sphi %s586_s15, %s712_s15   ;;  %s550_s14 = sphi %s584_s14, %s711_s14   ;;  %s546_s13 = sphi %s582_s13, %s710_s13   ;;  %s542_s12 = sphi %s580_s12, %s709_s12  }
   0x4   : > { %p23_p0 = scmp.ge.s32.totalorder %s22_s17, 2  ;;  %p428_p1 = scmp.ge.s32.totalorder %s558_s16, 1 }
   0x5   : > { %p159_p2 = scmp.lt.s32.totalorder %s558_s16, 5 }
   0x6   : > { %s714_s17 = smov (%p23_p0, %s22_s17), 0  ;;  %s716_s18 = smov (!%p23_p0, %s25_s18), %s554_s15 }
   0x7   : > { %p160_p3 = pnand %p428_p1, %p159_p2  ;;  %p27_p4 = scmp.ge.s32.totalorder %s716_s18, 2 }
   0x8   : > { %s429_s19 = sshll.u32 (!%p160_p3), %s542_s12, 3  ;;  %p194_p5 = scmp.lt.s32.totalorder (!%p160_p3), %s546_s13, 1 }
   0x9   : > { %s718_s18 = smov (%p27_p4, %s716_s18), 0  ;;  %163 = sbr.rel (%p160_p3) target bundleno = 40 (0x28), region = 32 }
   0xa   : > { %p196_p6 = scmp.lt.s32.totalorder (!%p160_p3), %s429_s19, 15 }
   0xe   : > { %s720_s13 = smov (!%p194_p5, %s546_s13), 1  ;;  %s722_s19 = smov (!%p196_p6, %s429_s19), 15  ;;  %v621_v0 = vld [vmem:[%s706_s1] ss:$0 sm:$0xff] }
   0xf   : > { %s431_s20 = sshll.u32 %s720_s13, 5  ;;  %s430_s21 = sshll.u32 %s722_s19, 1  ;;  %v630_v9 = vld [vmem:[%s707_s2] ss:$0 sm:$0xff] }
  0x10   : > { %s610_s22 = sadd.s32 %s431_s20, %s430_s21 }
  0x11   : > { %s432_s23 = sshll.u32 %s610_s22, 2  ;;  %s436_s4 = sshll.u32 %s610_s22, 3 }
  0x12   : > { %s616_s26 = scalar_lea.vmem %s705_s0, %s432_s23  ;;  %s648_s7 = scalar_lea.vmem %s708_s3, %s436_s4 }
  0x13   : > { %v442_v1 = vld [vmem:[%s616_s26] sm:$0xff]   ;;  %v473_v2 = vld [vmem:[%s616_s26 + $0x8] sm:$0xff]   ;;  %v474_v3 = vld [vmem:[%s616_s26 + $0x10] sm:$0xff]  }
  0x14   : > { %v443_v4 = vunpack.c.l.bf16 %v442_v1  ;;  %v444_v5 = vunpack.c.h.bf16 %v442_v1  ;;  %v447_v6 = vunpack.c.l.bf16 %v473_v2  ;;  %v448_v7 = vunpack.c.h.bf16 %v473_v2  ;;  %v475_v8 = vld [vmem:[%s616_s26 + $0x18] sm:$0xff]   ;;  %v476_v30 = vld [vmem:[%s616_s26 + $0x20] sm:$0xff]   ;;  %v477_v31 = vld [vmem:[%s616_s26 + $0x28] sm:$0xff]  }
  0x15   : > { %v451_v10 = vunpack.c.l.bf16 %v474_v3  ;;  %v452_v11 = vunpack.c.h.bf16 %v474_v3  ;;  %v455_v12 = vunpack.c.l.bf16 %v475_v8  ;;  %v456_v13 = vunpack.c.h.bf16 %v475_v8  ;;  %v478_v36 = vld [vmem:[%s616_s26 + $0x30] sm:$0xff]   ;;  %v479_v37 = vld [vmem:[%s616_s26 + $0x38] sm:$0xff]  }
  0x16   : > { %v254_v14 = vmul.f32 %v443_v4, %v621_v0  ;;  %v255_v15 = vmul.f32 %v444_v5, %v621_v0  ;;  %v256_v16 = vmul.f32 %v447_v6, %v621_v0  ;;  %v257_v17 = vmul.f32 %v448_v7, %v621_v0 }
  0x17   : > { %v258_v18 = vmul.f32 %v451_v10, %v621_v0  ;;  %v259_v19 = vmul.f32 %v452_v11, %v621_v0  ;;  %v260_v20 = vmul.f32 %v455_v12, %v621_v0  ;;  %v261_v21 = vmul.f32 %v456_v13, %v621_v0 }
  0x18   : > { %v277_v22 = vadd.f32 %v630_v9, %v254_v14  ;;  %v278_v23 = vadd.f32 %v630_v9, %v255_v15  ;;  %v279_v24 = vadd.f32 %v630_v9, %v256_v16  ;;  %v280_v25 = vadd.f32 %v630_v9, %v257_v17 }
  0x19   : > { %v281_v26 = vadd.f32 %v630_v9, %v258_v18  ;;  %v282_v27 = vadd.f32 %v630_v9, %v259_v19  ;;  %v283_v28 = vadd.f32 %v630_v9, %v260_v20  ;;  %v284_v29 = vadd.f32 %v630_v9, %v261_v21 }
  0x1a   : > { %v293_v32 = vmax.f32 %v277_v22, 0.0  ;;  %v294_v33 = vmax.f32 %v278_v23, 0.0  ;;  %v295_v34 = vmax.f32 %v279_v24, 0.0  ;;  %v296_v35 = vmax.f32 %v280_v25, 0.0 }
  0x1b   : > { %v297_v38 = vmax.f32 %v281_v26, 0.0  ;;  %v298_v39 = vmax.f32 %v282_v27, 0.0  ;;  %v299_v40 = vmax.f32 %v283_v28, 0.0  ;;  %v300_v41 = vmax.f32 %v284_v29, 0.0 }
  0x1c   : > { %309 = vst [vmem:[%s648_s7] sm:$0xff] %v293_v32  ;;  %310 = vst [vmem:[%s648_s7 + $0x8] sm:$0xff] %v294_v33  ;;  %v459_v42 = vunpack.c.l.bf16 %v476_v30  ;;  %v460_v43 = vunpack.c.h.bf16 %v476_v30  ;;  %v463_v44 = vunpack.c.l.bf16 %v477_v31  ;;  %v464_v45 = vunpack.c.h.bf16 %v477_v31 }
  0x1d   : > { %311 = vst [vmem:[%s648_s7 + $0x10] sm:$0xff] %v295_v34  ;;  %312 = vst [vmem:[%s648_s7 + $0x18] sm:$0xff] %v296_v35  ;;  %v467_v46 = vunpack.c.l.bf16 %v478_v36  ;;  %v468_v47 = vunpack.c.h.bf16 %v478_v36  ;;  %v471_v48 = vunpack.c.l.bf16 %v479_v37  ;;  %v472_v49 = vunpack.c.h.bf16 %v479_v37 }
  0x1e   : > { %313 = vst [vmem:[%s648_s7 + $0x20] sm:$0xff] %v297_v38  ;;  %314 = vst [vmem:[%s648_s7 + $0x28] sm:$0xff] %v298_v39  ;;  %v262_v50 = vmul.f32 %v459_v42, %v621_v0  ;;  %v263_v51 = vmul.f32 %v460_v43, %v621_v0  ;;  %v264_v52 = vmul.f32 %v463_v44, %v621_v0 }
  0x1f   : > { %315 = vst [vmem:[%s648_s7 + $0x30] sm:$0xff] %v299_v40  ;;  %316 = vst [vmem:[%s648_s7 + $0x38] sm:$0xff] %v300_v41  ;;  %v265_v53 = vmul.f32 %v464_v45, %v621_v0  ;;  %v266_v54 = vmul.f32 %v467_v46, %v621_v0  ;;  %v267_v55 = vmul.f32 %v468_v47, %v621_v0 }
  0x20   : > { %v268_v56 = vmul.f32 %v471_v48, %v621_v0  ;;  %v269_v57 = vmul.f32 %v472_v49, %v621_v0  ;;  %v285_v58 = vadd.f32 %v630_v9, %v262_v50  ;;  %v286_v59 = vadd.f32 %v630_v9, %v263_v51 }
  0x21   : > { %v287_v60 = vadd.f32 %v630_v9, %v264_v52  ;;  %v288_v61 = vadd.f32 %v630_v9, %v265_v53  ;;  %v289_v62 = vadd.f32 %v630_v9, %v266_v54  ;;  %v290_v63 = vadd.f32 %v630_v9, %v267_v55 }
  0x22   : > { %v291_v0 = vadd.f32 %v630_v9, %v268_v56  ;;  %v292_v1 = vadd.f32 %v630_v9, %v269_v57  ;;  %v301_v2 = vmax.f32 %v285_v58, 0.0  ;;  %v302_v3 = vmax.f32 %v286_v59, 0.0 }
  0x23   : > { %v303_v4 = vmax.f32 %v287_v60, 0.0  ;;  %v304_v5 = vmax.f32 %v288_v61, 0.0  ;;  %v305_v6 = vmax.f32 %v289_v62, 0.0  ;;  %v306_v7 = vmax.f32 %v290_v63, 0.0 }
  0x24   : > { %v307_v8 = vmax.f32 %v291_v0, 0.0  ;;  %v308_v10 = vmax.f32 %v292_v1, 0.0  ;;  %317 = vst [vmem:[%s648_s7 + $0x40] sm:$0xff] %v301_v2  ;;  %318 = vst [vmem:[%s648_s7 + $0x48] sm:$0xff] %v302_v3 }
  0x25   : > { %319 = vst [vmem:[%s648_s7 + $0x50] sm:$0xff] %v303_v4  ;;  %320 = vst [vmem:[%s648_s7 + $0x58] sm:$0xff] %v304_v5 }
  0x26   : > { %321 = vst [vmem:[%s648_s7 + $0x60] sm:$0xff] %v305_v6  ;;  %322 = vst [vmem:[%s648_s7 + $0x68] sm:$0xff] %v306_v7 }
  0x27   : > { %323 = vst [vmem:[%s648_s7 + $0x70] sm:$0xff] %v307_v8  ;;  %324 = vst [vmem:[%s648_s7 + $0x78] sm:$0xff] %v308_v10 }
  0x28 PF: > { %s13_s16 = sadd.s32 1, %s558_s16   ;;  %s709_s12 = smov %s550_s14 }
  0x29   : > { %p10_p7 = scmp.ge.s32.totalorder %s13_s16, 6   ;;  %s710_s13 = smov %s554_s15 }
  0x2a   : > { %s711_s14 = smov %s714_s17  ;;  %s712_s15 = smov %s718_s18 }
  0x2b   :  { %12 = sbr.rel (!%p10_p7) target bundleno = 3 (0x3), region = 62 }

// kernel: double_conv_forward.4
= control target key start
LH: loop header
LB: loop body
LE: loop exit
PB: predicated region body
PF: predicated region fallthrough
CT: control target
= control target key end

     0   :  { %s4043_s27 = smov 0   ;;  %s4045_s28 = smov 0   ;;  %s5042_s0 = inlined_call_operand.vmem [shape: bf16[2,16,16,128], index: 0, kind: input, shape index: {}, may-alias: {0,1,2}]   ;;  %s5043_s1 = inlined_call_operand.vmem [shape: bf16[2,16,16,128], index: 1, kind: input, shape index: {}, may-alias: {0,1,2}]   ;;  %s5044_s2 = inlined_call_operand.vmem [shape: bf16[2,16,16,128], index: 2, kind: input, shape index: {}, may-alias: {0,1,2}]   ;;  %s5045_s3 = inlined_call_operand.vmem [shape: bf16[9,128,128], index: 3, kind: input, shape index: {}]   ;;  %s5046_s4 = inlined_call_operand.vmem [shape: f32[1,128], index: 4, kind: input, shape index: {}]   ;;  %s5047_s5 = inlined_call_operand.vmem [shape: f32[1,128], index: 5, kind: input, shape index: {}]   ;;  %s5048_s6 = inlined_call_operand.vmem [shape: f32[1,128], index: 6, kind: input, shape index: {}]   ;;  %s5049_s7 = inlined_call_operand.vmem [shape: bf16[2,16,16,128], index: 7, kind: output, shape index: {0}]   ;;  %s5050_s8 = inlined_call_operand.vmem [shape: f32[2,2,2,128], index: 8, kind: output, shape index: {1}]  }
   0x1   :  { %s4047_s29 = smov 0   ;;  %s4049_s30 = smov 0  }
   0x2   :  { %s4051_s9 = smov 0  }
   0x3 LB: > { %s28_s10 = sadd.s32 1, %s3987_s29  ;;  %s31_s11 = sadd.s32 1, %s3991_s30  ;;  %s3995_s9 = sphi %s4051_s9, %s19_s9   ;;  %s3991_s30 = sphi %s4049_s30, %s5083_s30   ;;  %s3987_s29 = sphi %s4047_s29, %s5082_s29   ;;  %s3983_s28 = sphi %s4045_s28, %s5081_s28   ;;  %s3979_s27 = sphi %s4043_s27, %s5080_s27  }
   0x4   : > { %p29_p0 = scmp.ge.s32.totalorder %s28_s10, 2  ;;  %p2935_p1 = scmp.ge.s32.totalorder %s3995_s9, 1 }
   0x5   : > { %p353_p2 = scmp.lt.s32.totalorder %s3995_s9, 5 }
   0x6   : > { %s5085_s10 = smov (%p29_p0, %s28_s10), 0  ;;  %s5087_s11 = smov (!%p29_p0, %s31_s11), %s3991_s30 }
   0x7   : > { %p354_p3 = pnand %p2935_p1, %p353_p2  ;;  %p33_p4 = scmp.ge.s32.totalorder %s5087_s11, 2 }
   0x9   : > { %s5089_s11 = smov (%p33_p4, %s5087_s11), 0  ;;  %357 = sbr.rel (%p354_p3) target bundleno = 445 (0x1bd), region = 48 }
   0xe   : > { %v3883_v0 = vld [vmem:[%s5045_s3 + $0x78] sm:$0xff]   ;;  %s4079_s14 = sshll.u32 %s3979_s27, 3  ;;  %p432_p5 = scmp.lt.s32.totalorder %s3983_s28, 1  ;;  %v3885_v2 = vld [vmem:[%s5045_s3 + $0x70] sm:$0xff]   ;;  %v3887_v4 = vld [vmem:[%s5045_s3 + $0x68] sm:$0xff]   ;;  %vm712_vm2 = vcmask 1040384  }
   0xf   : > { %v3884_v1 = vld [vmem:[%s5045_s3 + $0x38] sm:$0xff]   ;;  %3538 = vmatprep.subr.bf16.mxu0 %v3883_v0  ;;  %p434_p6 = scmp.lt.s32.totalorder %s4079_s14, 15  ;;  %v3886_v3 = vld [vmem:[%s5045_s3 + $0x30] sm:$0xff]   ;;  %v3888_v5 = vld [vmem:[%s5045_s3 + $0x28] sm:$0xff]   ;;  %s2941_s15 = sadd.s32 4294967295, %s4079_s14  ;;  %vm3997_vm13 = vmmov 1  }
  0x10   : > { %3570 = vmatprep.subr.bf16.mxu1 %v3884_v1  ;;  %3539 = vmatpush3.bf16.msra.mxu0 %v3883_v0  ;;  %s5091_s28 = smov (!%p432_p5, %s3983_s28), 1  ;;  %v3889_v6 = vld [vmem:[%s5045_s3 + $0x60] sm:$0xff]   ;;  %p444_p7 = scmp.gt.s32.totalorder %s2941_s15, 0  ;;  %v3891_v8 = vld [vmem:[%s5045_s3 + $0x58] sm:$0xff]   ;;  %v4127_v10 = vstv %s2941_s15  ;;  %v3893_v11 = vld [vmem:[%s5045_s3 + $0x50] sm:$0xff]  }
  0x11   : > { %3571 = vmatpush3.bf16.msra.mxu1 %v3884_v1  ;;  %3540 = vmatprep.subr.bf16.mxu0 %v3885_v2  ;;  %s435_s23 = scalar_select %p434_p6, %s4079_s14, 15  ;;  %v3890_v7 = vld [vmem:[%s5045_s3 + $0x20] sm:$0xff]   ;;  %v3892_v9 = vld [vmem:[%s5045_s3 + $0x18] sm:$0xff]   ;;  %v3894_v13 = vld [vmem:[%s5045_s3 + $0x10] sm:$0xff]   ;;  %v613_v16 = vadd.s32 1, %v4127_v10  ;;  %vm622_vm0 = vcmp.ge.s32.totalorder %v4127_v10, 0 }
  0x12   : > { %3572 = vmatprep.subr.bf16.mxu1 %v3886_v3  ;;  %s4101_s26 = sshll.u32 %s5091_s28, 5  ;;  %p2942_p8 = scmp.lt.s32.totalorder %s2941_s15, 15  ;;  %v4136_v12 = vld [vmem:[%s5047_s5] ss:$0 sm:$0xff]  ;;  %vm632_vm1 = vcmp.lt.s32.totalorder %v4127_v10, 16  ;;  %v3895_v19 = vld [vmem:[%s5045_s3 + $0x48] sm:$0xff]   ;;  %vm4221_vm12 = vmneg %vm712_vm2 }
  0x13   : > { %s2937_s12 = sshll.u32 %s435_s23, 1  ;;  %v4144_v14 = vld [vmem:[%s5048_s6] ss:$0 sm:$0xff]  ;;  %vm623_vm3 = vcmp.ge.s32.totalorder %v613_v16, 0  ;;  %vm633_vm4 = vcmp.lt.s32.totalorder %v613_v16, 16  ;;  %v4157_v21 = vadd.s32 2, %v4127_v10  ;;  %vm4199_vm8 = vmand %vm622_vm0, %vm632_vm1 }
  0x14   : > { %3541 = vmatpush3.bf16.msra.mxu0 %v3885_v2  ;;  %s4104_s13 = sadd.s32 %s4101_s26, %s2937_s12  ;;  %v3896_v22 = vld [vmem:[%s5045_s3 + $0x8] sm:$0xff]   ;;  %v4165_v27 = vadd.s32 3, %v4127_v10  ;;  %v3897_v28 = vld [vmem:[%s5045_s3 + $0x40] sm:$0xff]   ;;  %vm4176_vm5 = vmand %vm623_vm3, %vm633_vm4  ;;  %v4185_v36 = vadd.s32 4, %v4127_v10  ;;  %v4188_v37 = vadd.s32 5, %v4127_v10  ;;  %s460_s24 = sadd.s32 8, %s4079_s14 }
  0x15   : > { %3573 = vmatpush3.bf16.msra.mxu1 %v3886_v3  ;;  %3542 = vmatprep.subr.bf16.mxu0 %v3887_v4  ;;  %s5051_s20 = sshll.u32 %s4104_s13, 2  ;;  %vm624_vm6 = vcmp.ge.s32.totalorder %v4157_v21, 0  ;;  %vm634_vm7 = vcmp.lt.s32.totalorder %v4157_v21, 16  ;;  %v3898_v42 = vld [vmem:[%s5045_s3] sm:$0xff]   ;;  %v4212_v54 = vld [vmem:[%s5045_s3 + $0xb8] sm:$0xff]   ;;  %vm4243_vm14 = vmpackc.low %vm3997_vm13, %vm4221_vm12  ;;  %p4316_p9 = scmp.lt.s32.totalorder %s460_s24, 15 }
  0x16   : > { %3574 = vmatprep.subr.bf16.mxu1 %v3888_v5  ;;  %s445_s21 = scalar_select %p444_p7, %s2941_s15, 0  ;;  %vm625_vm9 = vcmp.ge.s32.totalorder %v4165_v27, 0  ;;  %vm635_vm10 = vcmp.lt.s32.totalorder %v4165_v27, 16  ;;  %vm829_vm11 = vsmask.f32 7424  ;;  %v3900_v2 = vld [vmem:[%s5045_s3 + $0xf8] sm:$0xff]   ;;  %vm4259_vm15 = vmand %vm624_vm6, %vm634_vm7 }
  0x17   : > { %s4125_s17 = scalar_lea.vmem %s5042_s0, %s5051_s20  ;;  %vm4287_vm0 = vmand %vm625_vm9, %vm635_vm10  ;;  %vm626_vm1 = vcmp.ge.s32.totalorder %v4185_v36, 0  ;;  %s5095_s24 = smov (!%p4316_p9, %s460_s24), 15  ;;  %vm636_vm3 = vcmp.lt.s32.totalorder %v4185_v36, 16  ;;  %vm637_vm6 = vcmp.lt.s32.totalorder %v4188_v37, 16 }
  0x18   : > { %3543 = vmatpush3.bf16.msra.mxu0 %v3887_v4  ;;  %s5093_s21 = smov (!%p2942_p8, %s445_s21), 15  ;;  %v3305_v15 = vld [vmem:[%s4125_s17] sm:$0xff]   ;;  %v3380_v34 = vld [vmem:[%s4125_s17 + $0x8] sm:$0xff]   ;;  %v3381_v35 = vld [vmem:[%s4125_s17 + $0x10] sm:$0xff]   ;;  %s5097_s24 = smov (!%p4316_p9, %s5095_s24), 15 }
  0x19   : > { %3575 = vmatpush3.bf16.msra.mxu1 %v3888_v5  ;;  %3544 = vmatprep.subr.bf16.mxu0 %v3889_v6  ;;  %s2947_s18 = sshll.u32 %s5093_s21, 1  ;;  %v3306_v17 = vunpack.c.l.bf16 %v3305_v15  ;;  %v3307_v18 = vunpack.c.h.bf16 %v3305_v15  ;;  %v3310_v44 = vunpack.c.l.bf16 %v3380_v34  ;;  %v3311_v45 = vunpack.c.h.bf16 %v3380_v34  ;;  %vm646_vm4 = vmand %vm626_vm1, %vm636_vm3  ;;  %s5074_s16 = sshll.u32 %s4104_s13, 2 }
  0x1a   : > { %3576 = vmatprep.subr.bf16.mxu1 %v3890_v7  ;;  %s452_s23 = sadd.s32 %s2947_s18, %s4101_s26  ;;  %v3314_v46 = vunpack.c.l.bf16 %v3381_v35  ;;  %v3315_v47 = vunpack.c.h.bf16 %v3381_v35  ;;  %s4950_s18 = scalar_lea.vmem %s5049_s7, %s5074_s16 }
  0x1b   : > { %s2949_s15 = sshll.u32 %s452_s23, 2  ;;  %v546_v25 = vmul.f32 %v3306_v17, %v4136_v12  ;;  %v547_v26 = vmul.f32 %v3307_v18, %v4136_v12  ;;  %v548_v55 = vmul.f32 %v3310_v44, %v4136_v12  ;;  %v549_v56 = vmul.f32 %v3311_v45, %v4136_v12  ;;  %p489_p10 = scmp.lt.s32.totalorder %s3979_s27, 1 }
  0x1c   : > { %3545 = vmatpush3.bf16.msra.mxu0 %v3889_v6  ;;  %s454_s22 = scalar_lea.vmem %s5043_s1, %s2949_s15  ;;  %v550_v60 = vmul.f32 %v3314_v46, %v4136_v12  ;;  %v551_v61 = vmul.f32 %v3315_v47, %v4136_v12  ;;  %s2961_s13 = sshll.u32 %s5091_s28, 1 }
  0x1d   : > { %3577 = vmatpush3.bf16.msra.mxu1 %v3890_v7  ;;  %3546 = vmatprep.subr.bf16.mxu0 %v3891_v8  ;;  %v3301_v20 = vld [vmem:[%s454_s22] sm:$0xff]   ;;  %v572_v31 = vadd.f32 %v4144_v14, %v546_v25  ;;  %v573_v32 = vadd.f32 %v4144_v14, %v547_v26  ;;  %v574_v6 = vadd.f32 %v4144_v14, %v548_v55  ;;  %s4399_s22 = sshll.u32 %s5097_s24, 1  ;;  %s5099_s27 = smov (!%p489_p10, %s3979_s27), 1 }
  0x1e   : > { %3578 = vmatprep.subr.bf16.mxu1 %v3892_v9  ;;  %v3302_v23 = vunpack.c.l.bf16 %v3301_v20  ;;  %v3303_v24 = vunpack.c.h.bf16 %v3301_v20  ;;  %s469_s25 = sadd.s32 %s4399_s22, %s4101_s26 }
  0x1f   : > { %v592_v40 = vmax.f32 %v572_v31, 0.0  ;;  %v593_v41 = vmax.f32 %v573_v32, 0.0  ;;  %v594_v25 = vmax.f32 %v574_v6, 0.0  ;;  %s2956_s19 = sshll.u32 %s469_s25, 2 }
  0x20   : > { %3547 = vmatpush3.bf16.msra.mxu0 %v3891_v8  ;;  %v544_v29 = vmul.f32 %v3302_v23, %v4136_v12  ;;  %v545_v30 = vmul.f32 %v3303_v24, %v4136_v12  ;;  %v3902_v23 = vld [vmem:[%s5045_s3 + $0xf0] sm:$0xff]   ;;  %v575_v24 = vadd.f32 %v4144_v14, %v549_v56  ;;  %s471_s25 = scalar_lea.vmem %s5044_s2, %s2956_s19  ;;  %s492_s19 = sadd.s32 %s2961_s13, %s5099_s27 }
  0x21   : > { %3579 = vmatpush3.bf16.msra.mxu1 %v3892_v9  ;;  %3548 = vmatprep.subr.bf16.mxu0 %v3893_v11  ;;  %v674_v50 = vsel %vm4176_vm5, %v592_v40, 0.0  ;;  %v675_v51 = vsel %vm4176_vm5, %v593_v41, 0.0  ;;  %v676_v34 = vsel %vm4259_vm15, %v594_v25, 0.0  ;;  %v577_v40 = vadd.f32 %v4144_v14, %v551_v61  ;;  %s2962_s23 = sshll.u32 %s492_s19, 1 }
  0x22   : > { %3580 = vmatprep.subr.bf16.mxu1 %v3894_v13  ;;  %v570_v38 = vadd.f32 %v4144_v14, %v544_v29  ;;  %v571_v39 = vadd.f32 %v4144_v14, %v545_v30  ;;  %v716_v52 = vrot.slane %v674_v50, 7  ;;  %v717_v53 = vrot.slane %v675_v51, 7  ;;  %v3382_v30 = vld [vmem:[%s4125_s17 + $0x18] sm:$0xff]   ;;  %v3901_v51 = vld [vmem:[%s5045_s3 + $0xb0] sm:$0xff]   ;;  %s494_s22 = scalar_lea.vmem %s5050_s8, %s2962_s23 }
  0x23   : > { %v576_v29 = vadd.f32 %v4144_v14, %v550_v60  ;;  %v595_v33 = vmax.f32 %v575_v24, 0.0  ;;  %v3318_v46 = vunpack.c.l.bf16 %v3382_v30  ;;  %v3906_v60 = vld [vmem:[%s5045_s3 + $0xe0] sm:$0xff]   ;;  %vm627_vm5 = vcmp.ge.s32.totalorder %v4188_v37, 0 }
  0x24   : > { %3549 = vmatpush3.bf16.msra.mxu0 %v3893_v11  ;;  %v590_v48 = vmax.f32 %v570_v38, 0.0  ;;  %v591_v49 = vmax.f32 %v571_v39, 0.0  ;;  %v718_v0 = vsel %vm712_vm2, %v716_v52, %v717_v53  ;;  %v774_v1 = vsel %vm712_vm2, 0.0, %v716_v52  ;;  %vm4392_vm7 = vmand %vm627_vm5, %vm637_vm6 }
  0x25   : > { %3581 = vmatpush3.bf16.msra.mxu1 %v3894_v13  ;;  %3550 = vmatprep.subr.bf16.mxu0 %v3895_v19  ;;  %v784_v3 = vsel %vm712_vm2, %v717_v53, 0.0  ;;  %v4233_v4 = vpack.c.bf16 %v718_v0, %v774_v1  ;;  %v4235_v5 = vpack.c.bf16 %v718_v0, %v716_v52  ;;  %v719_v39 = vrot.slane %v676_v34, 7  ;;  %v3383_v1 = vld [vmem:[%s4125_s17 + $0x20] sm:$0xff]  }
  0x26   : > { %3582 = vmatprep.subr.bf16.mxu1 %v3896_v22  ;;  %v672_v57 = vsel %vm4199_vm8, %v590_v48, 0.0  ;;  %v673_v58 = vsel %vm4199_vm8, %v591_v49, 0.0  ;;  %v4247_v13 = vpack.c.bf16 %v784_v3, %v784_v3  ;;  %v677_v44 = vsel %vm4259_vm15, %v595_v33, 0.0  ;;  %v3903_v3 = vld [vmem:[%s5045_s3 + $0xa8] sm:$0xff]  }
  0x27   : > { %v713_v62 = vrot.slane %v672_v57, 7  ;;  %v714_v63 = vrot.slane %v673_v58, 7  ;;  %v843_v18 = vshrl.u32 %v4233_v4, 16  ;;  %v845_v20 = vshll.u32 %v4233_v4, 16 }
  0x28   : > { %3551 = vmatpush3.bf16.msra.mxu0 %v3895_v19  ;;  %v596_v45 = vmax.f32 %v576_v29, 0.0  ;;  %v720_v48 = vrot.slane %v677_v44, 7  ;;  %v775_v27 = vsel %vm712_vm2, 0.0, %v719_v39  ;;  %v597_v49 = vmax.f32 %v577_v40, 0.0 }
  0x29   : > { %3583 = vmatpush3.bf16.msra.mxu1 %v3896_v22  ;;  %3552 = vmatprep.subr.bf16.mxu0 %v3897_v28  ;;  %v715_v7 = vsel %vm712_vm2, %v713_v62, %v714_v63  ;;  %v773_v8 = vsel %vm712_vm2, 0.0, %v713_v62  ;;  %v783_v9 = vsel %vm712_vm2, %v714_v63, 0.0  ;;  %v850_v22 = vshll.u32 %v4247_v13, 16 }
  0x2a   : > { %3584 = vmatprep.subr.bf16.mxu1 %v3898_v42  ;;  %v4249_v15 = vpack.c.bf16 %v715_v7, %v773_v8  ;;  %v4251_v16 = vpack.c.bf16 %v783_v9, %v783_v9  ;;  %v3001_v17 = vpack.c.bf16 %v715_v7, %v713_v62  ;;  %v847_v31 = vrot.slane %v845_v20, 1 }
  0x2b   : > { %v852_v32 = vrot.slane %v850_v22, 1  ;;  %v678_v52 = vsel %vm4287_vm0, %v596_v45, 0.0  ;;  %v3319_v53 = vunpack.c.h.bf16 %v3382_v30  ;;  %v552_v55 = vmul.f32 %v3318_v46, %v4136_v12  ;;  %v3910_v46 = vld [vmem:[%s5045_s3 + $0xd0] sm:$0xff]  }
  0x2c   : > { %3553 = vmatpush3.bf16.msra.mxu0 %v3897_v28  ;;  %v831_v26 = vshrl.u32 %v4249_v15, 16  ;;  %v833_v21 = vshll.u32 %v4249_v15, 16  ;;  %v838_v28 = vshll.u32 %v4251_v16, 16  ;;  %3586 = vmatprep.mubr.msk.bf16.mxu1 %vm4243_vm14, %v3001_v17  ;;  %v848_v43 = vor.u32 %v847_v31, %v843_v18 }
  0x2d   : > { %3585 = vmatpush3.bf16.msra.mxu1 %v3898_v42  ;;  %3602 = vmatprep.subr.bf16.mxu0 %v4212_v54  ;;  %v3904_v42 = vld [vmem:[%s5045_s3 + $0xe8] sm:$0xff]   ;;  %v721_v57 = vsel %vm712_vm2, %v719_v39, %v720_v48  ;;  %v785_v58 = vsel %vm712_vm2, %v720_v48, 0.0  ;;  %v679_v59 = vsel %vm4287_vm0, %v597_v49, 0.0  ;;  %v722_v0 = vrot.slane %v678_v52, 7 }
  0x2e   : > { %3634 = vmatprep.subr.bf16.mxu1 %v3900_v2  ;;  %v835_v35 = vrot.slane %v833_v21, 1  ;;  %v840_v38 = vrot.slane %v838_v28, 1  ;;  %v4298_v50 = vsel %vm829_vm11, %v848_v43, %v852_v32  ;;  %v4320_v61 = vpack.c.bf16 %v721_v57, %v775_v27 }
  0x2f   : > { %v4322_v62 = vpack.c.bf16 %v785_v58, %v785_v58  ;;  %v4324_v63 = vpack.c.bf16 %v721_v57, %v719_v39  ;;  %v553_v6 = vmul.f32 %v3319_v53, %v4136_v12  ;;  %v578_v7 = vadd.f32 %v4144_v14, %v552_v55 }
  0x30   : > { %3587 = vmatmul.mubr.msk.bf16.vlgmr.msra.gmra.mxu1 %vm4243_vm14, %v4235_v5  ;;  %v836_v47 = vor.u32 %v835_v35, %v831_v26  ;;  %v855_v8 = vshrl.u32 %v4320_v61, 16  ;;  %v857_v9 = vshll.u32 %v4320_v61, 16  ;;  %v776_v18 = vsel %vm712_vm2, 0.0, %v722_v0  ;;  %v3905_v35 = vld [vmem:[%s5045_s3 + $0xa0] sm:$0xff]  }
  0x31   : > { %3635 = vmatpush3.bf16.msra.mxu1 %v3900_v2  ;;  %v723_v2 = vrot.slane %v679_v59, 7  ;;  %v862_v17 = vshll.u32 %v4322_v62, 16  ;;  %3590 = vmatprep.mubr.msk.bf16.mxu1 %vm4243_vm14, %v4324_v63  ;;  %v598_v22 = vmax.f32 %v578_v7, 0.0  ;;  %v3322_v30 = vunpack.c.l.bf16 %v3383_v1  ;;  %v3907_v59 = vld [vmem:[%s5045_s3 + $0x98] sm:$0xff]  }
  0x32   : > { %3636 = vmatprep.subr.bf16.mxu1 %v3902_v23  ;;  %v841_v56 = vsel %vm829_vm11, %v836_v47, %v840_v38  ;;  %v859_v24 = vrot.slane %v857_v9, 1  ;;  %v3323_v40 = vunpack.c.h.bf16 %v3383_v1  ;;  %vm1257_vm0 = vcmask 1046528  }
  0x33   : > { %3554 = vmatprep.mubr.bf16.mxu0 %v841_v56  ;;  %v724_v19 = vsel %vm712_vm2, %v722_v0, %v723_v2  ;;  %v786_v20 = vsel %vm712_vm2, %v723_v2, 0.0  ;;  %v864_v25 = vrot.slane %v862_v17, 1  ;;  %v680_v38 = vsel %vm646_vm4, %v598_v22, 0.0  ;;  %v3912_v2 = vld [vmem:[%s5045_s3 + $0xc8] sm:$0xff]  }
  0x34   : > { %3555 = vmatmul.mubr.bf16.vlgmr.msra.gmra.mxu0 %v4298_v50  ;;  %v4354_v26 = vpack.c.bf16 %v724_v19, %v776_v18  ;;  %v4356_v21 = vpack.c.bf16 %v786_v20, %v786_v20  ;;  %v4358_v28 = vpack.c.bf16 %v724_v19, %v722_v0  ;;  %v860_v31 = vor.u32 %v859_v24, %v855_v8  ;;  %v3909_v20 = vld [vmem:[%s5045_s3 + $0x90] sm:$0xff]  }
  0x35   : > { %3637 = vmatpush3.bf16.msra.mxu1 %v3902_v23  ;;  %3603 = vmatpush3.bf16.msra.mxu0 %v4212_v54  ;;  %v579_v54 = vadd.f32 %v4144_v14, %v553_v6  ;;  %v3908_v23 = vld [vmem:[%s5045_s3 + $0xd8] sm:$0xff]   ;;  %v554_v41 = vmul.f32 %v3322_v30, %v4136_v12  ;;  %v725_v36 = vrot.slane %v680_v38, 7  ;;  %v555_v48 = vmul.f32 %v3323_v40, %v4136_v12 }
  0x36   : > { %3638 = vmatprep.subr.bf16.mxu1 %v3904_v42  ;;  %3604 = vmatprep.subr.bf16.mxu0 %v3901_v51  ;;  %v867_v32 = vshrl.u32 %v4354_v26, 16  ;;  %v869_v33 = vshll.u32 %v4354_v26, 16  ;;  %v874_v34 = vshll.u32 %v4356_v21, 16  ;;  %v4378_v43 = vsel %vm829_vm11, %v860_v31, %v864_v25 }
  0x37   : > { %v599_v29 = vmax.f32 %v579_v54, 0.0  ;;  %3558 = vmatprep.mubr.bf16.mxu0 %v4378_v43  ;;  %v580_v27 = vadd.f32 %v4144_v14, %v554_v41  ;;  %v581_v56 = vadd.f32 %v4144_v14, %v555_v48  ;;  %v3385_v54 = vld [vmem:[%s4125_s17 + $0x30] sm:$0xff]   ;;  %v618_v25 = vadd.s32 6, %v4127_v10 }
  0x38   : > { %3591 = vmatmul.mubr.msk.bf16.gmra.mxu1 %vm4243_vm14, %v4358_v28  ;;  %v871_v44 = vrot.slane %v869_v33, 1  ;;  %v876_v45 = vrot.slane %v874_v34, 1  ;;  %v3330_v41 = vunpack.c.l.bf16 %v3385_v54 }
  0x39   : > { %3639 = vmatpush3.bf16.msra.mxu1 %v3904_v42  ;;  %3605 = vmatpush3.bf16.msra.mxu0 %v3901_v51  ;;  %v681_v39 = vsel %vm646_vm4, %v599_v29, 0.0  ;;  %v3384_v42 = vld [vmem:[%s4125_s17 + $0x28] sm:$0xff]   ;;  %v777_v51 = vsel %vm712_vm2, 0.0, %v725_v36  ;;  %v600_v57 = vmax.f32 %v580_v27, 0.0  ;;  %vm628_vm8 = vcmp.ge.s32.totalorder %v618_v25, 0 }
  0x3a   : > { %3640 = vmatprep.subr.bf16.mxu1 %v3906_v60  ;;  %3606 = vmatprep.subr.bf16.mxu0 %v3903_v3  ;;  %v726_v47 = vrot.slane %v681_v39, 7  ;;  %v872_v49 = vor.u32 %v871_v44, %v867_v32  ;;  %v3326_v52 = vunpack.c.l.bf16 %v3384_v42  ;;  %v3327_v7 = vunpack.c.h.bf16 %v3384_v42  ;;  %v3914_v42 = vld [vmem:[%s5045_s3 + $0xc0] sm:$0xff]  }
  0x3b   : > { %v682_v6 = vsel %vm4392_vm7, %v600_v57, 0.0  ;;  %vm638_vm9 = vcmp.lt.s32.totalorder %v618_v25, 16 }
  0x3c   : > { %v727_v53 = vsel %vm712_vm2, %v725_v36, %v726_v47  ;;  %v787_v55 = vsel %vm712_vm2, %v726_v47, 0.0  ;;  %v4402_v37 = vsel %vm829_vm11, %v872_v49, %v876_v45  ;;  %v556_v8 = vmul.f32 %v3326_v52, %v4136_v12  ;;  %vm4438_vm10 = vmand %vm628_vm8, %vm638_vm9  ;;  %v3911_v47 = vld [vmem:[%s5045_s3 + $0x88] sm:$0xff]   ;;  %v4463_v52 = vld [vmem:[%s5045_s3 + $0x178] sm:$0xff]  }
  0x3d   : > { %3641 = vmatpush3.bf16.msra.mxu1 %v3906_v60  ;;  %3607 = vmatpush3.bf16.msra.mxu0 %v3903_v3  ;;  %v4404_v60 = vpack.c.bf16 %v727_v53, %v777_v51  ;;  %v4406_v0 = vpack.c.bf16 %v787_v55, %v787_v55  ;;  %v4408_v1 = vpack.c.bf16 %v727_v53, %v725_v36  ;;  %v601_v3 = vmax.f32 %v581_v56, 0.0 }
  0x3e   : > { %3642 = vmatprep.subr.bf16.mxu1 %v3908_v23  ;;  %3608 = vmatprep.subr.bf16.mxu0 %v3905_v35  ;;  %v728_v19 = vrot.slane %v682_v6, 7  ;;  %v582_v24 = vadd.f32 %v4144_v14, %v556_v8  ;;  %v3331_v49 = vunpack.c.h.bf16 %v3385_v54  ;;  %v558_v51 = vmul.f32 %v3330_v41, %v4136_v12 }
  0x3f   : > { %3559 = vmatmul.mubr.bf16.gmra.mxu0 %v4402_v37  ;;  %v879_v9 = vshrl.u32 %v4404_v60, 16  ;;  %v881_v17 = vshll.u32 %v4404_v60, 16  ;;  %v886_v18 = vshll.u32 %v4406_v0, 16  ;;  %3594 = vmatprep.mubr.msk.bf16.mxu1 %vm4243_vm14, %v4408_v1  ;;  %v683_v22 = vsel %vm4392_vm7, %v601_v3, 0.0 }
  0x40   : > { %v729_v31 = vrot.slane %v683_v22, 7  ;;  %v778_v32 = vsel %vm712_vm2, 0.0, %v728_v19  ;;  %v602_v34 = vmax.f32 %v582_v24, 0.0  ;;  %v584_v3 = vadd.f32 %v4144_v14, %v558_v51 }
  0x41   : > { %3643 = vmatpush3.bf16.msra.mxu1 %v3908_v23  ;;  %3609 = vmatpush3.bf16.msra.mxu0 %v3905_v35  ;;  %v557_v23 = vmul.f32 %v3327_v7, %v4136_v12  ;;  %v883_v29 = vrot.slane %v881_v17, 1  ;;  %v888_v30 = vrot.slane %v886_v18, 1  ;;  %v619_v8 = vadd.s32 7, %v4127_v10 }
  0x42   : > { %3644 = vmatprep.subr.bf16.mxu1 %v3910_v46  ;;  %3610 = vmatprep.subr.bf16.mxu0 %v3907_v59  ;;  %v730_v38 = vsel %vm712_vm2, %v728_v19, %v729_v31  ;;  %v788_v39 = vsel %vm712_vm2, %v729_v31, 0.0  ;;  %v684_v27 = vsel %vm4438_vm10, %v602_v34, 0.0  ;;  %v604_v25 = vmax.f32 %v584_v3, 0.0  ;;  %v4503_v34 = vld [vmem:[%s5045_s3 + $0x138] sm:$0xff]  }
  0x43   : > { %v583_v33 = vadd.f32 %v4144_v14, %v557_v23  ;;  %v884_v35 = vor.u32 %v883_v29, %v879_v9  ;;  %v4445_v44 = vpack.c.bf16 %v730_v38, %v778_v32  ;;  %v4447_v45 = vpack.c.bf16 %v788_v39, %v788_v39  ;;  %v3913_v9 = vld [vmem:[%s5045_s3 + $0x80] sm:$0xff]  }
  0x44   : > { %v4449_v36 = vpack.c.bf16 %v730_v38, %v728_v19  ;;  %v731_v58 = vrot.slane %v684_v27, 7  ;;  %vm629_vm12 = vcmp.ge.s32.totalorder %v619_v8, 0  ;;  %vm639_vm13 = vcmp.lt.s32.totalorder %v619_v8, 16 }
  0x45   : > { %3645 = vmatpush3.bf16.msra.mxu1 %v3910_v46  ;;  %3611 = vmatpush3.bf16.msra.mxu0 %v3907_v59  ;;  %v603_v46 = vmax.f32 %v583_v33, 0.0  ;;  %v4455_v48 = vsel %vm829_vm11, %v884_v35, %v888_v30  ;;  %v891_v53 = vshrl.u32 %v4445_v44, 16  ;;  %v893_v55 = vshll.u32 %v4445_v44, 16  ;;  %vm649_vm15 = vmand %vm629_vm12, %vm639_vm13 }
  0x46   : > { %3646 = vmatprep.subr.bf16.mxu1 %v3912_v2  ;;  %3612 = vmatprep.subr.bf16.mxu0 %v3909_v20  ;;  %v898_v56 = vshll.u32 %v4447_v45, 16  ;;  %v779_v18 = vsel %vm712_vm2, 0.0, %v731_v58  ;;  %v686_v35 = vsel %vm649_vm15, %v604_v25, 0.0  ;;  %v1258_v3 = vrot.slane %v4249_v15, 1  ;;  %v3918_v15 = vld [vmem:[%s5045_s3 + $0x170] sm:$0xff]  }
  0x47   : > { %3562 = vmatprep.mubr.bf16.mxu0 %v4455_v48  ;;  %3595 = vmatmul.mubr.msk.bf16.gmra.mxu1 %vm4243_vm14, %v4449_v36  ;;  %v685_v57 = vsel %vm4438_vm10, %v603_v46, 0.0  ;;  %v895_v6 = vrot.slane %v893_v55, 1  ;;  %v734_v41 = vrot.slane %v686_v35, 7  ;;  %v1262_v25 = vrot.slane %v4247_v13, 1 }
  0x48   : > { %v732_v59 = vrot.slane %v685_v57, 7  ;;  %v900_v7 = vrot.slane %v898_v56, 1  ;;  %v1268_v35 = vrot.slane %v4356_v21, 1  ;;  %v621_v21 = vadd.s32 9, %v4127_v10 }
  0x49   : > { %3647 = vmatpush3.bf16.msra.mxu1 %v3912_v2  ;;  %3613 = vmatpush3.bf16.msra.mxu0 %v3909_v20  ;;  %v559_v2 = vmul.f32 %v3331_v49, %v4136_v12  ;;  %v896_v54 = vor.u32 %v895_v6, %v891_v53  ;;  %v780_v27 = vsel %vm712_vm2, 0.0, %v734_v41  ;;  %v1259_v6 = vrot.slane %v4251_v16, 1 }
  0x4a   : > { %3648 = vmatprep.subr.bf16.mxu1 %v3914_v42  ;;  %3614 = vmatprep.subr.bf16.mxu0 %v3911_v47  ;;  %v733_v17 = vsel %vm712_vm2, %v731_v58, %v732_v59  ;;  %v789_v19 = vsel %vm712_vm2, %v732_v59, 0.0  ;;  %vm631_vm5 = vcmp.ge.s32.totalorder %v621_v21, 0  ;;  %vm641_vm6 = vcmp.lt.s32.totalorder %v621_v21, 16 }
  0x4b   : > { %v585_v20 = vadd.f32 %v4144_v14, %v559_v2  ;;  %v4484_v22 = vpack.c.bf16 %v733_v17, %v779_v18  ;;  %v4486_v23 = vpack.c.bf16 %v789_v19, %v789_v19  ;;  %v4488_v24 = vpack.c.bf16 %v733_v17, %v731_v58  ;;  %v3386_v2 = vld [vmem:[%s4125_s17 + $0x38] sm:$0xff]   ;;  %vm651_vm7 = vmand %vm631_vm5, %vm641_vm6 }
  0x4c   : > { %v4492_v30 = vsel %vm829_vm11, %v896_v54, %v900_v7  ;;  %v3334_v17 = vunpack.c.l.bf16 %v3386_v2  ;;  %v3335_v18 = vunpack.c.h.bf16 %v3386_v2  ;;  %v1260_v19 = vsel %vm1257_vm0, %v1258_v3, %v1259_v6  ;;  %v3926_v6 = vld [vmem:[%s5045_s3 + $0x150] sm:$0xff]  }
  0x4d   : > { %3649 = vmatpush3.bf16.msra.mxu1 %v3914_v42  ;;  %v605_v29 = vmax.f32 %v585_v20, 0.0  ;;  %3615 = vmatpush3.bf16.msra.mxu0 %v3911_v47  ;;  %v903_v31 = vshrl.u32 %v4484_v22, 16  ;;  %v905_v32 = vshll.u32 %v4484_v22, 16  ;;  %v910_v33 = vshll.u32 %v4486_v23, 16 }
  0x4e   : > { %3698 = vmatprep.subr.bf16.mxu1 %v4463_v52  ;;  %3598 = vmatprep.mubr.msk.bf16.mxu1 %vm4243_vm14, %v4488_v24  ;;  %v560_v16 = vmul.f32 %v3334_v17, %v4136_v12  ;;  %v1261_v54 = vrot.slane %v4233_v4, 1  ;;  %v3920_v4 = vld [vmem:[%s5045_s3 + $0x168] sm:$0xff]   ;;  %v1273_v17 = vrot.slane %v4445_v44, 1 }
  0x4f   : > { %3616 = vmatprep.subr.bf16.mxu0 %v3913_v9  ;;  %3563 = vmatmul.mubr.bf16.gmra.mxu0 %v4492_v30  ;;  %v687_v38 = vsel %vm649_vm15, %v605_v29, 0.0  ;;  %v907_v39 = vrot.slane %v905_v32, 1  ;;  %v912_v40 = vrot.slane %v910_v33, 1  ;;  %v1264_v29 = vrot.slane %v4320_v61, 1  ;;  %v3922_v33 = vld [vmem:[%s5045_s3 + $0x160] sm:$0xff]  }
  0x50   : > { %v735_v42 = vrot.slane %v687_v38, 7  ;;  %v586_v13 = vadd.f32 %v4144_v14, %v560_v16  ;;  %v4560_v61 = vsel %vm1257_vm0, %v1261_v54, %v1262_v25  ;;  %v1277_v16 = vrot.slane %v4486_v23, 1 }
  0x51   : > { %3617 = vmatpush3.bf16.msra.mxu0 %v3913_v9  ;;  %v908_v46 = vor.u32 %v907_v39, %v903_v31  ;;  %v1265_v31 = vrot.slane %v4322_v62, 1  ;;  %v3917_v62 = vld [vmem:[%s5045_s3 + $0x130] sm:$0xff]  }
  0x52   : > { %v736_v47 = vsel %vm712_vm2, %v734_v41, %v735_v42  ;;  %v790_v49 = vsel %vm712_vm2, %v735_v42, 0.0  ;;  %3666 = vmatprep.subr.bf16.mxu0 %v4503_v34  ;;  %v606_v38 = vmax.f32 %v586_v13, 0.0 }
  0x53   : > { %v4510_v51 = vpack.c.bf16 %v736_v47, %v780_v27  ;;  %v4512_v53 = vpack.c.bf16 %v790_v49, %v790_v49  ;;  %v4514_v55 = vpack.c.bf16 %v736_v47, %v734_v41  ;;  %v4517_v56 = vsel %vm829_vm11, %v908_v46, %v912_v40  ;;  %v3921_v49 = vld [vmem:[%s5045_s3 + $0x120] sm:$0xff]  }
  0x54   : > { %3566 = vmatprep.mubr.bf16.mxu0 %v4517_v56  ;;  %v1270_v40 = vrot.slane %v4404_v60, 1  ;;  %v1271_v41 = vrot.slane %v4406_v0, 1  ;;  %v3924_v60 = vld [vmem:[%s5045_s3 + $0x158] sm:$0xff]   ;;  %v3337_v0 = vld [vmem:[%s471_s25] sm:$0xff]  }
  0x55   : > { %v915_v57 = vshrl.u32 %v4510_v51, 16  ;;  %v917_v58 = vshll.u32 %v4510_v51, 16  ;;  %v922_v59 = vshll.u32 %v4512_v53, 16  ;;  %3599 = vmatmul.mubr.msk.bf16.gmra.mxu1 %vm4243_vm14, %v4514_v55  ;;  %v3338_v46 = vunpack.c.l.bf16 %v3337_v0 }
  0x56   : > { %3650 = vmatprep.mubr.msk.bf16.mxu1 %vm4243_vm14, %v4235_v5  ;;  %v561_v5 = vmul.f32 %v3335_v18, %v4136_v12  ;;  %v620_v12 = vadd.s32 8, %v4127_v10  ;;  %v3339_v47 = vunpack.c.h.bf16 %v3337_v0  ;;  %v4603_v10 = vsel %vm1257_vm0, %v1270_v40, %v1271_v41  ;;  %v3927_v41 = vld [vmem:[%s5045_s3 + $0x108] sm:$0xff]   ;;  %v3929_v0 = vld [vmem:[%s5045_s3 + $0x100] sm:$0xff]  }
  0x57   : > { %v919_v7 = vrot.slane %v917_v58, 1  ;;  %v924_v8 = vrot.slane %v922_v59, 1  ;;  %v1274_v18 = vrot.slane %v4447_v45, 1  ;;  %v3928_v45 = vld [vmem:[%s5045_s3 + $0x148] sm:$0xff]  }
  0x58   : > { %v587_v32 = vadd.f32 %v4144_v14, %v561_v5  ;;  %vm630_vm1 = vcmp.ge.s32.totalorder %v620_v12, 0  ;;  %vm640_vm3 = vcmp.lt.s32.totalorder %v620_v12, 16  ;;  %v1267_v14 = vrot.slane %v4354_v26, 1  ;;  %v3919_v26 = vld [vmem:[%s5045_s3 + $0x128] sm:$0xff]   ;;  %v3925_v12 = vld [vmem:[%s5045_s3 + $0x110] sm:$0xff]  }
  0x59   : > { %v920_v9 = vor.u32 %v919_v7, %v915_v57  ;;  %vm650_vm4 = vmand %vm630_vm1, %vm640_vm3  ;;  %v3955_v57 = vld [vmem:[%s5047_s5] ss:$0 sm:$0xff]  ;;  %v4646_v25 = vsel %vm1257_vm0, %v1273_v17, %v1274_v18  ;;  %v3944_v18 = vld [vmem:[%s5045_s3 + $0x1c8] sm:$0xff]  }
  0x5a   : > { %v607_v39 = vmax.f32 %v587_v32, 0.0  ;;  %v4600_v27 = vsel %vm1257_vm0, %v1267_v14, %v1268_v35  ;;  %v562_v58 = vmul.f32 %v3955_v57, %v3338_v46  ;;  %v563_v59 = vmul.f32 %v3955_v57, %v3339_v47  ;;  %v3956_v7 = vld [vmem:[%s5048_s6] ss:$0 sm:$0xff]  ;;  %v3936_v46 = vld [vmem:[%s5045_s3 + $0x1e8] sm:$0xff]  }
  0x5b   : > { %v4534_v20 = vsel %vm829_vm11, %v920_v9, %v924_v8  ;;  %v3930_v14 = vld [vmem:[%s5045_s3 + $0x140] sm:$0xff]   ;;  %v3935_v57 = vld [vmem:[%s5045_s3 + $0x1a8] sm:$0xff]  }
  0x5c   : > { %3567 = vmatmul.mubr.bf16.gmra.mxu0 %v4534_v20  ;;  %v4597_v42 = vsel %vm650_vm4, %v607_v39, 0.0  ;;  %v588_v8 = vadd.f32 %v3956_v7, %v562_v58  ;;  %v589_v9 = vadd.f32 %v3956_v7, %v563_v59  ;;  %v1280_v39 = vrot.slane %v4512_v53, 1  ;;  %v3932_v53 = vld [vmem:[%s5045_s3 + $0x1f8] sm:$0xff]   ;;  %v3938_v47 = vld [vmem:[%s5045_s3 + $0x1e0] sm:$0xff]  }
  0x5d   : > { %3618 = vmatprep.mubr.bf16.mxu0 %v1260_v19  ;;  %3651 = vmatmul.mubr.msk.bf16.vlgmr.msra.gmra.mxu1 %vm4243_vm14, %v4324_v63  ;;  %v738_v3 = vrot.slane %v4597_v42, 7  ;;  %v3923_v19 = vld [vmem:[%s5045_s3 + $0x118] sm:$0xff]  }
  0x5e   : > { %3699 = vmatpush3.bf16.msra.mxu1 %v4463_v52  ;;  %3654 = vmatprep.mubr.msk.bf16.mxu1 %vm4243_vm14, %v4358_v28  ;;  %v4569_v52 = vsel %vm1257_vm0, %v1264_v29, %v1265_v31  ;;  %v608_v5 = vmax.f32 %v588_v8, 0.0  ;;  %v609_v54 = vmax.f32 %v589_v9, 0.0  ;;  %v3940_v58 = vld [vmem:[%s5045_s3 + $0x1d8] sm:$0xff]   ;;  %v3942_v8 = vld [vmem:[%s5045_s3 + $0x1d0] sm:$0xff]  }
  0x5f   : > { %3700 = vmatprep.subr.bf16.mxu1 %v3918_v15  ;;  %v791_v59 = vsel %vm712_vm2, %v738_v3, 0.0 }
  0x60   : > { %v691_v23 = vsel %vm651_vm7, %v609_v54, 0.0  ;;  %v810_v7 = vpack.c.bf16 %v791_v59, %v791_v59 }
  0x61   : > { %v741_v31 = vrot.slane %v691_v23, 7  ;;  %v3943_v23 = vld [vmem:[%s5045_s3 + $0x188] sm:$0xff]  }
  0x62   : > { %3701 = vmatpush3.bf16.msra.mxu1 %v3918_v15  ;;  %v1276_v15 = vrot.slane %v4484_v22, 1  ;;  %v690_v22 = vsel %vm651_vm7, %v608_v5, 0.0  ;;  %v1840_v17 = vrot.slane %v810_v7, 1  ;;  %v3941_v5 = vld [vmem:[%s5045_s3 + $0x190] sm:$0xff]  }
  0x63   : > { %3702 = vmatprep.subr.bf16.mxu1 %v3920_v4  ;;  %v4648_v29 = vrot.slane %v690_v22, 7 }
  0x64   : > { %3619 = vmatmul.mubr.bf16.vlgmr.msra.gmra.mxu0 %v4560_v61 }
  0x65   : > { %3667 = vmatpush3.bf16.msra.mxu0 %v4503_v34  ;;  %3622 = vmatprep.mubr.bf16.mxu0 %v4569_v52  ;;  %v688_v34 = vsel %vm650_vm4, %v606_v38, 0.0  ;;  %v4662_v32 = vsel %vm712_vm2, %v4648_v29, %v741_v31  ;;  %v1279_v38 = vrot.slane %v4510_v51, 1 }
  0x66   : > { %3668 = vmatprep.subr.bf16.mxu0 %v3917_v62  ;;  %3655 = vmatmul.mubr.msk.bf16.gmra.mxu1 %vm4243_vm14, %v4408_v1  ;;  %v4611_v2 = vrot.slane %v688_v34, 7  ;;  %v3931_v34 = vld [vmem:[%s5045_s3 + $0x1b8] sm:$0xff]  }
  0x67   : > { %3703 = vmatpush3.bf16.msra.mxu1 %v3920_v4  ;;  %3658 = vmatprep.mubr.msk.bf16.mxu1 %vm4243_vm14, %v4449_v36  ;;  %v4654_v4 = vsel %vm1257_vm0, %v1276_v15, %v1277_v16  ;;  %v4692_v21 = vsel %vm1257_vm0, %v1279_v38, %v1280_v39  ;;  %v1654_v16 = vshll.u32 %v810_v7, 16 }
  0x68   : > { %3704 = vmatprep.subr.bf16.mxu1 %v3922_v33  ;;  %v4640_v44 = vsel %vm712_vm2, %v4611_v2, %v738_v3  ;;  %v3939_v3 = vld [vmem:[%s5045_s3 + $0x198] sm:$0xff]  }
  0x69   : > { %3669 = vmatpush3.bf16.msra.mxu0 %v3917_v62  ;;  %v4658_v13 = vpack.c.bf16 %v4640_v44, %v4611_v2  ;;  %v782_v62 = vsel %vm712_vm2, 0.0, %v4648_v29  ;;  %v1656_v22 = vrot.slane %v1654_v16, 1 }
  0x6a   : > { %3670 = vmatprep.subr.bf16.mxu0 %v3919_v26  ;;  %v4672_v35 = vpack.c.bf16 %v4662_v32, %v782_v62  ;;  %v3945_v62 = vld [vmem:[%s5045_s3 + $0x180] sm:$0xff]  }
  0x6b   : > { %3705 = vmatpush3.bf16.msra.mxu1 %v3922_v33  ;;  %v792_v33 = vsel %vm712_vm2, %v741_v31, 0.0  ;;  %v3947_v31 = vld [vmem:[%s5045_s3 + $0x238] sm:$0xff]  }
  0x6c   : > { %3623 = vmatmul.mubr.bf16.gmra.mxu0 %v4600_v27  ;;  %3706 = vmatprep.subr.bf16.mxu1 %v3924_v60  ;;  %v4677_v40 = vpack.c.bf16 %v792_v33, %v792_v33  ;;  %v3949_v33 = vld [vmem:[%s5045_s3 + $0x228] sm:$0xff]  }
  0x6d   : > { %3671 = vmatpush3.bf16.msra.mxu0 %v3919_v26  ;;  %3626 = vmatprep.mubr.bf16.mxu0 %v4603_v10  ;;  %v2392_v26 = vrot.slane %v4672_v35, 1 }
  0x6e   : > { %3672 = vmatprep.subr.bf16.mxu0 %v3921_v49  ;;  %3659 = vmatmul.mubr.msk.bf16.gmra.mxu1 %vm4243_vm14, %v4488_v24  ;;  %v2393_v51 = vrot.slane %v4677_v40, 1 }
  0x6f   : > { %3707 = vmatpush3.bf16.msra.mxu1 %v3924_v60  ;;  %3662 = vmatprep.mubr.msk.bf16.mxu1 %vm4243_vm14, %v4514_v55 }
  0x70   : > { %3708 = vmatprep.subr.bf16.mxu1 %v3926_v6  ;;  %v4695_v60 = vsel %vm1257_vm0, %v2392_v26, %v2393_v51 }
  0x71   : > { %3673 = vmatpush3.bf16.msra.mxu0 %v3921_v49  ;;  %v781_v49 = vsel %vm712_vm2, 0.0, %v4611_v2 }
  0x72   : > { %3674 = vmatprep.subr.bf16.mxu0 %v3923_v19  ;;  %v809_v2 = vpack.c.bf16 %v4640_v44, %v781_v49  ;;  %v3946_v44 = vld [vmem:[%s5045_s3 + $0x1c0] sm:$0xff]  }
  0x73   : > { %3709 = vmatpush3.bf16.msra.mxu1 %v3926_v6  ;;  %v3937_v6 = vld [vmem:[%s5045_s3 + $0x1a0] sm:$0xff]  }
  0x74   : > { %3627 = vmatmul.mubr.bf16.gmra.mxu0 %v4646_v25  ;;  %3710 = vmatprep.subr.bf16.mxu1 %v3928_v45  ;;  %v1649_v42 = vshll.u32 %v809_v2, 16  ;;  %v1839_v9 = vrot.slane %v809_v2, 1 }
  0x75   : > { %3675 = vmatpush3.bf16.msra.mxu0 %v3923_v19  ;;  %3630 = vmatprep.mubr.bf16.mxu0 %v4654_v4  ;;  %v1647_v19 = vshrl.u32 %v809_v2, 16 }
  0x76   : > { %3676 = vmatprep.subr.bf16.mxu0 %v3925_v12  ;;  %3663 = vmatmul.mubr.msk.bf16.gmra.mxu1 %vm4243_vm14, %v4658_v13  ;;  %v1651_v15 = vrot.slane %v1649_v42, 1  ;;  %v4755_v54 = vsel %vm1257_vm0, %v1839_v9, %v1840_v17 }
  0x77   : > { %3711 = vmatpush3.bf16.msra.mxu1 %v3928_v45  ;;  %3714 = vmatprep.mubr.bf16.mxu1 %v4560_v61  ;;  %v3934_v61 = vld [vmem:[%s5045_s3 + $0x1f0] sm:$0xff]  }
  0x78   : > { %3712 = vmatprep.subr.bf16.mxu1 %v3930_v14  ;;  %v1652_v45 = vor.u32 %v1651_v15, %v1647_v19 }
  0x79   : > { %3677 = vmatpush3.bf16.msra.mxu0 %v3925_v12 }
  0x7a   : > { %3678 = vmatprep.subr.bf16.mxu0 %v3927_v41  ;;  %v1657_v12 = vsel %vm829_vm11, %v1652_v45, %v1656_v22 }
  0x7b   : > { %3713 = vmatpush3.bf16.msra.mxu1 %v3930_v14 }
  0x7c   : > { %3631 = vmatmul.mubr.bf16.gmra.mxu0 %v4692_v21  ;;  %3762 = vmatprep.subr.bf16.mxu1 %v3932_v53 }
  0x7d   : > { %3679 = vmatpush3.bf16.msra.mxu0 %v3927_v41  ;;  %3682 = vmatprep.mubr.bf16.mxu0 %v4298_v50  ;;  %v3933_v50 = vld [vmem:[%s5045_s3 + $0x1b0] sm:$0xff]  }
  0x7e   : > { %3680 = vmatprep.subr.bf16.mxu0 %v3929_v0  ;;  %3715 = vmatmul.mubr.bf16.vlgmr.msra.gmra.mxu1 %v4569_v52 }
  0x7f   : > { %3763 = vmatpush3.bf16.msra.mxu1 %v3932_v53  ;;  %3718 = vmatprep.mubr.bf16.mxu1 %v4600_v27 }
  0x80   : > { %3764 = vmatprep.subr.bf16.mxu1 %v3934_v61 }
  0x81   : > { %3681 = vmatpush3.bf16.msra.mxu0 %v3929_v0 }
  0x82   : > { %3730 = vmatprep.subr.bf16.mxu0 %v3931_v34 }
  0x83   : > { %3765 = vmatpush3.bf16.msra.mxu1 %v3934_v61 }
  0x84   : > { %3683 = vmatmul.mubr.bf16.vlgmr.msra.gmra.mxu0 %v4378_v43  ;;  %3766 = vmatprep.subr.bf16.mxu1 %v3936_v46 }
  0x85   : > { %3731 = vmatpush3.bf16.msra.mxu0 %v3931_v34  ;;  %3686 = vmatprep.mubr.bf16.mxu0 %v4402_v37 }
  0x86   : > { %3732 = vmatprep.subr.bf16.mxu0 %v3933_v50  ;;  %3719 = vmatmul.mubr.bf16.gmra.mxu1 %v4603_v10 }
  0x87   : > { %3767 = vmatpush3.bf16.msra.mxu1 %v3936_v46  ;;  %3722 = vmatprep.mubr.bf16.mxu1 %v4646_v25 }
  0x88   : > { %3768 = vmatprep.subr.bf16.mxu1 %v3938_v47 }
  0x89   : > { %3733 = vmatpush3.bf16.msra.mxu0 %v3933_v50 }
  0x8a   : > { %3734 = vmatprep.subr.bf16.mxu0 %v3935_v57 }
  0x8b   : > { %3769 = vmatpush3.bf16.msra.mxu1 %v3938_v47 }
  0x8c   : > { %3687 = vmatmul.mubr.bf16.gmra.mxu0 %v4455_v48  ;;  %3770 = vmatprep.subr.bf16.mxu1 %v3940_v58 }
  0x8d   : > { %3735 = vmatpush3.bf16.msra.mxu0 %v3935_v57  ;;  %3690 = vmatprep.mubr.bf16.mxu0 %v4492_v30 }
  0x8e   : > { %3736 = vmatprep.subr.bf16.mxu0 %v3937_v6  ;;  %3723 = vmatmul.mubr.bf16.gmra.mxu1 %v4654_v4 }
  0x8f   : > { %3771 = vmatpush3.bf16.msra.mxu1 %v3940_v58  ;;  %3726 = vmatprep.mubr.bf16.mxu1 %v4692_v21 }
  0x90   : > { %3772 = vmatprep.subr.bf16.mxu1 %v3942_v8 }
  0x91   : > { %3737 = vmatpush3.bf16.msra.mxu0 %v3937_v6 }
  0x92   : > { %3738 = vmatprep.subr.bf16.mxu0 %v3939_v3 }
  0x93   : > { %3773 = vmatpush3.bf16.msra.mxu1 %v3942_v8 }
  0x94   : > { %3691 = vmatmul.mubr.bf16.gmra.mxu0 %v4517_v56  ;;  %3774 = vmatprep.subr.bf16.mxu1 %v3944_v18 }
  0x95   : > { %3739 = vmatpush3.bf16.msra.mxu0 %v3939_v3  ;;  %3694 = vmatprep.mubr.bf16.mxu0 %v4534_v20 }
  0x96   : > { %3740 = vmatprep.subr.bf16.mxu0 %v3941_v5  ;;  %3727 = vmatmul.mubr.bf16.gmra.mxu1 %v4755_v54 }
  0x97   : > { %3775 = vmatpush3.bf16.msra.mxu1 %v3944_v18  ;;  %3778 = vmatprep.mubr.bf16.mxu1 %v4378_v43  ;;  %v3948_v43 = vld [vmem:[%s5045_s3 + $0x230] sm:$0xff]  }
  0x98   : > { %3776 = vmatprep.subr.bf16.mxu1 %v3946_v44 }
  0x99   : > { %3741 = vmatpush3.bf16.msra.mxu0 %v3941_v5 }
  0x9a   : > { %3742 = vmatprep.subr.bf16.mxu0 %v3943_v23 }
  0x9b   : > { %3777 = vmatpush3.bf16.msra.mxu1 %v3946_v44 }
  0x9c   : > { %3695 = vmatmul.mubr.bf16.gmra.mxu0 %v1657_v12  ;;  %3826 = vmatprep.subr.bf16.mxu1 %v3947_v31 }
  0x9d   : > { %3743 = vmatpush3.bf16.msra.mxu0 %v3943_v23  ;;  %3746 = vmatprep.mubr.msk.bf16.mxu0 %vm4243_vm14, %v4324_v63  ;;  %v3950_v63 = vld [vmem:[%s5045_s3 + $0x220] sm:$0xff]  }
  0x9e   : > { %3744 = vmatprep.subr.bf16.mxu0 %v3945_v62  ;;  %3779 = vmatmul.mubr.bf16.vlgmr.msra.gmra.mxu1 %v4402_v37  ;;  %v2202_v37 = vshll.u32 %v4672_v35, 16 }
  0x9f   : > { %3834 = vmatpush3.bf16.msra.mxu1 %v3947_v31  ;;  %3782 = vmatprep.mubr.bf16.mxu1 %v4455_v48  ;;  %v2200_v48 = vshrl.u32 %v4672_v35, 16 }
  0xa0   : > { %3827 = vmatprep.subr.bf16.mxu1 %v3948_v43  ;;  %v2204_v14 = vrot.slane %v2202_v37, 1 }
  0xa1   : > { %3745 = vmatpush3.bf16.msra.mxu0 %v3945_v62 }
  0xa2   : > { %3794 = vmatprep.subr.bf16.mxu0 %v3947_v31 }
  0xa3   : > { %3835 = vmatpush3.bf16.msra.mxu1 %v3948_v43 }
  0xa4   : > { %3747 = vmatmul.mubr.msk.bf16.vlgmr.msra.gmra.mxu0 %vm4243_vm14, %v4358_v28  ;;  %3828 = vmatprep.subr.bf16.mxu1 %v3949_v33  ;;  %v3951_v28 = vld [vmem:[%s5045_s3 + $0x218] sm:$0xff]  }
  0xa5   : > { %3795 = vmatpush3.bf16.msra.mxu0 %v3947_v31  ;;  %3750 = vmatprep.mubr.msk.bf16.mxu0 %vm4243_vm14, %v4408_v1  ;;  %v2207_v1 = vshll.u32 %v4677_v40, 16 }
  0xa6   : > { %3796 = vmatprep.subr.bf16.mxu0 %v3948_v43  ;;  %3783 = vmatmul.mubr.bf16.gmra.mxu1 %v4492_v30  ;;  %v3952_v30 = vld [vmem:[%s5045_s3 + $0x210] sm:$0xff]  }
  0xa7   : > { %3836 = vmatpush3.bf16.msra.mxu1 %v3949_v33  ;;  %3786 = vmatprep.mubr.bf16.mxu1 %v4517_v56  ;;  %v2205_v56 = vor.u32 %v2204_v14, %v2200_v48  ;;  %v2209_v35 = vrot.slane %v2207_v1, 1 }
  0xa8   : > { %3829 = vmatprep.subr.bf16.mxu1 %v3950_v63 }
  0xa9   : > { %3797 = vmatpush3.bf16.msra.mxu0 %v3948_v43  ;;  %v2210_v38 = vsel %vm829_vm11, %v2205_v56, %v2209_v35 }
  0xaa   : > { %3798 = vmatprep.subr.bf16.mxu0 %v3949_v33 }
  0xab   : > { %3837 = vmatpush3.bf16.msra.mxu1 %v3950_v63 }
  0xac   : > { %3751 = vmatmul.mubr.msk.bf16.gmra.mxu0 %vm4243_vm14, %v4449_v36  ;;  %3830 = vmatprep.subr.bf16.mxu1 %v3951_v28  ;;  %v3953_v36 = vld [vmem:[%s5045_s3 + $0x208] sm:$0xff]  }
  0xad   : > { %3799 = vmatpush3.bf16.msra.mxu0 %v3949_v33  ;;  %3754 = vmatprep.mubr.msk.bf16.mxu0 %vm4243_vm14, %v4488_v24  ;;  %v3954_v24 = vld [vmem:[%s5045_s3 + $0x200] sm:$0xff]  }
  0xae   : > { %3800 = vmatprep.subr.bf16.mxu0 %v3950_v63  ;;  %3787 = vmatmul.mubr.bf16.gmra.mxu1 %v4534_v20  ;;  %v3213_v20 = vpack.c.bf16 %v4662_v32, %v4648_v29 }
  0xaf   : > { %3838 = vmatpush3.bf16.msra.mxu1 %v3951_v28  ;;  %3790 = vmatprep.mubr.bf16.mxu1 %v1657_v12 }
  0xb0   : > { %3831 = vmatprep.subr.bf16.mxu1 %v3952_v30 }
  0xb1   : > { %3801 = vmatpush3.bf16.msra.mxu0 %v3950_v63 }
  0xb2   : > { %3802 = vmatprep.subr.bf16.mxu0 %v3951_v28 }
  0xb3   : > { %3839 = vmatpush3.bf16.msra.mxu1 %v3952_v30 }
  0xb4   : > { %3755 = vmatmul.mubr.msk.bf16.gmra.mxu0 %vm4243_vm14, %v4514_v55  ;;  %3832 = vmatprep.subr.bf16.mxu1 %v3953_v36 }
  0xb5   : > { %3803 = vmatpush3.bf16.msra.mxu0 %v3951_v28  ;;  %3758 = vmatprep.mubr.msk.bf16.mxu0 %vm4243_vm14, %v4658_v13 }
  0xb6   : > { %3804 = vmatprep.subr.bf16.mxu0 %v3952_v30  ;;  %3791 = vmatmul.mubr.bf16.gmra.mxu1 %v2210_v38 }
  0xb7   : > { %3840 = vmatpush3.bf16.msra.mxu1 %v3953_v36  ;;  %3818 = vmatprep.mubr.bf16.mxu1 %v4654_v4 }
  0xb8   : > { %3833 = vmatprep.subr.bf16.mxu1 %v3954_v24 }
  0xb9   : > { %3805 = vmatpush3.bf16.msra.mxu0 %v3952_v30 }
  0xba   : > { %3806 = vmatprep.subr.bf16.mxu0 %v3953_v36 }
  0xbb   : > { %3841 = vmatpush3.bf16.msra.mxu1 %v3954_v24 }
  0xbc   : > { %3759 = vmatmul.mubr.msk.bf16.gmra.mxu0 %vm4243_vm14, %v3213_v20 }
  0xbd   : > { %3807 = vmatpush3.bf16.msra.mxu0 %v3953_v36  ;;  %3810 = vmatprep.mubr.bf16.mxu0 %v4569_v52 }
  0xbe   : > { %3808 = vmatprep.subr.bf16.mxu0 %v3954_v24  ;;  %3819 = vmatmul.mubr.bf16.vlgmr.msra.gmra.mxu1 %v4692_v21 }
  0xbf   : > { %3822 = vmatprep.mubr.bf16.mxu1 %v4755_v54 }
  0xc1   : > { %3809 = vmatpush3.bf16.msra.mxu0 %v3954_v24 }
  0xc4   : > { %3811 = vmatmul.mubr.bf16.vlgmr.msra.gmra.mxu0 %v4600_v27 }
  0xc5   : > { %3814 = vmatprep.mubr.bf16.mxu0 %v4603_v10 }
  0xc6   : > { %3823 = vmatmul.mubr.bf16.gmra.mxu1 %v4695_v60 }
  0xcc   : > { %3815 = vmatmul.mubr.bf16.gmra.mxu0 %v4646_v25 }
  0xf0   : > { %v3588_v55 = vpop.f32.mrf.mxu1 }
  0xf2   : > { %v1178_v11 = vpop.f32.mrf.mxu1 }
  0xf4   : > { %v3589_v29 = vpop.f32.mrf.mxu1  ;;  %v3556_v4 = vpop.f32.mrf.mxu0 }
  0xf5   : > { %v1187_v13 = vadd.f32 %v3588_v55, %v3556_v4 }
  0xf6   : > { %v1033_v52 = vpop.f32.mrf.mxu0  ;;  %v1181_v32 = vpop.f32.mrf.mxu1 }
  0xf7   : > { %v1179_v39 = vadd.f32 %v1178_v11, %v1033_v52 }
  0xf8   : > { %v3557_v40 = vpop.f32.mrf.mxu0  ;;  %v3592_v51 = vpop.f32.mrf.mxu1 }
  0xf9   : > { %v1190_v41 = vadd.f32 %v3589_v29, %v3557_v40 }
  0xfa   : > { %v1036_v26 = vpop.f32.mrf.mxu0  ;;  %v1194_v27 = vpop.f32.mrf.mxu1 }
  0xfb   : > { %v1182_v53 = vadd.f32 %v1181_v32, %v1036_v26 }
  0xfc   : > { %v3593_v10 = vpop.f32.mrf.mxu1 }
  0xfe   : > { %v1197_v34 = vpop.f32.mrf.mxu1 }
  0xff   : > { %v3560_v21 = vpop.f32.mrf.mxu0 }
 0x100   : > { %v1203_v0 = vadd.f32 %v3592_v51, %v3560_v21 }
 0x101   : > { %v1049_v60 = vpop.f32.mrf.mxu0 }
 0x102   : > { %v1195_v61 = vadd.f32 %v1194_v27, %v1049_v60 }
 0x103   : > { %v3561_v25 = vpop.f32.mrf.mxu0 }
 0x104   : > { %v1206_v46 = vadd.f32 %v3593_v10, %v3561_v25 }
 0x105   : > { %v1052_v50 = vpop.f32.mrf.mxu0 }
 0x106   : > { %v1198_v47 = vadd.f32 %v1197_v34, %v1052_v50 }
 0x107   : > { %v3596_v49 = vpop.f32.mrf.mxu1 }
 0x109   : > { %v1210_v57 = vpop.f32.mrf.mxu1 }
 0x10b   : > { %v3597_v58 = vpop.f32.mrf.mxu1 }
 0x10d   : > { %v1213_v7 = vpop.f32.mrf.mxu1 }
 0x10f   : > { %v3564_v59 = vpop.f32.mrf.mxu0 }
 0x110   : > { %v1219_v2 = vadd.f32 %v3596_v49, %v3564_v59 }
 0x111   : > { %v1065_v6 = vpop.f32.mrf.mxu0 }
 0x112   : > { %v1211_v8 = vadd.f32 %v1210_v57, %v1065_v6 }
 0x113   : > { %v3565_v42 = vpop.f32.mrf.mxu0 }
 0x114   : > { %v1222_v3 = vadd.f32 %v3597_v58, %v3565_v42 }
 0x115   : > { %v1068_v9 = vpop.f32.mrf.mxu0  ;;  %v3600_v17 = vpop.f32.mrf.mxu1 }
 0x116   : > { %v1214_v18 = vadd.f32 %v1213_v7, %v1068_v9 }
 0x117   : > { %v1226_v19 = vpop.f32.mrf.mxu1 }
 0x119   : > { %v3601_v15 = vpop.f32.mrf.mxu1 }
 0x11b   : > { %v1229_v16 = vpop.f32.mrf.mxu1 }
 0x11c   : > { %v3568_v5 = vpop.f32.mrf.mxu0 }
 0x11d   : > { %v1235_v54 = vadd.f32 %v3600_v17, %v3568_v5  ;;  %v3652_v44 = vpop.f32.mrf.mxu1 }
 0x11e   : > { %v1081_v45 = vpop.f32.mrf.mxu0 }
 0x11f   : > { %v1227_v22 = vadd.f32 %v1226_v19, %v1081_v45  ;;  %v1567_v23 = vpop.f32.mrf.mxu1 }
 0x120   : > { %v3569_v31 = vpop.f32.mrf.mxu0 }
 0x121   : > { %v1238_v12 = vadd.f32 %v3601_v15, %v3569_v31  ;;  %v3653_v62 = vpop.f32.mrf.mxu1 }
 0x122   : > { %v1084_v43 = vpop.f32.mrf.mxu0 }
 0x123   : > { %v4837_v33 = vadd.f32 %v1229_v16, %v1084_v43  ;;  %v1570_v63 = vpop.f32.mrf.mxu1 }
 0x124   : > { %v3620_v37 = vpop.f32.mrf.mxu0 }
 0x125   : > { %v1454_v28 = vadd.f32 %v3620_v37, %v1187_v13 }
 0x126   : > { %v1389_v48 = vpop.f32.mrf.mxu0  ;;  %v3656_v14 = vpop.f32.mrf.mxu1 }
 0x127   : > { %v1632_v1 = vadd.f32 %v3652_v44, %v1454_v28  ;;  %v1452_v30 = vadd.f32 %v1389_v48, %v1179_v39 }
 0x128   : > { %v3621_v56 = vpop.f32.mrf.mxu0  ;;  %v1583_v35 = vpop.f32.mrf.mxu1 }
 0x129   : > { %v1630_v36 = vadd.f32 %v1567_v23, %v1452_v30  ;;  %v1455_v38 = vadd.f32 %v3621_v56, %v1190_v41 }
 0x12a   : > { %v1392_v24 = vpop.f32.mrf.mxu0  ;;  %v3657_v20 = vpop.f32.mrf.mxu1 }
 0x12b   : > { %v1633_v55 = vadd.f32 %v3653_v62, %v1455_v38  ;;  %v1453_v11 = vadd.f32 %v1392_v24, %v1182_v53 }
 0x12c   : > { %v3624_v29 = vpop.f32.mrf.mxu0  ;;  %v1586_v4 = vpop.f32.mrf.mxu1 }
 0x12d   : > { %v1631_v52 = vadd.f32 %v1570_v63, %v1453_v11  ;;  %v1458_v32 = vadd.f32 %v3624_v29, %v1203_v0 }
 0x12e   : > { %v1405_v40 = vpop.f32.mrf.mxu0  ;;  %v3660_v26 = vpop.f32.mrf.mxu1 }
 0x12f   : > { %v1636_v51 = vadd.f32 %v3656_v14, %v1458_v32  ;;  %v1456_v13 = vadd.f32 %v1405_v40, %v1195_v61 }
 0x130   : > { %v3625_v27 = vpop.f32.mrf.mxu0  ;;  %v1599_v21 = vpop.f32.mrf.mxu1 }
 0x131   : > { %v1634_v10 = vadd.f32 %v1583_v35, %v1456_v13  ;;  %v1459_v39 = vadd.f32 %v3625_v27, %v1206_v46 }
 0x132   : > { %v1408_v60 = vpop.f32.mrf.mxu0  ;;  %v3661_v25 = vpop.f32.mrf.mxu1 }
 0x133   : > { %v1637_v34 = vadd.f32 %v3657_v20, %v1459_v39  ;;  %v1457_v41 = vadd.f32 %v1408_v60, %v1198_v47 }
 0x134   : > { %v3628_v50 = vpop.f32.mrf.mxu0  ;;  %v1602_v49 = vpop.f32.mrf.mxu1 }
 0x135   : > { %v1635_v57 = vadd.f32 %v1586_v4, %v1457_v41  ;;  %v1462_v53 = vadd.f32 %v3628_v50, %v1219_v2 }
 0x136   : > { %v1421_v58 = vpop.f32.mrf.mxu0  ;;  %v3664_v59 = vpop.f32.mrf.mxu1 }
 0x137   : > { %v4839_v6 = vadd.f32 %v3660_v26, %v1462_v53  ;;  %v1460_v0 = vadd.f32 %v1421_v58, %v1211_v8 }
 0x138   : > { %v3629_v7 = vpop.f32.mrf.mxu0  ;;  %v1615_v42 = vpop.f32.mrf.mxu1 }
 0x139   : > { %v4841_v61 = vadd.f32 %v1599_v21, %v1460_v0  ;;  %v1463_v9 = vadd.f32 %v3629_v7, %v1222_v3 }
 0x13a   : > { %v1424_v17 = vpop.f32.mrf.mxu0  ;;  %v3665_v46 = vpop.f32.mrf.mxu1 }
 0x13b   : > { %v4843_v19 = vadd.f32 %v3661_v25, %v1463_v9  ;;  %v1461_v15 = vadd.f32 %v1424_v17, %v1214_v18 }
 0x13c   : > { %v3632_v47 = vpop.f32.mrf.mxu0  ;;  %v1618_v16 = vpop.f32.mrf.mxu1 }
 0x13d   : > { %v4845_v5 = vadd.f32 %v1602_v49, %v1461_v15  ;;  %v1466_v2 = vadd.f32 %v3632_v47, %v1235_v54 }
 0x13e   : > { %v1437_v44 = vpop.f32.mrf.mxu0  ;;  %v3716_v45 = vpop.f32.mrf.mxu1 }
 0x13f   : > { %v4847_v23 = vadd.f32 %v3664_v59, %v1466_v2  ;;  %v1464_v8 = vadd.f32 %v1437_v44, %v1227_v22 }
 0x140   : > { %v3633_v31 = vpop.f32.mrf.mxu0  ;;  %v1942_v62 = vpop.f32.mrf.mxu1 }
 0x141   : > { %v4849_v43 = vadd.f32 %v1615_v42, %v1464_v8  ;;  %v1467_v3 = vadd.f32 %v3633_v31, %v1238_v12 }
 0x142   : > { %v1440_v63 = vpop.f32.mrf.mxu0  ;;  %v3717_v37 = vpop.f32.mrf.mxu1 }
 0x143   : > { %v4851_v28 = vadd.f32 %v3665_v46, %v1467_v3  ;;  %v1465_v18 = vadd.f32 %v1440_v63, %v4837_v33 }
 0x144   : > { %v3684_v48 = vpop.f32.mrf.mxu0  ;;  %v1945_v14 = vpop.f32.mrf.mxu1 }
 0x145   : > { %v4854_v30 = vadd.f32 %v1618_v16, %v1465_v18  ;;  %v1823_v54 = vadd.f32 %v3684_v48, %v1632_v1 }
 0x146   : > { %v1758_v56 = vpop.f32.mrf.mxu0  ;;  %v3720_v35 = vpop.f32.mrf.mxu1 }
 0x147   : > { %v4856_v38 = vadd.f32 %v3716_v45, %v1823_v54  ;;  %v1821_v22 = vadd.f32 %v1758_v56, %v1630_v36 }
 0x148   : > { %v3685_v24 = vpop.f32.mrf.mxu0  ;;  %v1958_v20 = vpop.f32.mrf.mxu1 }
 0x149   : > { %v4858_v11 = vadd.f32 %v1942_v62, %v1821_v22  ;;  %v1824_v12 = vadd.f32 %v3685_v24, %v1633_v55 }
 0x14a   : > { %v1761_v29 = vpop.f32.mrf.mxu0  ;;  %v3721_v4 = vpop.f32.mrf.mxu1 }
 0x14b   : > { %v4860_v32 = vadd.f32 %v3717_v37, %v1824_v12  ;;  %v1822_v33 = vadd.f32 %v1761_v29, %v1631_v52 }
 0x14c   : > { %v3688_v40 = vpop.f32.mrf.mxu0  ;;  %v1961_v26 = vpop.f32.mrf.mxu1 }
 0x14d   : > { %v4862_v13 = vadd.f32 %v1945_v14, %v1822_v33  ;;  %v1827_v1 = vadd.f32 %v3688_v40, %v1636_v51 }
 0x14e   : > { %v1774_v27 = vpop.f32.mrf.mxu0  ;;  %v3724_v21 = vpop.f32.mrf.mxu1 }
 0x14f   : > { %v4864_v39 = vadd.f32 %v3720_v35, %v1827_v1  ;;  %v1825_v36 = vadd.f32 %v1774_v27, %v1634_v10 }
 0x150   : > { %v3689_v60 = vpop.f32.mrf.mxu0  ;;  %v1974_v25 = vpop.f32.mrf.mxu1 }
 0x151   : > { %v4866_v41 = vadd.f32 %v1958_v20, %v1825_v36  ;;  %v1828_v55 = vadd.f32 %v3689_v60, %v1637_v34 }
 0x152   : > { %v1777_v50 = vpop.f32.mrf.mxu0  ;;  %v3725_v49 = vpop.f32.mrf.mxu1 }
 0x153   : > { %v4868_v53 = vadd.f32 %v3721_v4, %v1828_v55  ;;  %v1826_v52 = vadd.f32 %v1777_v50, %v1635_v57 }
 0x154   : > { %v3692_v58 = vpop.f32.mrf.mxu0  ;;  %v1977_v59 = vpop.f32.mrf.mxu1 }
 0x155   : > { %v4870_v0 = vadd.f32 %v1961_v26, %v1826_v52  ;;  %v1831_v4 = vadd.f32 %v3692_v58, %v4839_v6 }
 0x156   : > { %v1790_v51 = vpop.f32.mrf.mxu0  ;;  %v4872_v7 = vpop.f32.mrf.mxu1 }
 0x157   : > { %v1829_v26 = vadd.f32 %v1790_v51, %v4841_v61  ;;  %v2015_v55 = vadd.f32 %v3724_v21, %v1831_v4 }
 0x158   : > { %v3693_v42 = vpop.f32.mrf.mxu0  ;;  %v4874_v9 = vpop.f32.mrf.mxu1 }
 0x159   : > { %v1832_v1 = vadd.f32 %v3693_v42, %v4843_v19 }
 0x15a   : > { %v1793_v10 = vpop.f32.mrf.mxu0  ;;  %v4876_v17 = vpop.f32.mrf.mxu1 }
 0x15b   : > { %v1830_v60 = vadd.f32 %v1793_v10, %v4845_v5 }
 0x15c   : > { %v3696_v46 = vpop.f32.mrf.mxu0  ;;  %v4878_v34 = vpop.f32.mrf.mxu1 }
 0x15d   : > { %v1835_v61 = vadd.f32 %v3696_v46, %v4847_v23 }
 0x15e   : > { %v1806_v15 = vpop.f32.mrf.mxu0  ;;  %v4880_v47 = vpop.f32.mrf.mxu1 }
 0x15f   : > { %v1833_v19 = vadd.f32 %v1806_v15, %v4849_v43  ;;  %v2019_v46 = vadd.f32 %v4872_v7, %v1835_v61  ;;  %v4932_v7 = vld [vmem:[%s5046_s4] ss:$0 sm:$0xff] }
 0x160   : > { %v3697_v57 = vpop.f32.mrf.mxu0  ;;  %v4882_v16 = vpop.f32.mrf.mxu1 }
 0x161   : > { %v1836_v42 = vadd.f32 %v3697_v57, %v4851_v28  ;;  %v2017_v15 = vadd.f32 %v4874_v9, %v1833_v19 }
 0x162   : > { %v1809_v2 = vpop.f32.mrf.mxu0  ;;  %v4884_v44 = vpop.f32.mrf.mxu1 }
 0x163   : > { %v1834_v10 = vadd.f32 %v1809_v2, %v4854_v30  ;;  %v2020_v57 = vadd.f32 %v4876_v17, %v1836_v42 }
 0x164   : > { %v3748_v45 = vpop.f32.mrf.mxu0  ;;  %v4886_v8 = vpop.f32.mrf.mxu1 }
 0x166   : > { %v2120_v31 = vpop.f32.mrf.mxu0  ;;  %v4888_v62 = vpop.f32.mrf.mxu1 }
 0x167   : > { %5069 = vst [vmem:[#allocation2_spill] sm:$0xff] %v4888_v62  ;;  %v2014_v62 = vadd.f32 %v1977_v59, %v1830_v60 }
 0x168   : > { %v3749_v3 = vpop.f32.mrf.mxu0  ;;  %v4890_v63 = vpop.f32.mrf.mxu1 }
 0x169   : > { %5070 = vst [vmem:[#allocation3_spill] sm:$0xff] %v4890_v63  ;;  %v2186_v4 = vadd.f32 %v3749_v3, %v4860_v32 }
 0x16a   : > { %v2123_v37 = vpop.f32.mrf.mxu0  ;;  %v4892_v18 = vpop.f32.mrf.mxu1 }
 0x16b   : > { %5071 = vst [vmem:[#allocation4_spill] sm:$0xff] %v4892_v18  ;;  %v2016_v18 = vadd.f32 %v3725_v49, %v1832_v1  ;;  %v2184_v43 = vadd.f32 %v2123_v37, %v4862_v13  ;;  %v2377_v9 = vadd.f32 %v4884_v44, %v2186_v4 }
 0x16c   : > { %v4894_v48 = vpop.f32.mrf.mxu0  ;;  %v4896_v14 = vpop.f32.mrf.mxu1 }
 0x16d   : > { %5072 = vst [vmem:[#allocation5_spill] sm:$0xff] %v4896_v14  ;;  %v2013_v14 = vadd.f32 %v1974_v25, %v1829_v26  ;;  %v2185_v25 = vadd.f32 %v3748_v45, %v4856_v38 }
 0x16e   : > { %v4898_v54 = vpop.f32.mrf.mxu0  ;;  %v3788_v56 = vpop.f32.mrf.mxu1 }
 0x16f   : > { %v2376_v32 = vadd.f32 %v4880_v47, %v2185_v25  ;;  %v2189_v47 = vadd.f32 %v4894_v48, %v4864_v39  ;;  %v2187_v39 = vadd.f32 %v4898_v54, %v4866_v41 }
 0x170   : > { %v4900_v35 = vpop.f32.mrf.mxu0  ;;  %v2343_v22 = vpop.f32.mrf.mxu1  ;;  %v5077_v25 = vld [vmem:[#allocation3_spill] sm:$0xff] }
 0x171   : > { %v2190_v1 = vadd.f32 %v4900_v35, %v4868_v53 }
 0x172   : > { %v4902_v24 = vpop.f32.mrf.mxu0  ;;  %v3789_v20 = vpop.f32.mrf.mxu1 }
 0x173   : > { %v2188_v54 = vadd.f32 %v4902_v24, %v4870_v0  ;;  %v5076_v24 = vld [vmem:[#allocation2_spill] sm:$0xff] }
 0x174   : > { %v3756_v12 = vpop.f32.mrf.mxu0  ;;  %v2346_v29 = vpop.f32.mrf.mxu1 }
 0x175   : > { %v2193_v63 = vadd.f32 %v3756_v12, %v2015_v55  ;;  %v2183_v12 = vadd.f32 %v2120_v31, %v4858_v11  ;;  %v2018_v11 = vadd.f32 %v4878_v34, %v1834_v10  ;;  %v2375_v34 = vadd.f32 %v4886_v8, %v2184_v43  ;;  %v5079_v43 = vld [vmem:[#allocation5_spill] sm:$0xff] }
 0x176   : > { %v2152_v33 = vpop.f32.mrf.mxu0  ;;  %v4905_v40 = vpop.f32.mrf.mxu1 }
 0x177   : > { %v2191_v51 = vadd.f32 %v2152_v33, %v2013_v14  ;;  %v2384_v59 = vadd.f32 %v3788_v56, %v2193_v63 }
 0x178   : > { %v3757_v27 = vpop.f32.mrf.mxu0  ;;  %v4909_v36 = vpop.f32.mrf.mxu1 }
 0x179   : > { %5073 = vst [vmem:[#allocation6_spill] sm:$0xff] %v4909_v36  ;;  %v2194_v36 = vadd.f32 %v3757_v27, %v2016_v18  ;;  %v2382_v28 = vadd.f32 %v2343_v22, %v2191_v51 }
 0x17a   : > { %v2155_v50 = vpop.f32.mrf.mxu0  ;;  %v4912_v52 = vpop.f32.mrf.mxu1 }
 0x17b   : > { %v2192_v49 = vadd.f32 %v2155_v50, %v2014_v62  ;;  %v2385_v30 = vadd.f32 %v3789_v20, %v2194_v36  ;;  %v2374_v62 = vadd.f32 %v4882_v16, %v2183_v12 }
 0x17c   : > { %v3760_v6 = vpop.f32.mrf.mxu0  ;;  %v4914_v58 = vpop.f32.mrf.mxu1 }
 0x17d   : > { %v2383_v31 = vadd.f32 %v2346_v29, %v2192_v49  ;;  %v2197_v17 = vadd.f32 %v3760_v6, %v2019_v46  ;;  %v2378_v49 = vadd.f32 %v5077_v25, %v2187_v39 }
 0x17e   : > { %v2168_v5 = vpop.f32.mrf.mxu0  ;;  %v3820_v21 = vpop.f32.mrf.mxu1 }
 0x17f   : > { %v2568_v38 = vadd.f32 %v3820_v21, %v2384_v59  ;;  %v2195_v56 = vadd.f32 %v2168_v5, %v2017_v15  ;;  %v2388_v27 = vadd.f32 %v4905_v40, %v2197_v17 }
 0x180   : > { %v3761_v26 = vpop.f32.mrf.mxu0  ;;  %v2527_v23 = vpop.f32.mrf.mxu1  ;;  %v5075_v51 = vld [vmem:[#allocation6_spill] sm:$0xff] }
 0x181   : > { %v2566_v13 = vadd.f32 %v2527_v23, %v2382_v28  ;;  %v2198_v18 = vadd.f32 %v3761_v26, %v2020_v57  ;;  %v4940_v20 = vadd.f32 %v4932_v7, %v2568_v38  ;;  %v2386_v53 = vadd.f32 %v5075_v51, %v2195_v56  ;;  %v5078_v23 = vld [vmem:[#allocation4_spill] sm:$0xff] }
 0x182   : > { %v2171_v2 = vpop.f32.mrf.mxu0  ;;  %v3821_v45 = vpop.f32.mrf.mxu1  ;;  %v2381_v46 = vadd.f32 %v5078_v23, %v2190_v1  ;;  %v2379_v28 = vadd.f32 %v5079_v43, %v2188_v54 }
 0x183   : > { %v2569_v63 = vadd.f32 %v3821_v45, %v2385_v30  ;;  %v4955_v48 = vadd.f32 %v4932_v7, %v2566_v13  ;;  %v2196_v36 = vadd.f32 %v2171_v2, %v2018_v11  ;;  %v2389_v50 = vadd.f32 %v4912_v52, %v2198_v18 }
 0x184   : > { %v3812_v3 = vpop.f32.mrf.mxu0  ;;  %v2530_v37 = vpop.f32.mrf.mxu1  ;;  %v2380_v52 = vadd.f32 %v5076_v24, %v2189_v47  ;;  %v2708_v25 = vmul.f32 %v4940_v20, %v4940_v20 }
 0x185   : > { %v2567_v14 = vadd.f32 %v2530_v37, %v2383_v31  ;;  %v2560_v22 = vadd.f32 %v3812_v3, %v2376_v32  ;;  %v4943_v29 = vadd.f32 %v4932_v7, %v2569_v63  ;;  %v2387_v12 = vadd.f32 %v4914_v58, %v2196_v36 }
 0x186   : > { %v2495_v16 = vpop.f32.mrf.mxu0  ;;  %v3824_v44 = vpop.f32.mrf.mxu1 }
 0x187   : > { %v2558_v8 = vadd.f32 %v2495_v16, %v2374_v62  ;;  %v4958_v33 = vadd.f32 %v4932_v7, %v2567_v14  ;;  %v3368_v55 = vpack.c.bf16 %v4943_v29, %v4940_v20  ;;  %v2583_v35 = vadd.f32 %v4932_v7, %v2560_v22 }
 0x188   : > { %v3813_v60 = vpop.f32.mrf.mxu0  ;;  %v2543_v41 = vpop.f32.mrf.mxu1  ;;  %v2572_v19 = vadd.f32 %v3824_v44, %v2388_v27 }
 0x189   : > { %v2561_v6 = vadd.f32 %v3813_v60, %v2377_v9  ;;  %v3363_v61 = vpack.c.bf16 %v4958_v33, %v4955_v48  ;;  %3391 = vst [vmem:[%s4950_s18 + $0x28] sm:$0xff] %v3368_v55   ;;  %v2581_v5 = vadd.f32 %v4932_v7, %v2558_v8  ;;  %v2570_v59 = vadd.f32 %v2543_v41, %v2386_v53 }
 0x18a   : > { %v2498_v40 = vpop.f32.mrf.mxu0  ;;  %v3825_v42 = vpop.f32.mrf.mxu1  ;;  %v4983_v2 = vadd.f32 %v4932_v7, %v2572_v19  ;;  %v2700_v37 = vmul.f32 %v2583_v35, %v2583_v35 }
 0x18b   : > { %v2584_v21 = vadd.f32 %v4932_v7, %v2561_v6  ;;  %v2559_v10 = vadd.f32 %v2498_v40, %v2375_v34  ;;  %3390 = vst [vmem:[%s4950_s18 + $0x20] sm:$0xff] %v3363_v61   ;;  %v2573_v0 = vadd.f32 %v3825_v42, %v2389_v50  ;;  %v2698_v11 = vmul.f32 %v2581_v5, %v2581_v5 }
 0x18c   : > { %v3816_v4 = vpop.f32.mrf.mxu0  ;;  %v2546_v26 = vpop.f32.mrf.mxu1  ;;  %v2593_v9 = vadd.f32 %v4932_v7, %v2570_v59 }
 0x18d   : > { %v3348_v15 = vpack.c.bf16 %v2584_v21, %v2583_v35  ;;  %v2582_v57 = vadd.f32 %v4932_v7, %v2559_v10  ;;  %v2564_v30 = vadd.f32 %v3816_v4, %v2380_v52  ;;  %v4986_v45 = vadd.f32 %v4932_v7, %v2573_v0 }
 0x18e   : > { %v2511_v38 = vpop.f32.mrf.mxu0  ;;  %v2571_v58 = vadd.f32 %v2546_v26, %v2387_v12  ;;  %v2701_v14 = vmul.f32 %v2584_v21, %v2584_v21  ;;  %v2709_v4 = vmul.f32 %v4943_v29, %v4943_v29  ;;  %v2710_v26 = vmul.f32 %v2593_v9, %v2593_v9 }
 0x18f   : > { %3387 = vst [vmem:[%s4950_s18 + $0x8] sm:$0xff] %v3348_v15   ;;  %v3343_v32 = vpack.c.bf16 %v2582_v57, %v2581_v5  ;;  %v2677_v31 = vadd.f32 %v2582_v57, %v2581_v5  ;;  %v2699_v13 = vmul.f32 %v2582_v57, %v2582_v57  ;;  %v2562_v62 = vadd.f32 %v2511_v38, %v2378_v49 }
 0x190   : > { %v3817_v17 = vpop.f32.mrf.mxu0  ;;  %v3378_v3 = vpack.c.bf16 %v4986_v45, %v4983_v2  ;;  %v2594_v63 = vadd.f32 %v4932_v7, %v2571_v58  ;;  %v2587_v56 = vadd.f32 %v4932_v7, %v2564_v30  ;;  %v2712_v15 = vmul.f32 %v4983_v2, %v4983_v2 }
 0x191   : > { %3344 = vst [vmem:[%s4950_s18] sm:$0xff] %v3343_v32   ;;  %v2678_v34 = vadd.f32 %v2677_v31, %v2583_v35  ;;  %v2714_v47 = vadd.f32 %v2699_v13, %v2698_v11  ;;  %v2565_v18 = vadd.f32 %v3817_v17, %v2381_v46  ;;  %v2585_v22 = vadd.f32 %v4932_v7, %v2562_v62 }
 0x192   : > { %3393 = vst [vmem:[%s4950_s18 + $0x38] sm:$0xff] %v3378_v3   ;;  %v2514_v16 = vpop.f32.mrf.mxu0  ;;  %v3373_v44 = vpack.c.bf16 %v2594_v63, %v2593_v9  ;;  %v2704_v53 = vmul.f32 %v2587_v56, %v2587_v56  ;;  %v2713_v30 = vmul.f32 %v4986_v45, %v4986_v45 }
 0x193   : > { %v2715_v39 = vadd.f32 %v2714_v47, %v2700_v37  ;;  %v2679_v8 = vadd.f32 %v2678_v34, %v2584_v21  ;;  %v2588_v1 = vadd.f32 %v4932_v7, %v2565_v18  ;;  %v2563_v27 = vadd.f32 %v2514_v16, %v2379_v28 }
 0x194   : > { %3392 = vst [vmem:[%s4950_s18 + $0x30] sm:$0xff] %v3373_v44   ;;  %v2702_v60 = vmul.f32 %v2585_v22, %v2585_v22  ;;  %v2706_v21 = vmul.f32 %v4955_v48, %v4955_v48 }
 0x195   : > { %v2680_v36 = vadd.f32 %v2679_v8, %v2585_v22  ;;  %v2716_v55 = vadd.f32 %v2715_v39, %v2701_v14  ;;  %v3358_v41 = vpack.c.bf16 %v2588_v1, %v2587_v56  ;;  %v2586_v54 = vadd.f32 %v4932_v7, %v2563_v27 }
 0x196   : > { %v2705_v19 = vmul.f32 %v2588_v1, %v2588_v1  ;;  %v2707_v7 = vmul.f32 %v4958_v33, %v4958_v33 }
 0x197   : > { %v2717_v50 = vadd.f32 %v2716_v55, %v2702_v60  ;;  %3389 = vst [vmem:[%s4950_s18 + $0x18] sm:$0xff] %v3358_v41   ;;  %v3353_v6 = vpack.c.bf16 %v2586_v54, %v2585_v22  ;;  %v2681_v61 = vadd.f32 %v2680_v36, %v2586_v54  ;;  %v2703_v51 = vmul.f32 %v2586_v54, %v2586_v54 }
 0x199   : > { %3388 = vst [vmem:[%s4950_s18 + $0x10] sm:$0xff] %v3353_v6   ;;  %v2682_v35 = vadd.f32 %v2681_v61, %v2587_v56  ;;  %v2718_v40 = vadd.f32 %v2717_v50, %v2703_v51 }
 0x19b   : > { %v2683_v42 = vadd.f32 %v2682_v35, %v2588_v1  ;;  %v2719_v5 = vadd.f32 %v2718_v40, %v2704_v53 }
 0x19d   : > { %v2684_v10 = vadd.f32 %v2683_v42, %v4955_v48  ;;  %v2720_v0 = vadd.f32 %v2719_v5, %v2705_v19 }
 0x19f   : > { %v2721_v24 = vadd.f32 %v2720_v0, %v2706_v21  ;;  %v2685_v52 = vadd.f32 %v2684_v10, %v4958_v33  ;;  %v2711_v33 = vmul.f32 %v2594_v63, %v2594_v63 }
 0x1a1   : > { %v2686_v49 = vadd.f32 %v2685_v52, %v4940_v20  ;;  %v2722_v12 = vadd.f32 %v2721_v24, %v2707_v7 }
 0x1a3   : > { %v2687_v59 = vadd.f32 %v2686_v49, %v4943_v29  ;;  %v2723_v48 = vadd.f32 %v2722_v12, %v2708_v25 }
 0x1a5   : > { %v2688_v23 = vadd.f32 %v2687_v59, %v2593_v9  ;;  %v2724_v46 = vadd.f32 %v2723_v48, %v2709_v4 }
 0x1a7   : > { %v2689_v43 = vadd.f32 %v2688_v23, %v2594_v63  ;;  %v2725_v28 = vadd.f32 %v2724_v46, %v2710_v26 }
 0x1a9   : > { %v2690_v20 = vadd.f32 %v2689_v43, %v4983_v2  ;;  %v2726_v57 = vadd.f32 %v2725_v28, %v2711_v33 }
 0x1ab   : > { %v2691_v29 = vadd.f32 %v2690_v20, %v4986_v45  ;;  %v2727_v38 = vadd.f32 %v2726_v57, %v2712_v15 }
 0x1ad   : > { %v2692_v58 = vrot.slane %v2691_v29, 4  ;;  %v2728_v11 = vadd.f32 %v2727_v38, %v2713_v30 }
 0x1af   : > { %v2693_v32 = vadd.f32 %v2692_v58, %v2691_v29  ;;  %v2729_v31 = vrot.slane %v2728_v11, 4 }
 0x1b1   : > { %v2694_v13 = vrot.slane %v2693_v32, 2  ;;  %v2730_v62 = vadd.f32 %v2729_v31, %v2728_v11 }
 0x1b3   : > { %v2695_v9 = vadd.f32 %v2694_v13, %v2693_v32  ;;  %v2731_v17 = vrot.slane %v2730_v62, 2 }
 0x1b5   : > { %v2696_v2 = vrot.slane %v2695_v9, 1  ;;  %v2732_v3 = vadd.f32 %v2731_v17, %v2730_v62 }
 0x1b7   : > { %v2733_v63 = vrot.slane %v2732_v3, 1  ;;  %v2697_v45 = vadd.f32 %v2696_v2, %v2695_v9 }
 0x1b9   : > { %v2734_v37 = vadd.f32 %v2733_v63, %v2732_v3 }
 0x1bb   : > { %v2735_v34 = vsel %vm712_vm2, %v2697_v45, %v2734_v37 }
 0x1bc   : > { %2736 = vst [vmem:[%s494_s22] sm:$0x3] %v2735_v34 }
 0x1bd PF: > { %s19_s9 = sadd.s32 1, %s3995_s9   ;;  %s5080_s27 = smov %s3987_s29 }
 0x1be   : > { %p16_p11 = scmp.ge.s32.totalorder %s19_s9, 6   ;;  %s5081_s28 = smov %s3991_s30 }
 0x1bf   : > { %s5082_s29 = smov %s5085_s10  ;;  %s5083_s30 = smov %s5089_s11 }
 0x1c0   :  { %18 = sbr.rel (!%p16_p11) target bundleno = 3 (0x3), region = 104 }

// kernel: double_conv_forward.3
= control target key start
LH: loop header
LB: loop body
LE: loop exit
PB: predicated region body
PF: predicated region fallthrough
CT: control target
= control target key end

     0   :  { %s3853_s27 = smov 0   ;;  %s3855_s28 = smov 0   ;;  %s4655_s0 = inlined_call_operand.vmem [shape: bf16[2,16,16,128], index: 0, kind: input, shape index: {}, may-alias: {0,1,2}]   ;;  %s4656_s1 = inlined_call_operand.vmem [shape: bf16[2,16,16,128], index: 1, kind: input, shape index: {}, may-alias: {0,1,2}]   ;;  %s4657_s2 = inlined_call_operand.vmem [shape: bf16[2,16,16,128], index: 2, kind: input, shape index: {}, may-alias: {0,1,2}]   ;;  %s4658_s3 = inlined_call_operand.vmem [shape: bf16[9,128,128], index: 3, kind: input, shape index: {}]   ;;  %s4659_s4 = inlined_call_operand.vmem [shape: f32[1,128], index: 4, kind: input, shape index: {}]   ;;  %s4660_s5 = inlined_call_operand.vmem [shape: f32[1,128], index: 5, kind: input, shape index: {}]   ;;  %s4661_s6 = inlined_call_operand.vmem [shape: f32[1,128], index: 6, kind: input, shape index: {}]   ;;  %s4662_s7 = inlined_call_operand.vmem [shape: bf16[2,16,16,128], index: 7, kind: output, shape index: {0}]   ;;  %s4663_s8 = inlined_call_operand.vmem [shape: f32[2,2,2,128], index: 8, kind: output, shape index: {1}]  }
   0x1   :  { %s3857_s29 = smov 0   ;;  %s3859_s30 = smov 0  }
   0x2   :  { %s3861_s9 = smov 0  }
   0x3 LB: > { %s28_s5 = sadd.s32 1, %s3798_s29  ;;  %s31_s6 = sadd.s32 1, %s3802_s30  ;;  %s3806_s9 = sphi %s3861_s9, %s19_s9   ;;  %s3802_s30 = sphi %s3859_s30, %s4686_s30   ;;  %s3798_s29 = sphi %s3857_s29, %s4685_s29   ;;  %s3794_s28 = sphi %s3855_s28, %s4684_s28   ;;  %s3790_s27 = sphi %s3853_s27, %s4683_s27  }
   0x4   : > { %p29_p0 = scmp.ge.s32.totalorder %s28_s5, 2  ;;  %p2884_p1 = scmp.ge.s32.totalorder %s3806_s9, 1 }
   0x5   : > { %p353_p2 = scmp.lt.s32.totalorder %s3806_s9, 5 }
   0x6   : > { %s4688_s5 = smov (%p29_p0, %s28_s5), 0  ;;  %s4690_s6 = smov (!%p29_p0, %s31_s6), %s3802_s30 }
   0x7   : > { %p354_p3 = pnand %p2884_p1, %p353_p2  ;;  %p33_p4 = scmp.ge.s32.totalorder %s4690_s6, 2 }
   0x9   : > { %s4692_s6 = smov (%p33_p4, %s4690_s6), 0  ;;  %357 = sbr.rel (%p354_p3) target bundleno = 428 (0x1ac), region = 48 }
   0xe   : > { %v3696_v0 = vld [vmem:[%s4658_s3 + $0x78] sm:$0xff]   ;;  %s3889_s12 = sshll.u32 %s3790_s27, 3  ;;  %p432_p5 = scmp.lt.s32.totalorder %s3794_s28, 1  ;;  %v3698_v2 = vld [vmem:[%s4658_s3 + $0x70] sm:$0xff]   ;;  %v3700_v4 = vld [vmem:[%s4658_s3 + $0x68] sm:$0xff]   ;;  %vm738_vm7 = vcmask 1040384  }
   0xf   : > { %v3697_v1 = vld [vmem:[%s4658_s3 + $0x38] sm:$0xff]   ;;  %3352 = vmatprep.subr.bf16.mxu0 %v3696_v0  ;;  %p434_p6 = scmp.lt.s32.totalorder %s3889_s12, 15  ;;  %v3699_v3 = vld [vmem:[%s4658_s3 + $0x30] sm:$0xff]   ;;  %v3701_v5 = vld [vmem:[%s4658_s3 + $0x28] sm:$0xff]   ;;  %s2890_s10 = sadd.s32 4294967295, %s3889_s12 }
  0x10   : > { %3384 = vmatprep.subr.bf16.mxu1 %v3697_v1  ;;  %3353 = vmatpush3.bf16.msra.mxu0 %v3696_v0  ;;  %s4694_s28 = smov (!%p432_p5, %s3794_s28), 1  ;;  %v3702_v6 = vld [vmem:[%s4658_s3 + $0x60] sm:$0xff]   ;;  %p444_p7 = scmp.gt.s32.totalorder %s2890_s10, 0  ;;  %v3704_v8 = vld [vmem:[%s4658_s3 + $0x58] sm:$0xff]   ;;  %v3930_v10 = vstv %s2890_s10  ;;  %v3706_v11 = vld [vmem:[%s4658_s3 + $0x50] sm:$0xff]  }
  0x11   : > { %3385 = vmatpush3.bf16.msra.mxu1 %v3697_v1  ;;  %3354 = vmatprep.subr.bf16.mxu0 %v3698_v2  ;;  %s435_s21 = scalar_select %p434_p6, %s3889_s12, 15  ;;  %v3703_v7 = vld [vmem:[%s4658_s3 + $0x20] sm:$0xff]   ;;  %v3705_v9 = vld [vmem:[%s4658_s3 + $0x18] sm:$0xff]   ;;  %vm528_vm0 = vcmp.ge.s32.totalorder %v3930_v10, 0  ;;  %vm538_vm1 = vcmp.lt.s32.totalorder %v3930_v10, 16  ;;  %v3707_v12 = vld [vmem:[%s4658_s3 + $0x10] sm:$0xff]  }
  0x12   : > { %3386 = vmatprep.subr.bf16.mxu1 %v3699_v3  ;;  %s3911_s24 = sshll.u32 %s4694_s28, 5  ;;  %p2891_p8 = scmp.lt.s32.totalorder %s2890_s10, 15  ;;  %vm3948_vm2 = vmand %vm528_vm0, %vm538_vm1  ;;  %v519_v15 = vadd.s32 1, %v3930_v10  ;;  %v3708_v16 = vld [vmem:[%s4658_s3 + $0x48] sm:$0xff]   ;;  %v520_v18 = vadd.s32 2, %v3930_v10  ;;  %v3710_v27 = vld [vmem:[%s4658_s3 + $0x40] sm:$0xff]  }
  0x13   : > { %s2886_s25 = sshll.u32 %s435_s21, 1  ;;  %v3709_v21 = vld [vmem:[%s4658_s3 + $0x8] sm:$0xff]   ;;  %vm739_vm9 = vsmask.f32 256  ;;  %v3711_v34 = vld [vmem:[%s4658_s3] sm:$0xff]   ;;  %v521_v41 = vadd.s32 3, %v3930_v10 }
  0x14   : > { %3355 = vmatpush3.bf16.msra.mxu0 %v3698_v2  ;;  %s3914_s26 = sadd.s32 %s3911_s24, %s2886_s25  ;;  %vm529_vm3 = vcmp.ge.s32.totalorder %v519_v15, 0  ;;  %vm539_vm4 = vcmp.lt.s32.totalorder %v519_v15, 16  ;;  %vm530_vm6 = vcmp.ge.s32.totalorder %v520_v18, 0  ;;  %vm540_vm8 = vcmp.lt.s32.totalorder %v520_v18, 16  ;;  %vm3979_vm11 = vmand %vm738_vm7, %vm739_vm9  ;;  %v3712_v48 = vld [vmem:[%s4658_s3 + $0xb8] sm:$0xff]   ;;  %v3715_v2 = vld [vmem:[%s4658_s3 + $0xf0] sm:$0xff]  }
  0x15   : > { %3387 = vmatpush3.bf16.msra.mxu1 %v3699_v3  ;;  %3356 = vmatprep.subr.bf16.mxu0 %v3700_v4  ;;  %s2888_s16 = sshll.u32 %s3914_s26, 2  ;;  %vm549_vm5 = vmand %vm529_vm3, %vm539_vm4  ;;  %vm777_vm12 = vsmask.f32 7424  ;;  %v3713_v51 = vld [vmem:[%s4658_s3 + $0xf8] sm:$0xff]   ;;  %vm531_vm13 = vcmp.ge.s32.totalorder %v521_v41, 0  ;;  %vm541_vm14 = vcmp.lt.s32.totalorder %v521_v41, 16 }
  0x16   : > { %3388 = vmatprep.subr.bf16.mxu1 %v3701_v5  ;;  %s445_s17 = scalar_select %p444_p7, %s2890_s10, 0  ;;  %vm550_vm10 = vmand %vm530_vm6, %vm540_vm8  ;;  %v522_v15 = vadd.s32 4, %v3930_v10  ;;  %v3718_v41 = vld [vmem:[%s4658_s3 + $0xa0] sm:$0xff]   ;;  %v3754_v38 = vld [vmem:[%s4658_s3 + $0x190] sm:$0xff]  }
  0x17   : > { %s3937_s25 = scalar_lea.vmem %s4655_s0, %s2888_s16  ;;  %vm4023_vm15 = vmand %vm531_vm13, %vm541_vm14  ;;  %s460_s21 = sadd.s32 8, %s3889_s12 }
  0x18   : > { %3357 = vmatpush3.bf16.msra.mxu0 %v3700_v4  ;;  %s4696_s17 = smov (!%p2891_p8, %s445_s17), 15  ;;  %v498_v14 = vld [vmem:[%s3937_s25] sm:$0xf]  ;;  %v499_v17 = vld [vmem:[%s3937_s25 + $0x4] sm:$0xf]  ;;  %vm532_vm0 = vcmp.ge.s32.totalorder %v522_v15, 0 }
  0x19   : > { %3389 = vmatpush3.bf16.msra.mxu1 %v3701_v5  ;;  %3358 = vmatprep.subr.bf16.mxu0 %v3702_v6  ;;  %s2896_s11 = sshll.u32 %s4696_s17, 1  ;;  %v580_v25 = vsel %vm549_vm5, %v498_v14, 0  ;;  %v581_v26 = vsel %vm549_vm5, %v499_v17, 0  ;;  %v500_v33 = vld [vmem:[%s3937_s25 + $0x8] sm:$0xf]  ;;  %vm542_vm1 = vcmp.lt.s32.totalorder %v522_v15, 16 }
  0x1a   : > { %3390 = vmatprep.subr.bf16.mxu1 %v3703_v7  ;;  %s452_s15 = sadd.s32 %s2896_s11, %s3911_s24  ;;  %v2915_v28 = vcombine.low %v580_v25, %v581_v26  ;;  %v501_v36 = vld [vmem:[%s3937_s25 + $0xc] sm:$0xf]  ;;  %v582_v37 = vsel %vm550_vm10, %v500_v33, 0  ;;  %v502_v53 = vld [vmem:[%s3937_s25 + $0x10] sm:$0xf]  ;;  %vm552_vm3 = vmand %vm532_vm0, %vm542_vm1  ;;  %p4224_p9 = scmp.lt.s32.totalorder %s460_s21, 15 }
  0x1b   : > { %s2898_s19 = sshll.u32 %s452_s15, 2  ;;  %v583_v40 = vsel %vm550_vm10, %v501_v36, 0  ;;  %v503_v57 = vld [vmem:[%s3937_s25 + $0x14] sm:$0xf]  ;;  %v504_v13 = vld [vmem:[%s3937_s25 + $0x18] sm:$0xf] }
  0x1c   : > { %3359 = vmatpush3.bf16.msra.mxu0 %v3702_v6  ;;  %s454_s23 = scalar_lea.vmem %s4656_s1, %s2898_s19  ;;  %v656_v31 = vshrl.u32 %v2915_v28, 16  ;;  %v659_v32 = vshll.u32 %v2915_v28, 16  ;;  %v2916_v44 = vcombine.low %v582_v37, %v583_v40  ;;  %v505_v14 = vld [vmem:[%s3937_s25 + $0x1c] sm:$0xf]  ;;  %v3717_v26 = vld [vmem:[%s4658_s3 + $0xe8] sm:$0xff]   ;;  %s4698_s21 = smov (!%p4224_p9, %s460_s21), 15 }
  0x1d   : > { %3391 = vmatpush3.bf16.msra.mxu1 %v3703_v7  ;;  %3360 = vmatprep.subr.bf16.mxu0 %v3704_v8  ;;  %v496_v19 = vld [vmem:[%s454_s23] sm:$0xf]  ;;  %v497_v20 = vld [vmem:[%s454_s23 + $0x4] sm:$0xf]  ;;  %v587_v33 = vsel %vm552_vm3, %v505_v14, 0  ;;  %s4700_s21 = smov (!%p4224_p9, %s4698_s21), 15 }
  0x1e   : > { %3392 = vmatprep.subr.bf16.mxu1 %v3705_v9  ;;  %v578_v22 = vsel %vm3948_vm2, %v496_v19, 0  ;;  %v579_v23 = vsel %vm3948_vm2, %v497_v20, 0  ;;  %v658_v39 = vrot.slane %v656_v31, 7  ;;  %v663_v52 = vshrl.u32 %v2916_v44, 16  ;;  %v3716_v31 = vld [vmem:[%s4658_s3 + $0xa8] sm:$0xff]   ;;  %s2903_s12 = sshll.u32 %s4700_s21, 1 }
  0x1f   : > { %v2914_v24 = vcombine.low %v578_v22, %v579_v23  ;;  %v666_v63 = vshll.u32 %v2916_v44, 16  ;;  %v507_v22 = vld [vmem:[%s3937_s25 + $0x24] sm:$0xf]  ;;  %v524_v44 = vadd.s32 6, %v3930_v10  ;;  %s469_s11 = sadd.s32 %s2903_s12, %s3911_s24  ;;  %s4563_s24 = scalar_lea.vmem %s4662_s7, %s2888_s16 }
  0x20   : > { %3361 = vmatpush3.bf16.msra.mxu0 %v3704_v8  ;;  %v661_v46 = vor.u32 %v659_v32, %v658_v39  ;;  %v3991_v47 = vsel %vm3979_vm11, %v658_v39, 0  ;;  %v665_v60 = vrot.slane %v663_v52, 7  ;;  %v584_v8 = vsel %vm4023_vm15, %v502_v53, 0  ;;  %v508_v52 = vld [vmem:[%s3937_s25 + $0x28] sm:$0xf]  ;;  %s2905_s13 = sshll.u32 %s469_s11, 2 }
  0x21   : > { %3393 = vmatpush3.bf16.msra.mxu1 %v3705_v9  ;;  %3362 = vmatprep.subr.bf16.mxu0 %v3706_v11  ;;  %v649_v29 = vshrl.u32 %v2914_v24, 16  ;;  %v652_v30 = vshll.u32 %v2914_v24, 16  ;;  %v798_v50 = vshll.u32 %v3991_v47, 16  ;;  %v586_v32 = vsel %vm552_vm3, %v504_v13, 0  ;;  %s471_s18 = scalar_lea.vmem %s4657_s2, %s2905_s13  ;;  %p489_p10 = scmp.lt.s32.totalorder %s3790_s27, 1 }
  0x22   : > { %3394 = vmatprep.subr.bf16.mxu1 %v3707_v12  ;;  %v4010_v56 = vsel %vm3979_vm11, 0, %v661_v46  ;;  %v4020_v3 = vsel %vm3979_vm11, %v665_v60, 0  ;;  %v668_v6 = vor.u32 %v666_v63, %v665_v60  ;;  %vm534_vm6 = vcmp.ge.s32.totalorder %v524_v44, 0  ;;  %s2910_s26 = sshll.u32 %s4694_s28, 1 }
  0x23   : > { %v651_v35 = vrot.slane %v649_v29, 7  ;;  %v791_v58 = vshrl.u32 %v4010_v56, 16  ;;  %v793_v59 = vshll.u32 %v4010_v56, 16  ;;  %v800_v1 = vrot.slane %v798_v50, 1  ;;  %s4702_s27 = smov (!%p489_p10, %s3790_s27), 1 }
  0x24   : > { %3363 = vmatpush3.bf16.msra.mxu0 %v3706_v11  ;;  %v810_v7 = vshll.u32 %v4020_v3, 16  ;;  %v3714_v11 = vld [vmem:[%s4658_s3 + $0xb0] sm:$0xff]   ;;  %v4043_v18 = vsel %vm3979_vm11, 0, %v668_v6  ;;  %vm544_vm8 = vcmp.lt.s32.totalorder %v524_v44, 16  ;;  %s492_s16 = sadd.s32 %s2910_s26, %s4702_s27 }
  0x25   : > { %3395 = vmatpush3.bf16.msra.mxu1 %v3707_v12  ;;  %3364 = vmatprep.subr.bf16.mxu0 %v3708_v16  ;;  %v654_v42 = vor.u32 %v652_v30, %v651_v35  ;;  %v3986_v43 = vsel %vm3979_vm11, %v651_v35, 0  ;;  %v795_v0 = vrot.slane %v793_v59, 1  ;;  %v585_v12 = vsel %vm4023_vm15, %v503_v57, 0  ;;  %v509_v57 = vld [vmem:[%s3937_s25 + $0x2c] sm:$0xf]  ;;  %vm4094_vm9 = vmand %vm534_vm6, %vm544_vm8  ;;  %s2911_s19 = sshll.u32 %s492_s16, 1 }
  0x26   : > { %3396 = vmatprep.subr.bf16.mxu1 %v3709_v21  ;;  %v786_v45 = vshll.u32 %v3986_v43, 16  ;;  %v812_v19 = vrot.slane %v810_v7, 1  ;;  %v2917_v20 = vcombine.low %v584_v8, %v585_v12  ;;  %v803_v24 = vshrl.u32 %v4043_v18, 16  ;;  %s494_s20 = scalar_lea.vmem %s4663_s8, %s2911_s19 }
  0x27   : > { %v3998_v49 = vsel %vm3979_vm11, 0, %v654_v42  ;;  %v796_v9 = vor.u32 %v795_v0, %v791_v58  ;;  %v805_v25 = vshll.u32 %v4043_v18, 16  ;;  %v2918_v35 = vcombine.low %v586_v32, %v587_v33 }
  0x28   : > { %3365 = vmatpush3.bf16.msra.mxu0 %v3708_v16  ;;  %v779_v54 = vshrl.u32 %v3998_v49, 16  ;;  %v781_v55 = vshll.u32 %v3998_v49, 16  ;;  %3400 = vmatprep.mubr.bf16.mxu1 %v3998_v49  ;;  %v788_v62 = vrot.slane %v786_v45, 1  ;;  %v523_v16 = vadd.s32 5, %v3930_v10 }
  0x29   : > { %3397 = vmatpush3.bf16.msra.mxu1 %v3709_v21  ;;  %3366 = vmatprep.subr.bf16.mxu0 %v3710_v27  ;;  %v506_v21 = vld [vmem:[%s3937_s25 + $0x20] sm:$0xf]  ;;  %v4048_v23 = vsel %vm777_vm12, %v796_v9, %v800_v1  ;;  %v673_v28 = vshll.u32 %v2917_v20, 16  ;;  %v807_v29 = vrot.slane %v805_v25, 1  ;;  %v677_v50 = vshrl.u32 %v2918_v35, 16  ;;  %v3720_v9 = vld [vmem:[%s4658_s3 + $0x98] sm:$0xff]  }
  0x2a   : > { %3398 = vmatprep.subr.bf16.mxu1 %v3711_v34  ;;  %v783_v61 = vrot.slane %v781_v55, 1  ;;  %vm533_vm2 = vcmp.ge.s32.totalorder %v523_v16, 0  ;;  %vm543_vm4 = vcmp.lt.s32.totalorder %v523_v16, 16  ;;  %v525_v0 = vadd.s32 7, %v3930_v10  ;;  %v510_v16 = vld [vmem:[%s3937_s25 + $0x30] sm:$0xf] }
  0x2b   : > { %vm553_vm5 = vmand %vm533_vm2, %vm543_vm4  ;;  %v679_v60 = vrot.slane %v677_v50, 7  ;;  %v591_v15 = vsel %vm4094_vm9, %v509_v57, 0  ;;  %vm1205_vm15 = vcmask 1046528  }
  0x2c   : > { %3367 = vmatpush3.bf16.msra.mxu0 %v3710_v27  ;;  %v784_v5 = vor.u32 %v783_v61, %v779_v54  ;;  %v670_v27 = vshrl.u32 %v2917_v20, 16  ;;  %v588_v36 = vsel %vm553_vm5, %v506_v21, 0  ;;  %v589_v37 = vsel %vm553_vm5, %v507_v22, 0  ;;  %v3721_v61 = vld [vmem:[%s4658_s3 + $0xd8] sm:$0xff]   ;;  %v511_v21 = vld [vmem:[%s3937_s25 + $0x34] sm:$0xf] }
  0x2d   : > { %3399 = vmatpush3.bf16.msra.mxu1 %v3711_v34  ;;  %3416 = vmatprep.subr.bf16.mxu0 %v3712_v48  ;;  %v808_v34 = vor.u32 %v807_v29, %v803_v24  ;;  %v2919_v42 = vcombine.low %v588_v36, %v589_v37  ;;  %v4091_v4 = vsel %vm3979_vm11, %v679_v60, 0  ;;  %v3722_v29 = vld [vmem:[%s4658_s3 + $0x90] sm:$0xff]   ;;  %vm535_vm10 = vcmp.ge.s32.totalorder %v525_v0, 0 }
  0x2e   : > { %3448 = vmatprep.subr.bf16.mxu1 %v3713_v51  ;;  %v789_v17 = vsel %vm777_vm12, %v784_v5, %v788_v62  ;;  %v672_v30 = vrot.slane %v670_v27, 7  ;;  %v834_v6 = vshll.u32 %v4091_v4, 16  ;;  %v3723_v27 = vld [vmem:[%s4658_s3 + $0xd0] sm:$0xff]   ;;  %vm545_vm13 = vcmp.lt.s32.totalorder %v525_v0, 16 }
  0x2f   : > { %3368 = vmatprep.mubr.bf16.mxu0 %v789_v17  ;;  %v4069_v45 = vsel %vm777_vm12, %v808_v34, %v812_v19  ;;  %v684_v54 = vshrl.u32 %v2919_v42, 16  ;;  %v687_v55 = vshll.u32 %v2919_v42, 16  ;;  %vm555_vm14 = vmand %vm535_vm10, %vm545_vm13 }
  0x30   : > { %3401 = vmatmul.mubr.bf16.vlgmr.msra.gmra.mxu1 %v4010_v56  ;;  %3369 = vmatmul.mubr.bf16.vlgmr.msra.gmra.mxu0 %v4048_v23  ;;  %v675_v39 = vor.u32 %v673_v28, %v672_v30  ;;  %v4062_v40 = vsel %vm3979_vm11, %v672_v30, 0  ;;  %v836_v24 = vrot.slane %v834_v6, 1  ;;  %v592_v36 = vsel %vm555_vm14, %v510_v16, 0 }
  0x31   : > { %3449 = vmatpush3.bf16.msra.mxu1 %v3713_v51  ;;  %3404 = vmatprep.mubr.bf16.mxu1 %v4043_v18  ;;  %v822_v46 = vshll.u32 %v4062_v40, 16  ;;  %v680_v51 = vshll.u32 %v2918_v35, 16  ;;  %v686_v63 = vrot.slane %v684_v54, 7 }
  0x32   : > { %3450 = vmatprep.subr.bf16.mxu1 %v3715_v2  ;;  %3417 = vmatpush3.bf16.msra.mxu0 %v3712_v48  ;;  %v3719_v48 = vld [vmem:[%s4658_s3 + $0xe0] sm:$0xff]   ;;  %v4079_v53 = vsel %vm3979_vm11, 0, %v675_v39  ;;  %v593_v39 = vsel %vm555_vm14, %v511_v21, 0 }
  0x33   : > { %3418 = vmatprep.subr.bf16.mxu0 %v3714_v11  ;;  %3372 = vmatprep.mubr.bf16.mxu0 %v4069_v45  ;;  %v815_v58 = vshrl.u32 %v4079_v53, 16  ;;  %v817_v59 = vshll.u32 %v4079_v53, 16  ;;  %v824_v62 = vrot.slane %v822_v46, 1  ;;  %v689_v7 = vor.u32 %v687_v55, %v686_v63 }
  0x34   : > { %v4101_v8 = vsel %vm3979_vm11, %v686_v63, 0  ;;  %v2921_v46 = vcombine.low %v592_v36, %v593_v39  ;;  %v1215_v39 = vrot.slane %v4079_v53, 1 }
  0x35   : > { %3451 = vmatpush3.bf16.msra.mxu1 %v3715_v2  ;;  %v819_v1 = vrot.slane %v817_v59, 1  ;;  %v682_v2 = vor.u32 %v680_v51, %v679_v60  ;;  %v846_v14 = vshll.u32 %v4101_v8, 16  ;;  %v4121_v20 = vsel %vm3979_vm11, 0, %v689_v7  ;;  %v3729_v7 = vld [vmem:[%s4658_s3 + $0x178] sm:$0xff]  }
  0x36   : > { %3452 = vmatprep.subr.bf16.mxu1 %v3717_v26  ;;  %3419 = vmatpush3.bf16.msra.mxu0 %v3714_v11  ;;  %v590_v11 = vsel %vm4094_vm9, %v508_v52, 0  ;;  %v839_v25 = vshrl.u32 %v4121_v20, 16  ;;  %v698_v54 = vshrl.u32 %v2921_v46, 16  ;;  %v701_v55 = vshll.u32 %v2921_v46, 16  ;;  %v3732_v46 = vld [vmem:[%s4658_s3 + $0x128] sm:$0xff]  }
  0x37   : > { %3420 = vmatprep.subr.bf16.mxu0 %v3716_v31  ;;  %v820_v12 = vor.u32 %v819_v1, %v815_v58  ;;  %v4110_v13 = vsel %vm3979_vm11, 0, %v682_v2  ;;  %v2920_v30 = vcombine.low %v590_v11, %v591_v15  ;;  %v848_v32 = vrot.slane %v846_v14, 1  ;;  %v3727_v58 = vld [vmem:[%s4658_s3 + $0xc0] sm:$0xff]  }
  0x38   : > { %3405 = vmatmul.mubr.bf16.gmra.mxu1 %v4079_v53  ;;  %v827_v17 = vshrl.u32 %v4110_v13, 16  ;;  %v829_v19 = vshll.u32 %v4110_v13, 16  ;;  %v700_v60 = vrot.slane %v698_v54, 7  ;;  %v1206_v11 = vrot.slane %v3998_v49, 1 }
  0x39   : > { %3453 = vmatpush3.bf16.msra.mxu1 %v3717_v26  ;;  %3408 = vmatprep.mubr.bf16.mxu1 %v4110_v13  ;;  %v4125_v22 = vsel %vm777_vm12, %v820_v12, %v824_v62  ;;  %v841_v26 = vshll.u32 %v4121_v20, 16  ;;  %v691_v34 = vshrl.u32 %v2920_v30, 16  ;;  %v694_v35 = vshll.u32 %v2920_v30, 16  ;;  %v3728_v12 = vld [vmem:[%s4658_s3 + $0x138] sm:$0xff]  }
  0x3a   : > { %3421 = vmatpush3.bf16.msra.mxu0 %v3716_v31  ;;  %3454 = vmatprep.subr.bf16.mxu1 %v3719_v48  ;;  %v831_v28 = vrot.slane %v829_v19, 1  ;;  %v703_v0 = vor.u32 %v701_v55, %v700_v60  ;;  %v4171_v1 = vsel %vm3979_vm11, %v700_v60, 0  ;;  %v1210_v30 = vrot.slane %v3991_v47, 1  ;;  %v3733_v47 = vld [vmem:[%s4658_s3 + $0x168] sm:$0xff]  }
  0x3b   : > { %3422 = vmatprep.subr.bf16.mxu0 %v3718_v41  ;;  %3373 = vmatmul.mubr.bf16.gmra.mxu0 %v4125_v22  ;;  %v843_v31 = vrot.slane %v841_v26, 1  ;;  %v693_v44 = vrot.slane %v691_v34, 7  ;;  %v870_v6 = vshll.u32 %v4171_v1, 16  ;;  %v513_v26 = vld [vmem:[%s3937_s25 + $0x3c] sm:$0xf] }
  0x3c   : > { %v832_v33 = vor.u32 %v831_v28, %v827_v17  ;;  %v1207_v17 = vrot.slane %v3986_v43, 1 }
  0x3d   : > { %3455 = vmatpush3.bf16.msra.mxu1 %v3719_v48  ;;  %v844_v37 = vor.u32 %v843_v31, %v839_v25  ;;  %v3724_v48 = vld [vmem:[%s4658_s3 + $0x88] sm:$0xff]   ;;  %v696_v51 = vor.u32 %v694_v35, %v693_v44  ;;  %v4152_v52 = vsel %vm3979_vm11, %v693_v44, 0  ;;  %v872_v21 = vrot.slane %v870_v6, 1 }
  0x3e   : > { %3423 = vmatpush3.bf16.msra.mxu0 %v3718_v41  ;;  %3456 = vmatprep.subr.bf16.mxu1 %v3721_v61  ;;  %v3725_v41 = vld [vmem:[%s4658_s3 + $0xc8] sm:$0xff]   ;;  %v4141_v42 = vsel %vm777_vm12, %v832_v33, %v836_v24  ;;  %v858_v57 = vshll.u32 %v4152_v52, 16  ;;  %v512_v24 = vld [vmem:[%s3937_s25 + $0x38] sm:$0xf]  ;;  %v1208_v43 = vsel %vm1205_vm15, %v1206_v11, %v1207_v17  ;;  %v1209_v31 = vrot.slane %v4010_v56, 1 }
  0x3f   : > { %3424 = vmatprep.subr.bf16.mxu0 %v3720_v9  ;;  %3376 = vmatprep.mubr.bf16.mxu0 %v4141_v42  ;;  %v4148_v50 = vsel %vm777_vm12, %v844_v37, %v848_v32  ;;  %v4161_v59 = vsel %vm3979_vm11, 0, %v696_v51  ;;  %v1212_v32 = vrot.slane %v4043_v18, 1  ;;  %v1213_v33 = vrot.slane %v4020_v3, 1  ;;  %v3730_v37 = vld [vmem:[%s4658_s3 + $0x130] sm:$0xff]   ;;  %v514_v17 = vld [vmem:[%s471_s18] sm:$0xf] }
  0x40   : > { %3409 = vmatmul.mubr.bf16.gmra.mxu1 %v4121_v20  ;;  %v851_v62 = vshrl.u32 %v4161_v59, 16  ;;  %v853_v63 = vshll.u32 %v4161_v59, 16  ;;  %v860_v5 = vrot.slane %v858_v57, 1  ;;  %v1216_v44 = vrot.slane %v4062_v40, 1  ;;  %v3737_v40 = vld [vmem:[%s4658_s3 + $0x158] sm:$0xff]  }
  0x41   : > { %3457 = vmatpush3.bf16.msra.mxu1 %v3721_v61  ;;  %v3726_v61 = vld [vmem:[%s4658_s3 + $0x80] sm:$0xff]   ;;  %3412 = vmatprep.mubr.bf16.mxu1 %v4161_v59  ;;  %v4222_v3 = vsel %vm1205_vm15, %v1212_v32, %v1213_v33  ;;  %v1219_v51 = vrot.slane %v4091_v4, 1  ;;  %v3747_v32 = vld [vmem:[%s4658_s3 + $0x1f0] sm:$0xff]  }
  0x42   : > { %3425 = vmatpush3.bf16.msra.mxu0 %v3720_v9  ;;  %3458 = vmatprep.subr.bf16.mxu1 %v3723_v27  ;;  %v855_v2 = vrot.slane %v853_v63, 1  ;;  %v4179_v9 = vsel %vm3979_vm11, 0, %v703_v0  ;;  %v4248_v55 = vsel %vm1205_vm15, %v1215_v39, %v1216_v44  ;;  %v3734_v4 = vld [vmem:[%s4658_s3 + $0x120] sm:$0xff]   ;;  %v3736_v63 = vld [vmem:[%s4658_s3 + $0x118] sm:$0xff]   ;;  %v3739_v0 = vld [vmem:[%s4658_s3 + $0x150] sm:$0xff]  }
  0x43   : > { %3426 = vmatprep.subr.bf16.mxu0 %v3722_v29  ;;  %3377 = vmatmul.mubr.bf16.gmra.mxu0 %v4148_v50  ;;  %v863_v15 = vshrl.u32 %v4179_v9, 16  ;;  %v865_v16 = vshll.u32 %v4179_v9, 16  ;;  %v3746_v39 = vld [vmem:[%s4658_s3 + $0x1b0] sm:$0xff]   ;;  %v3748_v44 = vld [vmem:[%s4658_s3 + $0x1a8] sm:$0xff]  }
  0x44   : > { %v856_v14 = vor.u32 %v855_v2, %v851_v62  ;;  %v1222_v62 = vrot.slane %v4101_v8, 1  ;;  %v527_v2 = vadd.s32 9, %v3930_v10  ;;  %v1224_v8 = vrot.slane %v4161_v59, 1 }
  0x45   : > { %3459 = vmatpush3.bf16.msra.mxu1 %v3723_v27  ;;  %v867_v19 = vrot.slane %v865_v16, 1  ;;  %v526_v27 = vadd.s32 8, %v3930_v10  ;;  %v1228_v16 = vrot.slane %v4171_v1, 1  ;;  %v3745_v1 = vld [vmem:[%s4658_s3 + $0x1f8] sm:$0xff]  }
  0x46   : > { %3427 = vmatpush3.bf16.msra.mxu0 %v3722_v29  ;;  %3460 = vmatprep.subr.bf16.mxu1 %v3725_v41  ;;  %v4191_v49 = vsel %vm777_vm12, %v856_v14, %v860_v5  ;;  %v3731_v29 = vld [vmem:[%s4658_s3 + $0x170] sm:$0xff]   ;;  %v1225_v5 = vrot.slane %v4152_v52, 1  ;;  %vm537_vm3 = vcmp.ge.s32.totalorder %v527_v2, 0  ;;  %vm547_vm4 = vcmp.lt.s32.totalorder %v527_v2, 16  ;;  %v3743_v14 = vld [vmem:[%s4658_s3 + $0x140] sm:$0xff]  }
  0x47   : > { %3428 = vmatprep.subr.bf16.mxu0 %v3724_v48  ;;  %3380 = vmatprep.mubr.bf16.mxu0 %v4191_v49  ;;  %v868_v25 = vor.u32 %v867_v19, %v863_v15  ;;  %vm536_vm0 = vcmp.ge.s32.totalorder %v526_v27, 0  ;;  %vm546_vm1 = vcmp.lt.s32.totalorder %v526_v27, 16  ;;  %v3738_v52 = vld [vmem:[%s4658_s3 + $0x110] sm:$0xff]   ;;  %v1227_v15 = vrot.slane %v4179_v9, 1  ;;  %v515_v19 = vld [vmem:[%s471_s18 + $0x4] sm:$0xf]  ;;  %vm557_vm5 = vmand %vm537_vm3, %vm547_vm4 }
  0x48   : > { %3413 = vmatmul.mubr.bf16.gmra.mxu1 %v4179_v9  ;;  %vm556_vm2 = vmand %vm536_vm0, %vm546_vm1  ;;  %v4290_v11 = vsel %vm1205_vm15, %v1224_v8, %v1225_v5  ;;  %v3759_v8 = vld [vmem:[%s4658_s3 + $0x1c0] sm:$0xff]  }
  0x49   : > { %3461 = vmatpush3.bf16.msra.mxu1 %v3725_v41  ;;  %3464 = vmatprep.mubr.bf16.mxu1 %v4010_v56  ;;  %v4199_v28 = vsel %vm777_vm12, %v868_v25, %v872_v21  ;;  %v594_v34 = vsel %vm556_vm2, %v512_v24, 0  ;;  %v595_v35 = vsel %vm556_vm2, %v513_v26, 0  ;;  %v4216_v56 = vsel %vm1205_vm15, %v1209_v31, %v1210_v30  ;;  %v3735_v41 = vld [vmem:[%s4658_s3 + $0x160] sm:$0xff]   ;;  %v3740_v25 = vld [vmem:[%s4658_s3 + $0x108] sm:$0xff]  }
  0x4a   : > { %3429 = vmatpush3.bf16.msra.mxu0 %v3724_v48  ;;  %3462 = vmatprep.subr.bf16.mxu1 %v3727_v58  ;;  %v2922_v36 = vcombine.low %v594_v34, %v595_v35  ;;  %v1218_v48 = vrot.slane %v4110_v13, 1  ;;  %v596_v21 = vsel %vm557_vm5, %v514_v17, 0  ;;  %v597_v24 = vsel %vm557_vm5, %v515_v19, 0  ;;  %v3742_v30 = vld [vmem:[%s4658_s3 + $0x100] sm:$0xff]  }
  0x4b   : > { %3430 = vmatprep.subr.bf16.mxu0 %v3726_v61  ;;  %3381 = vmatmul.mubr.bf16.gmra.mxu0 %v4199_v28  ;;  %v2923_v26 = vcombine.low %v596_v21, %v597_v24 }
  0x4c   : > { %3432 = vmatprep.mubr.bf16.mxu0 %v1208_v43  ;;  %v705_v54 = vshrl.u32 %v2922_v36, 16  ;;  %v4254_v57 = vsel %vm1205_vm15, %v1218_v48, %v1219_v51  ;;  %v708_v60 = vshll.u32 %v2922_v36, 16  ;;  %v3744_v36 = vld [vmem:[%s4658_s3 + $0x1b8] sm:$0xff]   ;;  %v3750_v48 = vld [vmem:[%s4658_s3 + $0x1a0] sm:$0xff]   ;;  %v3755_v51 = vld [vmem:[%s4658_s3 + $0x1d0] sm:$0xff]  }
  0x4d   : > { %3463 = vmatpush3.bf16.msra.mxu1 %v3727_v58  ;;  %v1221_v58 = vrot.slane %v4121_v20, 1  ;;  %v712_v27 = vshrl.u32 %v2923_v26, 16  ;;  %v715_v43 = vshll.u32 %v2923_v26, 16 }
  0x4e   : > { %3431 = vmatpush3.bf16.msra.mxu0 %v3726_v61  ;;  %3512 = vmatprep.subr.bf16.mxu1 %v3729_v7  ;;  %v4257_v61 = vrot.slane %v705_v54, 7 }
  0x4f   : > { %3480 = vmatprep.subr.bf16.mxu0 %v3728_v12  ;;  %v4281_v10 = vsel %vm1205_vm15, %v1221_v58, %v1222_v62  ;;  %v714_v31 = vrot.slane %v712_v27, 7  ;;  %v3757_v62 = vld [vmem:[%s4658_s3 + $0x1c8] sm:$0xff]  }
  0x50   : > { %3465 = vmatmul.mubr.bf16.vlgmr.msra.gmra.mxu1 %v4043_v18  ;;  %v710_v6 = vor.u32 %v708_v60, %v4257_v61 }
  0x51   : > { %3513 = vmatpush3.bf16.msra.mxu1 %v3729_v7  ;;  %3468 = vmatprep.mubr.bf16.mxu1 %v4079_v53  ;;  %v3741_v7 = vld [vmem:[%s4658_s3 + $0x148] sm:$0xff]   ;;  %v717_v33 = vor.u32 %v715_v43, %v714_v31  ;;  %v4323_v34 = vsel %vm3979_vm11, %v714_v31, 0 }
  0x52   : > { %3514 = vmatprep.subr.bf16.mxu1 %v3731_v29  ;;  %v2341_v35 = vrot.slane %v4323_v34, 1 }
  0x53   : > { %3433 = vmatmul.mubr.bf16.vlgmr.msra.gmra.mxu0 %v4216_v56 }
  0x54   : > { %3481 = vmatpush3.bf16.msra.mxu0 %v3728_v12  ;;  %3436 = vmatprep.mubr.bf16.mxu0 %v4222_v3  ;;  %v4294_v12 = vsel %vm3979_vm11, 0, %v710_v6 }
  0x55   : > { %3515 = vmatpush3.bf16.msra.mxu1 %v3731_v29  ;;  %3482 = vmatprep.subr.bf16.mxu0 %v3730_v37  ;;  %v4312_v29 = vsel %vm1205_vm15, %v1227_v15, %v1228_v16  ;;  %v1597_v54 = vshll.u32 %v4294_v12, 16  ;;  %v1787_v58 = vrot.slane %v4294_v12, 1  ;;  %v3758_v15 = vld [vmem:[%s4658_s3 + $0x180] sm:$0xff]   ;;  %v3762_v16 = vld [vmem:[%s4658_s3 + $0x228] sm:$0xff]  }
  0x56   : > { %3516 = vmatprep.subr.bf16.mxu1 %v3733_v47 }
  0x58   : > { %3469 = vmatmul.mubr.bf16.gmra.mxu1 %v4110_v13  ;;  %3483 = vmatpush3.bf16.msra.mxu0 %v3730_v37 }
  0x59   : > { %3517 = vmatpush3.bf16.msra.mxu1 %v3733_v47  ;;  %3472 = vmatprep.mubr.bf16.mxu1 %v4121_v20  ;;  %v4333_v47 = vsel %vm3979_vm11, 0, %v717_v33 }
  0x5a   : > { %3518 = vmatprep.subr.bf16.mxu1 %v3735_v41  ;;  %3484 = vmatprep.subr.bf16.mxu0 %v3732_v46 }
  0x5b   : > { %3437 = vmatmul.mubr.bf16.gmra.mxu0 %v4248_v55 }
  0x5c   : > { %3485 = vmatpush3.bf16.msra.mxu0 %v3732_v46  ;;  %3440 = vmatprep.mubr.bf16.mxu0 %v4254_v57  ;;  %v3753_v46 = vld [vmem:[%s4658_s3 + $0x1d8] sm:$0xff]  }
  0x5d   : > { %3519 = vmatpush3.bf16.msra.mxu1 %v3735_v41  ;;  %3486 = vmatprep.subr.bf16.mxu0 %v3734_v4  ;;  %v3751_v41 = vld [vmem:[%s4658_s3 + $0x1e0] sm:$0xff]  }
  0x5e   : > { %3520 = vmatprep.subr.bf16.mxu1 %v3737_v40 }
  0x60   : > { %3473 = vmatmul.mubr.bf16.gmra.mxu1 %v4161_v59  ;;  %3487 = vmatpush3.bf16.msra.mxu0 %v3734_v4  ;;  %v759_v4 = vsel %vm3979_vm11, %v4257_v61, 0 }
  0x61   : > { %3521 = vmatpush3.bf16.msra.mxu1 %v3737_v40  ;;  %3476 = vmatprep.mubr.bf16.mxu1 %v4179_v9  ;;  %v3752_v40 = vld [vmem:[%s4658_s3 + $0x198] sm:$0xff]   ;;  %v1788_v60 = vrot.slane %v759_v4, 1  ;;  %v1602_v2 = vshll.u32 %v759_v4, 16 }
  0x62   : > { %3522 = vmatprep.subr.bf16.mxu1 %v3739_v0  ;;  %3488 = vmatprep.subr.bf16.mxu0 %v3736_v63 }
  0x63   : > { %3441 = vmatmul.mubr.bf16.gmra.mxu0 %v4281_v10  ;;  %v4385_v61 = vsel %vm1205_vm15, %v1787_v58, %v1788_v60  ;;  %v1604_v6 = vrot.slane %v1602_v2, 1 }
  0x64   : > { %3489 = vmatpush3.bf16.msra.mxu0 %v3736_v63  ;;  %3444 = vmatprep.mubr.bf16.mxu0 %v4290_v11  ;;  %v1595_v63 = vshrl.u32 %v4294_v12, 16 }
  0x65   : > { %3523 = vmatpush3.bf16.msra.mxu1 %v3739_v0  ;;  %3490 = vmatprep.subr.bf16.mxu0 %v3738_v52  ;;  %v1599_v0 = vrot.slane %v1597_v54, 1 }
  0x66   : > { %3524 = vmatprep.subr.bf16.mxu1 %v3741_v7 }
  0x67   : > { %v1600_v5 = vor.u32 %v1599_v0, %v1595_v63 }
  0x68   : > { %3477 = vmatmul.mubr.bf16.gmra.mxu1 %v4294_v12  ;;  %3491 = vmatpush3.bf16.msra.mxu0 %v3738_v52  ;;  %v3760_v52 = vld [vmem:[%s4658_s3 + $0x238] sm:$0xff]  }
  0x69   : > { %3525 = vmatpush3.bf16.msra.mxu1 %v3741_v7  ;;  %3528 = vmatprep.mubr.bf16.mxu1 %v4216_v56  ;;  %v2340_v56 = vrot.slane %v4333_v47, 1  ;;  %v3756_v7 = vld [vmem:[%s4658_s3 + $0x188] sm:$0xff]  }
  0x6a   : > { %3526 = vmatprep.subr.bf16.mxu1 %v3743_v14  ;;  %3492 = vmatprep.subr.bf16.mxu0 %v3740_v25 }
  0x6b   : > { %3445 = vmatmul.mubr.bf16.gmra.mxu0 %v4312_v29  ;;  %v4341_v37 = vsel %vm1205_vm15, %v2340_v56, %v2341_v35 }
  0x6c   : > { %3493 = vmatpush3.bf16.msra.mxu0 %v3740_v25  ;;  %3496 = vmatprep.mubr.bf16.mxu0 %v4048_v23  ;;  %v3749_v23 = vld [vmem:[%s4658_s3 + $0x1e8] sm:$0xff]  }
  0x6d   : > { %3527 = vmatpush3.bf16.msra.mxu1 %v3743_v14  ;;  %3494 = vmatprep.subr.bf16.mxu0 %v3742_v30  ;;  %v1605_v14 = vsel %vm777_vm12, %v1600_v5, %v1604_v6 }
  0x6e   : > { %3576 = vmatprep.subr.bf16.mxu1 %v3745_v1 }
  0x70   : > { %3529 = vmatmul.mubr.bf16.vlgmr.msra.gmra.mxu1 %v4222_v3  ;;  %3495 = vmatpush3.bf16.msra.mxu0 %v3742_v30 }
  0x71   : > { %3577 = vmatpush3.bf16.msra.mxu1 %v3745_v1  ;;  %3532 = vmatprep.mubr.bf16.mxu1 %v4248_v55 }
  0x72   : > { %3578 = vmatprep.subr.bf16.mxu1 %v3747_v32  ;;  %3544 = vmatprep.subr.bf16.mxu0 %v3744_v36 }
  0x73   : > { %3497 = vmatmul.mubr.bf16.vlgmr.msra.gmra.mxu0 %v4069_v45 }
  0x74   : > { %3545 = vmatpush3.bf16.msra.mxu0 %v3744_v36  ;;  %3500 = vmatprep.mubr.bf16.mxu0 %v4125_v22 }
  0x75   : > { %3579 = vmatpush3.bf16.msra.mxu1 %v3747_v32  ;;  %3546 = vmatprep.subr.bf16.mxu0 %v3746_v39 }
  0x76   : > { %3580 = vmatprep.subr.bf16.mxu1 %v3749_v23 }
  0x78   : > { %3533 = vmatmul.mubr.bf16.gmra.mxu1 %v4254_v57  ;;  %3547 = vmatpush3.bf16.msra.mxu0 %v3746_v39 }
  0x79   : > { %3581 = vmatpush3.bf16.msra.mxu1 %v3749_v23  ;;  %3536 = vmatprep.mubr.bf16.mxu1 %v4281_v10 }
  0x7a   : > { %3582 = vmatprep.subr.bf16.mxu1 %v3751_v41  ;;  %3548 = vmatprep.subr.bf16.mxu0 %v3748_v44 }
  0x7b   : > { %3501 = vmatmul.mubr.bf16.gmra.mxu0 %v4141_v42 }
  0x7c   : > { %3549 = vmatpush3.bf16.msra.mxu0 %v3748_v44  ;;  %3504 = vmatprep.mubr.bf16.mxu0 %v4148_v50 }
  0x7d   : > { %3583 = vmatpush3.bf16.msra.mxu1 %v3751_v41  ;;  %3550 = vmatprep.subr.bf16.mxu0 %v3750_v48 }
  0x7e   : > { %3584 = vmatprep.subr.bf16.mxu1 %v3753_v46 }
  0x80   : > { %3537 = vmatmul.mubr.bf16.gmra.mxu1 %v4290_v11  ;;  %3551 = vmatpush3.bf16.msra.mxu0 %v3750_v48 }
  0x81   : > { %3585 = vmatpush3.bf16.msra.mxu1 %v3753_v46  ;;  %3540 = vmatprep.mubr.bf16.mxu1 %v4312_v29 }
  0x82   : > { %3586 = vmatprep.subr.bf16.mxu1 %v3755_v51  ;;  %3552 = vmatprep.subr.bf16.mxu0 %v3752_v40 }
  0x83   : > { %3505 = vmatmul.mubr.bf16.gmra.mxu0 %v4191_v49 }
  0x84   : > { %3553 = vmatpush3.bf16.msra.mxu0 %v3752_v40  ;;  %3508 = vmatprep.mubr.bf16.mxu0 %v4199_v28 }
  0x85   : > { %3587 = vmatpush3.bf16.msra.mxu1 %v3755_v51  ;;  %3554 = vmatprep.subr.bf16.mxu0 %v3754_v38 }
  0x86   : > { %3588 = vmatprep.subr.bf16.mxu1 %v3757_v62 }
  0x88   : > { %3541 = vmatmul.mubr.bf16.gmra.mxu1 %v4385_v61  ;;  %3555 = vmatpush3.bf16.msra.mxu0 %v3754_v38 }
  0x89   : > { %3589 = vmatpush3.bf16.msra.mxu1 %v3757_v62  ;;  %3592 = vmatprep.mubr.bf16.mxu1 %v4069_v45  ;;  %v3761_v45 = vld [vmem:[%s4658_s3 + $0x230] sm:$0xff]  }
  0x8a   : > { %3590 = vmatprep.subr.bf16.mxu1 %v3759_v8  ;;  %3556 = vmatprep.subr.bf16.mxu0 %v3756_v7 }
  0x8b   : > { %3509 = vmatmul.mubr.bf16.gmra.mxu0 %v1605_v14 }
  0x8c   : > { %3557 = vmatpush3.bf16.msra.mxu0 %v3756_v7  ;;  %3560 = vmatprep.mubr.bf16.mxu0 %v4043_v18  ;;  %v3763_v18 = vld [vmem:[%s4658_s3 + $0x220] sm:$0xff]  }
  0x8d   : > { %3591 = vmatpush3.bf16.msra.mxu1 %v3759_v8  ;;  %3558 = vmatprep.subr.bf16.mxu0 %v3758_v15 }
  0x8e   : > { %3640 = vmatprep.subr.bf16.mxu1 %v3760_v52 }
  0x90   : > { %3593 = vmatmul.mubr.bf16.vlgmr.msra.gmra.mxu1 %v4125_v22  ;;  %3559 = vmatpush3.bf16.msra.mxu0 %v3758_v15  ;;  %v2150_v22 = vshll.u32 %v4333_v47, 16 }
  0x91   : > { %3648 = vmatpush3.bf16.msra.mxu1 %v3760_v52  ;;  %3596 = vmatprep.mubr.bf16.mxu1 %v4141_v42  ;;  %v2148_v42 = vshrl.u32 %v4333_v47, 16 }
  0x92   : > { %3641 = vmatprep.subr.bf16.mxu1 %v3761_v45  ;;  %3608 = vmatprep.subr.bf16.mxu0 %v3760_v52  ;;  %v2152_v17 = vrot.slane %v2150_v22, 1 }
  0x93   : > { %3561 = vmatmul.mubr.bf16.vlgmr.msra.gmra.mxu0 %v4079_v53  ;;  %v3764_v53 = vld [vmem:[%s4658_s3 + $0x218] sm:$0xff]  }
  0x94   : > { %3609 = vmatpush3.bf16.msra.mxu0 %v3760_v52  ;;  %3564 = vmatprep.mubr.bf16.mxu0 %v4110_v13  ;;  %v2155_v13 = vshll.u32 %v4323_v34, 16 }
  0x95   : > { %3649 = vmatpush3.bf16.msra.mxu1 %v3761_v45  ;;  %3610 = vmatprep.subr.bf16.mxu0 %v3761_v45 }
  0x96   : > { %3642 = vmatprep.subr.bf16.mxu1 %v3762_v16  ;;  %v2157_v19 = vrot.slane %v2155_v13, 1 }
  0x98   : > { %3597 = vmatmul.mubr.bf16.gmra.mxu1 %v4148_v50  ;;  %3611 = vmatpush3.bf16.msra.mxu0 %v3761_v45  ;;  %v3765_v50 = vld [vmem:[%s4658_s3 + $0x210] sm:$0xff]  }
  0x99   : > { %3650 = vmatpush3.bf16.msra.mxu1 %v3762_v16  ;;  %3600 = vmatprep.mubr.bf16.mxu1 %v4191_v49  ;;  %v2153_v49 = vor.u32 %v2152_v17, %v2148_v42 }
  0x9a   : > { %3643 = vmatprep.subr.bf16.mxu1 %v3763_v18  ;;  %3612 = vmatprep.subr.bf16.mxu0 %v3762_v16 }
  0x9b   : > { %3565 = vmatmul.mubr.bf16.gmra.mxu0 %v4121_v20  ;;  %v3766_v20 = vld [vmem:[%s4658_s3 + $0x208] sm:$0xff]   ;;  %v2158_v21 = vsel %vm777_vm12, %v2153_v49, %v2157_v19 }
  0x9c   : > { %3613 = vmatpush3.bf16.msra.mxu0 %v3762_v16  ;;  %3568 = vmatprep.mubr.bf16.mxu0 %v4161_v59  ;;  %v3767_v59 = vld [vmem:[%s4658_s3 + $0x200] sm:$0xff]  }
  0x9d   : > { %3651 = vmatpush3.bf16.msra.mxu1 %v3763_v18  ;;  %3614 = vmatprep.subr.bf16.mxu0 %v3763_v18 }
  0x9e   : > { %3644 = vmatprep.subr.bf16.mxu1 %v3764_v53 }
  0xa0   : > { %3601 = vmatmul.mubr.bf16.gmra.mxu1 %v4199_v28  ;;  %3615 = vmatpush3.bf16.msra.mxu0 %v3763_v18 }
  0xa1   : > { %3652 = vmatpush3.bf16.msra.mxu1 %v3764_v53  ;;  %3604 = vmatprep.mubr.bf16.mxu1 %v1605_v14 }
  0xa2   : > { %3645 = vmatprep.subr.bf16.mxu1 %v3765_v50  ;;  %3616 = vmatprep.subr.bf16.mxu0 %v3764_v53 }
  0xa3   : > { %3569 = vmatmul.mubr.bf16.gmra.mxu0 %v4179_v9 }
  0xa4   : > { %3617 = vmatpush3.bf16.msra.mxu0 %v3764_v53  ;;  %3572 = vmatprep.mubr.bf16.mxu0 %v4294_v12 }
  0xa5   : > { %3653 = vmatpush3.bf16.msra.mxu1 %v3765_v50  ;;  %3618 = vmatprep.subr.bf16.mxu0 %v3765_v50 }
  0xa6   : > { %3646 = vmatprep.subr.bf16.mxu1 %v3766_v20 }
  0xa8   : > { %3605 = vmatmul.mubr.bf16.gmra.mxu1 %v2158_v21  ;;  %3619 = vmatpush3.bf16.msra.mxu0 %v3765_v50 }
  0xa9   : > { %3654 = vmatpush3.bf16.msra.mxu1 %v3766_v20  ;;  %3632 = vmatprep.mubr.bf16.mxu1 %v4290_v11 }
  0xaa   : > { %3647 = vmatprep.subr.bf16.mxu1 %v3767_v59  ;;  %3620 = vmatprep.subr.bf16.mxu0 %v3766_v20 }
  0xab   : > { %3573 = vmatmul.mubr.bf16.gmra.mxu0 %v4333_v47 }
  0xac   : > { %3621 = vmatpush3.bf16.msra.mxu0 %v3766_v20  ;;  %3624 = vmatprep.mubr.bf16.mxu0 %v4222_v3 }
  0xad   : > { %3655 = vmatpush3.bf16.msra.mxu1 %v3767_v59  ;;  %3622 = vmatprep.subr.bf16.mxu0 %v3767_v59 }
  0xb0   : > { %3633 = vmatmul.mubr.bf16.vlgmr.msra.gmra.mxu1 %v4312_v29  ;;  %3623 = vmatpush3.bf16.msra.mxu0 %v3767_v59 }
  0xb1   : > { %3636 = vmatprep.mubr.bf16.mxu1 %v4385_v61 }
  0xb3   : > { %3625 = vmatmul.mubr.bf16.vlgmr.msra.gmra.mxu0 %v4248_v55 }
  0xb4   : > { %3628 = vmatprep.mubr.bf16.mxu0 %v4254_v57 }
  0xb8   : > { %3637 = vmatmul.mubr.bf16.gmra.mxu1 %v4341_v37 }
  0xbb   : > { %3629 = vmatmul.mubr.bf16.gmra.mxu0 %v4281_v10 }
  0xf0   : > { %v3402_v9 = vpop.f32.mrf.mxu1  ;;  %v3370_v11 = vpop.f32.mrf.mxu0 }
  0xf1   : > { %v1135_v12 = vadd.f32 %v3402_v9, %v3370_v11 }
  0xf2   : > { %v1126_v28 = vpop.f32.mrf.mxu1  ;;  %v981_v3 = vpop.f32.mrf.mxu0 }
  0xf3   : > { %v1127_v25 = vadd.f32 %v1126_v28, %v981_v3 }
  0xf4   : > { %v3403_v24 = vpop.f32.mrf.mxu1  ;;  %v3371_v1 = vpop.f32.mrf.mxu0 }
  0xf5   : > { %v1138_v27 = vadd.f32 %v3403_v24, %v3371_v1 }
  0xf6   : > { %v1129_v26 = vpop.f32.mrf.mxu1  ;;  %v984_v43 = vpop.f32.mrf.mxu0 }
  0xf7   : > { %v1130_v29 = vadd.f32 %v1129_v26, %v984_v43 }
  0xf8   : > { %v3406_v30 = vpop.f32.mrf.mxu1 }
  0xfa   : > { %v1142_v55 = vpop.f32.mrf.mxu1 }
  0xfb   : > { %v3374_v32 = vpop.f32.mrf.mxu0 }
  0xfc   : > { %v3407_v31 = vpop.f32.mrf.mxu1  ;;  %v1151_v33 = vadd.f32 %v3406_v30, %v3374_v32 }
  0xfd   : > { %v997_v10 = vpop.f32.mrf.mxu0 }
  0xfe   : > { %v1145_v57 = vpop.f32.mrf.mxu1  ;;  %v1143_v35 = vadd.f32 %v1142_v55, %v997_v10 }
  0xff   : > { %v3375_v47 = vpop.f32.mrf.mxu0 }
 0x100   : > { %v3410_v34 = vpop.f32.mrf.mxu1  ;;  %v1154_v56 = vadd.f32 %v3407_v31, %v3375_v47 }
 0x101   : > { %v1000_v37 = vpop.f32.mrf.mxu0 }
 0x102   : > { %v1158_v36 = vpop.f32.mrf.mxu1  ;;  %v1146_v39 = vadd.f32 %v1145_v57, %v1000_v37 }
 0x103   : > { %v3378_v41 = vpop.f32.mrf.mxu0 }
 0x104   : > { %v3411_v23 = vpop.f32.mrf.mxu1  ;;  %v1167_v44 = vadd.f32 %v3410_v34, %v3378_v41 }
 0x105   : > { %v1013_v48 = vpop.f32.mrf.mxu0 }
 0x106   : > { %v1161_v46 = vpop.f32.mrf.mxu1  ;;  %v1159_v51 = vadd.f32 %v1158_v36, %v1013_v48 }
 0x107   : > { %v3379_v54 = vpop.f32.mrf.mxu0 }
 0x108   : > { %v1170_v40 = vadd.f32 %v3411_v23, %v3379_v54  ;;  %v3414_v4 = vpop.f32.mrf.mxu1 }
 0x109   : > { %v1016_v58 = vpop.f32.mrf.mxu0 }
 0x10a   : > { %v1162_v60 = vadd.f32 %v1161_v46, %v1016_v58  ;;  %v1174_v62 = vpop.f32.mrf.mxu1 }
 0x10b   : > { %v3382_v2 = vpop.f32.mrf.mxu0 }
 0x10c   : > { %v3415_v63 = vpop.f32.mrf.mxu1  ;;  %v1183_v38 = vadd.f32 %v3414_v4, %v3382_v2 }
 0x10d   : > { %v1029_v8 = vpop.f32.mrf.mxu0 }
 0x10e   : > { %v1177_v0 = vpop.f32.mrf.mxu1  ;;  %v1175_v5 = vadd.f32 %v1174_v62, %v1029_v8 }
 0x10f   : > { %v3383_v7 = vpop.f32.mrf.mxu0 }
 0x110   : > { %v3466_v61 = vpop.f32.mrf.mxu1  ;;  %v1186_v52 = vadd.f32 %v3415_v63, %v3383_v7 }
 0x111   : > { %v1032_v15 = vpop.f32.mrf.mxu0 }
 0x112   : > { %v1515_v6 = vpop.f32.mrf.mxu1  ;;  %v4450_v45 = vadd.f32 %v1177_v0, %v1032_v15 }
 0x113   : > { %v3434_v18 = vpop.f32.mrf.mxu0 }
 0x114   : > { %v3467_v14 = vpop.f32.mrf.mxu1  ;;  %v1402_v22 = vadd.f32 %v3434_v18, %v1135_v12 }
 0x115   : > { %v1337_v53 = vpop.f32.mrf.mxu0 }
 0x116   : > { %v1518_v16 = vpop.f32.mrf.mxu1  ;;  %v1580_v17 = vadd.f32 %v3466_v61, %v1402_v22  ;;  %v1400_v13 = vadd.f32 %v1337_v53, %v1127_v25 }
 0x117   : > { %v3435_v50 = vpop.f32.mrf.mxu0 }
 0x118   : > { %v3470_v42 = vpop.f32.mrf.mxu1  ;;  %v1578_v19 = vadd.f32 %v1515_v6, %v1400_v13  ;;  %v1403_v20 = vadd.f32 %v3435_v50, %v1138_v27 }
 0x119   : > { %v1340_v21 = vpop.f32.mrf.mxu0 }
 0x11a   : > { %v1531_v49 = vpop.f32.mrf.mxu1  ;;  %v1581_v9 = vadd.f32 %v3467_v14, %v1403_v20  ;;  %v1401_v28 = vadd.f32 %v1340_v21, %v1130_v29 }
 0x11b   : > { %v3438_v11 = vpop.f32.mrf.mxu0 }
 0x11c   : > { %v3471_v59 = vpop.f32.mrf.mxu1  ;;  %v1579_v3 = vadd.f32 %v1518_v16, %v1401_v28  ;;  %v1406_v26 = vadd.f32 %v3438_v11, %v1151_v33 }
 0x11d   : > { %v1353_v1 = vpop.f32.mrf.mxu0 }
 0x11e   : > { %v1534_v24 = vpop.f32.mrf.mxu1  ;;  %v1584_v30 = vadd.f32 %v3470_v42, %v1406_v26  ;;  %v1404_v12 = vadd.f32 %v1353_v1, %v1143_v35 }
 0x11f   : > { %v3439_v55 = vpop.f32.mrf.mxu0 }
 0x120   : > { %v3474_v43 = vpop.f32.mrf.mxu1  ;;  %v1582_v57 = vadd.f32 %v1531_v49, %v1404_v12  ;;  %v1407_v25 = vadd.f32 %v3439_v55, %v1154_v56 }
 0x121   : > { %v1356_v32 = vpop.f32.mrf.mxu0 }
 0x122   : > { %v1547_v31 = vpop.f32.mrf.mxu1  ;;  %v1585_v10 = vadd.f32 %v3471_v59, %v1407_v25  ;;  %v1405_v27 = vadd.f32 %v1356_v32, %v1146_v39 }
 0x123   : > { %v3442_v36 = vpop.f32.mrf.mxu0 }
 0x124   : > { %v3475_v34 = vpop.f32.mrf.mxu1  ;;  %v1583_v23 = vadd.f32 %v1534_v24, %v1405_v27  ;;  %v1410_v29 = vadd.f32 %v3442_v36, %v1167_v44 }
 0x125   : > { %v1369_v37 = vpop.f32.mrf.mxu0 }
 0x126   : > { %v1550_v47 = vpop.f32.mrf.mxu1  ;;  %v4452_v46 = vadd.f32 %v3474_v43, %v1410_v29  ;;  %v1408_v33 = vadd.f32 %v1369_v37, %v1159_v51 }
 0x127   : > { %v3443_v48 = vpop.f32.mrf.mxu0 }
 0x128   : > { %v3478_v41 = vpop.f32.mrf.mxu1  ;;  %v4454_v35 = vadd.f32 %v1547_v31, %v1408_v33  ;;  %v1411_v4 = vadd.f32 %v3443_v48, %v1170_v40 }
 0x129   : > { %v1372_v58 = vpop.f32.mrf.mxu0 }
 0x12a   : > { %v1563_v54 = vpop.f32.mrf.mxu1  ;;  %v4456_v62 = vadd.f32 %v3475_v34, %v1411_v4  ;;  %v1409_v63 = vadd.f32 %v1372_v58, %v1162_v60 }
 0x12b   : > { %v3446_v39 = vpop.f32.mrf.mxu0 }
 0x12c   : > { %v3479_v56 = vpop.f32.mrf.mxu1  ;;  %v4458_v2 = vadd.f32 %v1550_v47, %v1409_v63  ;;  %v1414_v44 = vadd.f32 %v3446_v39, %v1183_v38 }
 0x12d   : > { %v1385_v61 = vpop.f32.mrf.mxu0 }
 0x12e   : > { %v1566_v0 = vpop.f32.mrf.mxu1  ;;  %v4460_v6 = vadd.f32 %v3478_v41, %v1414_v44  ;;  %v1412_v51 = vadd.f32 %v1385_v61, %v1175_v5 }
 0x12f   : > { %v3447_v7 = vpop.f32.mrf.mxu0 }
 0x130   : > { %v3530_v8 = vpop.f32.mrf.mxu1  ;;  %v4462_v15 = vadd.f32 %v1563_v54, %v1412_v51  ;;  %v1415_v40 = vadd.f32 %v3447_v7, %v1186_v52 }
 0x131   : > { %v1388_v16 = vpop.f32.mrf.mxu0 }
 0x132   : > { %v1890_v14 = vpop.f32.mrf.mxu1  ;;  %v4464_v22 = vadd.f32 %v3479_v56, %v1415_v40  ;;  %v1413_v60 = vadd.f32 %v1388_v16, %v4450_v45 }
 0x133   : > { %v3498_v53 = vpop.f32.mrf.mxu0 }
 0x134   : > { %v3531_v18 = vpop.f32.mrf.mxu1  ;;  %v4467_v13 = vadd.f32 %v1566_v0, %v1413_v60  ;;  %v1771_v38 = vadd.f32 %v3498_v53, %v1580_v17 }
 0x135   : > { %v1706_v50 = vpop.f32.mrf.mxu0 }
 0x136   : > { %v1893_v42 = vpop.f32.mrf.mxu1  ;;  %v4469_v20 = vadd.f32 %v3530_v8, %v1771_v38  ;;  %v1769_v5 = vadd.f32 %v1706_v50, %v1578_v19 }
 0x137   : > { %v3499_v21 = vpop.f32.mrf.mxu0 }
 0x138   : > { %v3534_v49 = vpop.f32.mrf.mxu1  ;;  %v4471_v28 = vadd.f32 %v1890_v14, %v1769_v5  ;;  %v1772_v52 = vadd.f32 %v3499_v21, %v1581_v9 }
 0x139   : > { %v1709_v11 = vpop.f32.mrf.mxu0 }
 0x13a   : > { %v1906_v59 = vpop.f32.mrf.mxu1  ;;  %v4473_v26 = vadd.f32 %v3531_v18, %v1772_v52  ;;  %v1770_v45 = vadd.f32 %v1709_v11, %v1579_v3 }
 0x13b   : > { %v3502_v1 = vpop.f32.mrf.mxu0 }
 0x13c   : > { %v3535_v24 = vpop.f32.mrf.mxu1  ;;  %v4475_v12 = vadd.f32 %v1893_v42, %v1770_v45  ;;  %v1775_v17 = vadd.f32 %v3502_v1, %v1584_v30 }
 0x13d   : > { %v1722_v55 = vpop.f32.mrf.mxu0 }
 0x13e   : > { %v1909_v43 = vpop.f32.mrf.mxu1  ;;  %v4477_v25 = vadd.f32 %v3534_v49, %v1775_v17  ;;  %v1773_v19 = vadd.f32 %v1722_v55, %v1582_v57 }
 0x13f   : > { %v3503_v32 = vpop.f32.mrf.mxu0 }
 0x140   : > { %v3538_v31 = vpop.f32.mrf.mxu1  ;;  %v4479_v27 = vadd.f32 %v1906_v59, %v1773_v19  ;;  %v1776_v9 = vadd.f32 %v3503_v32, %v1585_v10 }
 0x141   : > { %v1725_v36 = vpop.f32.mrf.mxu0 }
 0x142   : > { %v1922_v34 = vpop.f32.mrf.mxu1  ;;  %v4481_v29 = vadd.f32 %v3535_v24, %v1776_v9  ;;  %v1774_v3 = vadd.f32 %v1725_v36, %v1583_v23 }
 0x143   : > { %v3506_v37 = vpop.f32.mrf.mxu0 }
 0x144   : > { %v3539_v47 = vpop.f32.mrf.mxu1  ;;  %v4483_v33 = vadd.f32 %v1909_v43, %v1774_v3  ;;  %v1779_v24 = vadd.f32 %v3506_v37, %v4452_v46 }
 0x145   : > { %v1738_v30 = vpop.f32.mrf.mxu0 }
 0x146   : > { %v1925_v41 = vpop.f32.mrf.mxu1  ;;  %v1777_v43 = vadd.f32 %v1738_v30, %v4454_v35  ;;  %v1963_v9 = vadd.f32 %v3538_v31, %v1779_v24 }
 0x147   : > { %v3507_v54 = vpop.f32.mrf.mxu0 }
 0x148   : > { %v4485_v48 = vpop.f32.mrf.mxu1  ;;  %v1780_v17 = vadd.f32 %v3507_v54, %v4456_v62 }
 0x149   : > { %v1741_v57 = vpop.f32.mrf.mxu0 }
 0x14a   : > { %v4487_v4 = vpop.f32.mrf.mxu1  ;;  %v1778_v32 = vadd.f32 %v1741_v57, %v4458_v2 }
 0x14b   : > { %v3510_v56 = vpop.f32.mrf.mxu0 }
 0x14c   : > { %v4489_v58 = vpop.f32.mrf.mxu1  ;;  %v1783_v35 = vadd.f32 %v3510_v56, %v4460_v6 }
 0x14d   : > { %v1754_v63 = vpop.f32.mrf.mxu0 }
 0x14e   : > { %v4491_v10 = vpop.f32.mrf.mxu1  ;;  %v1781_v62 = vadd.f32 %v1754_v63, %v4462_v15  ;;  %v1967_v56 = vadd.f32 %v4485_v48, %v1783_v35  ;;  %v4545_v48 = vld [vmem:[%s4659_s4] ss:$0 sm:$0xff] }
 0x14f   : > { %v3511_v23 = vpop.f32.mrf.mxu0 }
 0x150   : > { %v4493_v39 = vpop.f32.mrf.mxu1  ;;  %v1784_v54 = vadd.f32 %v3511_v23, %v4464_v22  ;;  %v1965_v63 = vadd.f32 %v4487_v4, %v1781_v62 }
 0x151   : > { %v1757_v44 = vpop.f32.mrf.mxu0 }
 0x152   : > { %v4495_v0 = vpop.f32.mrf.mxu1  ;;  %v1782_v57 = vadd.f32 %v1757_v44, %v4467_v13  ;;  %v1968_v23 = vadd.f32 %v4489_v58, %v1784_v54 }
 0x153   : > { %v3562_v8 = vpop.f32.mrf.mxu0 }
 0x154   : > { %v4497_v61 = vpop.f32.mrf.mxu1 }
 0x155   : > { %v2068_v7 = vpop.f32.mrf.mxu0 }
 0x156   : > { %v4499_v51 = vpop.f32.mrf.mxu1 }
 0x157   : > { %v3563_v40 = vpop.f32.mrf.mxu0 }
 0x158   : > { %v4501_v14 = vpop.f32.mrf.mxu1  ;;  %v2134_v24 = vadd.f32 %v3563_v40, %v4473_v26 }
 0x159   : > { %4673 = vst [vmem:[#allocation2_spill] sm:$0xff] %v4501_v14  ;;  %v2071_v18 = vpop.f32.mrf.mxu0  ;;  %v1962_v14 = vadd.f32 %v1925_v41, %v1778_v32 }
 0x15a   : > { %v4503_v16 = vpop.f32.mrf.mxu1  ;;  %v2132_v15 = vadd.f32 %v2071_v18, %v4475_v12  ;;  %v2325_v4 = vadd.f32 %v4497_v61, %v2134_v24 }
 0x15b   : > { %4674 = vst [vmem:[#allocation3_spill] sm:$0xff] %v4503_v16  ;;  %v4507_v53 = vpop.f32.mrf.mxu0 }
 0x15c   : > { %v4505_v60 = vpop.f32.mrf.mxu1 }
 0x15d   : > { %4675 = vst [vmem:[#allocation4_spill] sm:$0xff] %v4505_v60  ;;  %v4511_v38 = vpop.f32.mrf.mxu0  ;;  %v1964_v60 = vadd.f32 %v3539_v47, %v1780_v17 }
 0x15e   : > { %v4509_v42 = vpop.f32.mrf.mxu1 }
 0x15f   : > { %4676 = vst [vmem:[#allocation5_spill] sm:$0xff] %v4509_v42  ;;  %v4513_v49 = vpop.f32.mrf.mxu0  ;;  %v1961_v42 = vadd.f32 %v1922_v34, %v1777_v43  ;;  %v2133_v34 = vadd.f32 %v3562_v8, %v4469_v20 }
 0x160   : > { %v3602_v50 = vpop.f32.mrf.mxu1  ;;  %v2138_v17 = vadd.f32 %v4513_v49, %v4481_v29 }
 0x161   : > { %v4515_v21 = vpop.f32.mrf.mxu0  ;;  %v2324_v26 = vadd.f32 %v4493_v39, %v2133_v34  ;;  %v2137_v39 = vadd.f32 %v4507_v53, %v4477_v25  ;;  %v2135_v25 = vadd.f32 %v4511_v38, %v4479_v27 }
 0x162   : > { %v2291_v5 = vpop.f32.mrf.mxu1  ;;  %v2136_v38 = vadd.f32 %v4515_v21, %v4483_v33  ;;  %v4679_v21 = vld [vmem:[#allocation2_spill] sm:$0xff]  ;;  %v4680_v34 = vld [vmem:[#allocation3_spill] sm:$0xff] }
 0x163   : > { %v3570_v52 = vpop.f32.mrf.mxu0 }
 0x164   : > { %v3603_v59 = vpop.f32.mrf.mxu1  ;;  %v2141_v16 = vadd.f32 %v3570_v52, %v1963_v9  ;;  %v2131_v52 = vadd.f32 %v2068_v7, %v4471_v28  ;;  %v1966_v28 = vadd.f32 %v4491_v10, %v1782_v57  ;;  %v2323_v10 = vadd.f32 %v4499_v51, %v2132_v15 }
 0x165   : > { %v2100_v45 = vpop.f32.mrf.mxu0 }
 0x166   : > { %v2294_v11 = vpop.f32.mrf.mxu1  ;;  %v2139_v30 = vadd.f32 %v2100_v45, %v1961_v42  ;;  %v2332_v41 = vadd.f32 %v3602_v50, %v2141_v16  ;;  %v4682_v15 = vld [vmem:[#allocation5_spill] sm:$0xff] }
 0x167   : > { %v3571_v55 = vpop.f32.mrf.mxu0 }
 0x168   : > { %v4518_v1 = vpop.f32.mrf.mxu1  ;;  %v2330_v22 = vadd.f32 %v2291_v5, %v2139_v30 }
 0x169   : > { %v2103_v36 = vpop.f32.mrf.mxu0 }
 0x16a   : > { %v4522_v19 = vpop.f32.mrf.mxu1  ;;  %v2140_v47 = vadd.f32 %v2103_v36, %v1962_v14  ;;  %v2322_v14 = vadd.f32 %v4495_v0, %v2131_v52 }
 0x16b   : > { %4677 = vst [vmem:[#allocation6_spill] sm:$0xff] %v4522_v19  ;;  %v3574_v46 = vpop.f32.mrf.mxu0  ;;  %v2142_v19 = vadd.f32 %v3571_v55, %v1964_v60 }
 0x16c   : > { %v4525_v3 = vpop.f32.mrf.mxu1  ;;  %v2331_v7 = vadd.f32 %v2294_v11, %v2140_v47  ;;  %v2145_v58 = vadd.f32 %v3574_v46, %v1967_v56  ;;  %v2326_v47 = vadd.f32 %v4680_v34, %v2135_v25 }
 0x16d   : > { %v2116_v2 = vpop.f32.mrf.mxu0  ;;  %v2333_v13 = vadd.f32 %v3603_v59, %v2142_v19 }
 0x16e   : > { %v4527_v37 = vpop.f32.mrf.mxu1  ;;  %v2143_v50 = vadd.f32 %v2116_v2, %v1965_v63  ;;  %v2336_v55 = vadd.f32 %v4518_v1, %v2145_v58 }
 0x16f   : > { %v3575_v43 = vpop.f32.mrf.mxu0 }
 0x170   : > { %v3634_v31 = vpop.f32.mrf.mxu1  ;;  %v2146_v60 = vadd.f32 %v3575_v43, %v1968_v23 }
 0x171   : > { %v2119_v44 = vpop.f32.mrf.mxu0  ;;  %v2516_v20 = vadd.f32 %v3634_v31, %v2332_v41 }
 0x172   : > { %v2475_v6 = vpop.f32.mrf.mxu1  ;;  %v2144_v19 = vadd.f32 %v2119_v44, %v1966_v28  ;;  %v2337_v36 = vadd.f32 %v4525_v3, %v2146_v60  ;;  %v4678_v30 = vld [vmem:[#allocation6_spill] sm:$0xff]  ;;  %v2328_v3 = vadd.f32 %v4679_v21, %v2137_v39 }
 0x173   : > { %v2514_v12 = vadd.f32 %v2475_v6, %v2330_v22  ;;  %v3626_v40 = vpop.f32.mrf.mxu0  ;;  %v4553_v59 = vadd.f32 %v4545_v48, %v2516_v20  ;;  %v2334_v29 = vadd.f32 %v4678_v30, %v2143_v50  ;;  %v4681_v6 = vld [vmem:[#allocation4_spill] sm:$0xff]  ;;  %v2327_v22 = vadd.f32 %v4682_v15, %v2136_v38 }
 0x174   : > { %v3635_v8 = vpop.f32.mrf.mxu1  ;;  %v2508_v5 = vadd.f32 %v3626_v40, %v2324_v26  ;;  %v2335_v52 = vadd.f32 %v4527_v37, %v2144_v19  ;;  %v2329_v56 = vadd.f32 %v4681_v6, %v2138_v17 }
 0x175   : > { %v2517_v16 = vadd.f32 %v3635_v8, %v2333_v13  ;;  %v2443_v0 = vpop.f32.mrf.mxu0  ;;  %v4568_v53 = vadd.f32 %v4545_v48, %v2514_v12  ;;  %v2656_v34 = vmul.f32 %v4553_v59, %v4553_v59 }
 0x176   : > { %v2478_v18 = vpop.f32.mrf.mxu1  ;;  %v2506_v51 = vadd.f32 %v2443_v0, %v2322_v14  ;;  %v2531_v49 = vadd.f32 %v4545_v48, %v2508_v5 }
 0x177   : > { %v2515_v42 = vadd.f32 %v2478_v18, %v2331_v7  ;;  %v4556_v11 = vadd.f32 %v4545_v48, %v2517_v16  ;;  %v3627_v32 = vpop.f32.mrf.mxu0 }
 0x178   : > { %v3638_v61 = vpop.f32.mrf.mxu1  ;;  %v2509_v46 = vadd.f32 %v3627_v32, %v2325_v4  ;;  %v2529_v2 = vadd.f32 %v4545_v48, %v2506_v51  ;;  %v2648_v18 = vmul.f32 %v2531_v49, %v2531_v49 }
 0x179   : > { %v4571_v45 = vadd.f32 %v4545_v48, %v2515_v42  ;;  %v3189_v9 = vpack.c.bf16 %v4556_v11, %v4553_v59  ;;  %v2446_v1 = vpop.f32.mrf.mxu0  ;;  %v2520_v62 = vadd.f32 %v3638_v61, %v2336_v55 }
 0x17a   : > { %v2491_v27 = vpop.f32.mrf.mxu1  ;;  %v2532_v31 = vadd.f32 %v4545_v48, %v2509_v46  ;;  %v2507_v57 = vadd.f32 %v2446_v1, %v2323_v10  ;;  %v2646_v28 = vmul.f32 %v2529_v2, %v2529_v2 }
 0x17b   : > { %v3184_v35 = vpack.c.bf16 %v4571_v45, %v4568_v53  ;;  %3205 = vst [vmem:[%s4563_s24 + $0x28] sm:$0xff] %v3189_v9   ;;  %v3630_v24 = vpop.f32.mrf.mxu0  ;;  %v2518_v41 = vadd.f32 %v2491_v27, %v2334_v29  ;;  %v4596_v44 = vadd.f32 %v4545_v48, %v2520_v62 }
 0x17c   : > { %v3639_v54 = vpop.f32.mrf.mxu1  ;;  %v3169_v63 = vpack.c.bf16 %v2532_v31, %v2531_v49  ;;  %v2530_v23 = vadd.f32 %v4545_v48, %v2507_v57  ;;  %v2512_v13 = vadd.f32 %v3630_v24, %v2328_v3  ;;  %v2649_v42 = vmul.f32 %v2532_v31, %v2532_v31 }
 0x17d   : > { %3204 = vst [vmem:[%s4563_s24 + $0x20] sm:$0xff] %v3184_v35   ;;  %v2521_v33 = vadd.f32 %v3639_v54, %v2337_v36  ;;  %v2459_v20 = vpop.f32.mrf.mxu0  ;;  %v2541_v4 = vadd.f32 %v4545_v48, %v2518_v41  ;;  %v2657_v24 = vmul.f32 %v4556_v11, %v4556_v11 }
 0x17e   : > { %v2494_v43 = vpop.f32.mrf.mxu1  ;;  %3201 = vst [vmem:[%s4563_s24 + $0x8] sm:$0xff] %v3169_v63   ;;  %v3164_v26 = vpack.c.bf16 %v2530_v23, %v2529_v2  ;;  %v2625_v7 = vadd.f32 %v2530_v23, %v2529_v2  ;;  %v2647_v12 = vmul.f32 %v2530_v23, %v2530_v23  ;;  %v2510_v14 = vadd.f32 %v2459_v20, %v2326_v47 }
 0x17f   : > { %v4599_v8 = vadd.f32 %v4545_v48, %v2521_v33  ;;  %v2519_v37 = vadd.f32 %v2494_v43, %v2335_v52  ;;  %v3631_v58 = vpop.f32.mrf.mxu0  ;;  %v2535_v50 = vadd.f32 %v4545_v48, %v2512_v13  ;;  %v2658_v43 = vmul.f32 %v2541_v4, %v2541_v4 }
 0x180   : > { %3165 = vst [vmem:[%s4563_s24] sm:$0xff] %v3164_v26   ;;  %v2626_v10 = vadd.f32 %v2625_v7, %v2531_v49  ;;  %v2662_v39 = vadd.f32 %v2647_v12, %v2646_v28  ;;  %v2513_v60 = vadd.f32 %v3631_v58, %v2329_v56  ;;  %v2533_v5 = vadd.f32 %v4545_v48, %v2510_v14 }
 0x181   : > { %v3199_v40 = vpack.c.bf16 %v4599_v8, %v4596_v44  ;;  %v2542_v16 = vadd.f32 %v4545_v48, %v2519_v37  ;;  %v2462_v0 = vpop.f32.mrf.mxu0  ;;  %v2652_v29 = vmul.f32 %v2535_v50, %v2535_v50  ;;  %v2660_v63 = vmul.f32 %v4596_v44, %v4596_v44 }
 0x182   : > { %v2663_v25 = vadd.f32 %v2662_v39, %v2648_v18  ;;  %v2627_v51 = vadd.f32 %v2626_v10, %v2532_v31  ;;  %v2536_v17 = vadd.f32 %v4545_v48, %v2513_v60  ;;  %v2511_v55 = vadd.f32 %v2462_v0, %v2327_v22 }
 0x183   : > { %3207 = vst [vmem:[%s4563_s24 + $0x38] sm:$0xff] %v3199_v40   ;;  %v3194_v61 = vpack.c.bf16 %v2542_v16, %v2541_v4  ;;  %v2650_v32 = vmul.f32 %v2533_v5, %v2533_v5  ;;  %v2654_v31 = vmul.f32 %v4568_v53, %v4568_v53  ;;  %v2661_v13 = vmul.f32 %v4599_v8, %v4599_v8 }
 0x184   : > { %v2628_v19 = vadd.f32 %v2627_v51, %v2533_v5  ;;  %v2664_v9 = vadd.f32 %v2663_v25, %v2649_v42  ;;  %v3179_v27 = vpack.c.bf16 %v2536_v17, %v2535_v50  ;;  %v2534_v38 = vadd.f32 %v4545_v48, %v2511_v55 }
 0x185   : > { %3206 = vst [vmem:[%s4563_s24 + $0x30] sm:$0xff] %v3194_v61   ;;  %v2653_v62 = vmul.f32 %v2536_v17, %v2536_v17  ;;  %v2655_v48 = vmul.f32 %v4571_v45, %v4571_v45 }
 0x186   : > { %v2665_v36 = vadd.f32 %v2664_v9, %v2650_v32  ;;  %3203 = vst [vmem:[%s4563_s24 + $0x18] sm:$0xff] %v3179_v27   ;;  %v3174_v46 = vpack.c.bf16 %v2534_v38, %v2533_v5  ;;  %v2629_v35 = vadd.f32 %v2628_v19, %v2534_v38  ;;  %v2651_v30 = vmul.f32 %v2534_v38, %v2534_v38 }
 0x188   : > { %3202 = vst [vmem:[%s4563_s24 + $0x10] sm:$0xff] %v3174_v46   ;;  %v2630_v49 = vadd.f32 %v2629_v35, %v2535_v50  ;;  %v2666_v1 = vadd.f32 %v2665_v36, %v2651_v30 }
 0x18a   : > { %v2631_v54 = vadd.f32 %v2630_v49, %v2536_v17  ;;  %v2667_v2 = vadd.f32 %v2666_v1, %v2652_v29 }
 0x18c   : > { %v2632_v57 = vadd.f32 %v2631_v54, %v4568_v53  ;;  %v2668_v33 = vadd.f32 %v2667_v2, %v2653_v62 }
 0x18e   : > { %v2669_v21 = vadd.f32 %v2668_v33, %v2654_v31  ;;  %v2633_v3 = vadd.f32 %v2632_v57, %v4571_v45  ;;  %v2659_v45 = vmul.f32 %v2542_v16, %v2542_v16 }
 0x190   : > { %v2634_v47 = vadd.f32 %v2633_v3, %v4553_v59  ;;  %v2670_v52 = vadd.f32 %v2669_v21, %v2655_v48 }
 0x192   : > { %v2635_v41 = vadd.f32 %v2634_v47, %v4556_v11  ;;  %v2671_v53 = vadd.f32 %v2670_v52, %v2656_v34 }
 0x194   : > { %v2636_v6 = vadd.f32 %v2635_v41, %v2541_v4  ;;  %v2672_v56 = vadd.f32 %v2671_v53, %v2657_v24 }
 0x196   : > { %v2637_v15 = vadd.f32 %v2636_v6, %v2542_v16  ;;  %v2673_v22 = vadd.f32 %v2672_v56, %v2658_v43 }
 0x198   : > { %v2638_v59 = vadd.f32 %v2637_v15, %v4596_v44  ;;  %v2674_v23 = vadd.f32 %v2673_v22, %v2659_v45 }
 0x19a   : > { %v2639_v11 = vadd.f32 %v2638_v59, %v4599_v8  ;;  %v2675_v20 = vadd.f32 %v2674_v23, %v2660_v63 }
 0x19c   : > { %v2640_v37 = vrot.slane %v2639_v11, 4  ;;  %v2676_v28 = vadd.f32 %v2675_v20, %v2661_v13 }
 0x19e   : > { %v2641_v26 = vadd.f32 %v2640_v37, %v2639_v11  ;;  %v2677_v7 = vrot.slane %v2676_v28, 4 }
 0x1a0   : > { %v2642_v12 = vrot.slane %v2641_v26, 2  ;;  %v2678_v14 = vadd.f32 %v2677_v7, %v2676_v28 }
 0x1a2   : > { %v2643_v4 = vadd.f32 %v2642_v12, %v2641_v26  ;;  %v2679_v58 = vrot.slane %v2678_v14, 2 }
 0x1a4   : > { %v2644_v44 = vrot.slane %v2643_v4, 1  ;;  %v2680_v40 = vadd.f32 %v2679_v58, %v2678_v14 }
 0x1a6   : > { %v2681_v16 = vrot.slane %v2680_v40, 1  ;;  %v2645_v8 = vadd.f32 %v2644_v44, %v2643_v4 }
 0x1a8   : > { %v2682_v18 = vadd.f32 %v2681_v16, %v2680_v40 }
 0x1aa   : > { %v2684_v10 = vsel %vm738_vm7, %v2645_v8, %v2682_v18 }
 0x1ab   : > { %2685 = vst [vmem:[%s494_s20] sm:$0x3] %v2684_v10 }
 0x1ac PF: > { %s19_s9 = sadd.s32 1, %s3806_s9   ;;  %s4683_s27 = smov %s3798_s29 }
 0x1ad   : > { %p16_p11 = scmp.ge.s32.totalorder %s19_s9, 6   ;;  %s4684_s28 = smov %s3802_s30 }
 0x1ae   : > { %s4685_s29 = smov %s4688_s5  ;;  %s4686_s30 = smov %s4692_s6 }
 0x1af   :  { %18 = sbr.rel (!%p16_p11) target bundleno = 3 (0x3), region = 104 }

</bundles_post_ra>
